<compile_context>
chip_gen: v7x
topology: tpu7x:2x2x1
jax: 0.10.0
libtpu: 0.0.40
codegen_flags: <defaults>
</compile_context>

<pallas_src>
import jax
import jax.numpy as jnp
from jax.experimental import pallas as pl
from jax.experimental.pallas import tpu as pltpu

Z_DIM = 100
Z_PAD = 128                     # lane-aligned contraction dim for layer 1
H1, H2, H3 = 256, 512, 1024
IMAGE_SIZE = 28 * 28            # 784
OUT_PAD = 896                   # 7 * 128, lane-dense output slab
BIAS_TOTAL = H1 + H2 + H3 + OUT_PAD   # 2688 = 21 * 128 (all slice offsets lane-aligned)


def _round_up(x, m):
    return ((x + m - 1) // m) * m


def _tpu_generation():
    """Best-effort TPU generation from device_kind; None if unknown."""
    try:
        kind = jax.devices()[0].device_kind.lower()
    except Exception:
        return None
    for g in (7, 6, 5, 4, 3, 2):
        if ("v%d" % g) in kind or ("tpu%d" % g) in kind:
            return g
    return None


def make_generator_kernel(bf16_tail):
    def generator_kernel(x_ref, w1_ref, w2_ref, w3_ref, w4_ref, b_ref, out_ref):
        # Bias slices out of the single resident (1, 2688) array; all offsets
        # are multiples of 128 so these are free lane-aligned views.
        b1 = b_ref[:, 0:H1]
        b2 = b_ref[:, H1:H1 + H2]
        b3 = b_ref[:, H1 + H2:H1 + H2 + H3]
        b4 = b_ref[:, H1 + H2 + H3:BIAS_TOTAL]

        # Layer 1: Linear(z_dim -> 256) + ReLU  (bf16 x bf16 -> f32 acc on MXU)
        h = jnp.dot(x_ref[...], w1_ref[...], preferred_element_type=jnp.float32)
        h = jnp.maximum(h + b1, 0.0)
        # Layer 2: Linear(256 -> 512) + ReLU
        h = jnp.dot(h.astype(jnp.bfloat16), w2_ref[...],
                    preferred_element_type=jnp.float32)
        h = jnp.maximum(h + b2, 0.0)
        # Layer 3: Linear(512 -> 1024) + ReLU
        h = jnp.dot(h.astype(jnp.bfloat16), w3_ref[...],
                    preferred_element_type=jnp.float32)
        h = jnp.maximum(h + b3, 0.0)
        # Layer 4: Linear(1024 -> 784[padded 896]) + Tanh
        h = jnp.dot(h.astype(jnp.bfloat16), w4_ref[...],
                    preferred_element_type=jnp.float32)
        z = h + b4
        if bf16_tail:
            # v6e/v7x: bf16 EUP tanh + bf16 writeback (halves store traffic).
            out_ref[...] = jnp.tanh(z.astype(jnp.bfloat16)).astype(out_ref.dtype)
        else:
            out_ref[...] = jnp.tanh(z).astype(out_ref.dtype)
    return generator_kernel


def prepare_params(params):
    """One-time prep: pad W1 (K 100->128) and W4/b4 (out 784->896), cast weights
    to bf16, concatenate the four biases into one lane-aligned f32 array."""
    (w1, b1), (w2, b2), (w3, b3), (w4, b4) = params
    w1p = jnp.zeros((Z_PAD, H1), jnp.float32).at[:Z_DIM, :].set(w1)
    w4p = jnp.zeros((H3, OUT_PAD), jnp.float32).at[:, :IMAGE_SIZE].set(w4)
    b4p = jnp.zeros((1, OUT_PAD), jnp.float32).at[:, :IMAGE_SIZE].set(b4)
    b_cat = jnp.concatenate([b1, b2, b3, b4p], axis=1)   # (1, 2688) f32
    return (w1p.astype(jnp.bfloat16), w2.astype(jnp.bfloat16),
            w3.astype(jnp.bfloat16), w4p.astype(jnp.bfloat16), b_cat)


def generator_forward(x, prepared, *, tm_large=None, bf16_tail=None):
    """x: (B, Z_DIM) float32. prepared: output of prepare_params.
    Returns (B, 1, 28, 28) float32."""
    B = x.shape[0]
    w1, w2, w3, w4, b_cat = prepared

    gen = _tpu_generation()
    if bf16_tail is None:
        bf16_tail = gen is not None and gen >= 6     # bf16 EUP/VPU generations
    if tm_large is None:
        tm_large = 256 if (gen is not None and gen >= 6) else 128

    # Batch tile: big lane-/MXU-friendly tile for real batches, else the batch
    # rounded up to a multiple of 16 (full bf16 sublane packing).
    tm = tm_large if B >= tm_large else _round_up(B, 16)
    B_pad = _round_up(B, tm)
    n_tiles = B_pad // tm

    # Pad noise: batch to tile multiple, K from 100 -> 128 (zeros match W1's
    # zero rows, so the padded lanes contribute nothing).
    x_p = jnp.zeros((B_pad, Z_PAD), jnp.bfloat16)
    x_p = x_p.at[:B, :Z_DIM].set(x.astype(jnp.bfloat16))

    out_dtype = jnp.bfloat16 if bf16_tail else jnp.float32

    def const_spec(shape):
        return pl.BlockSpec(shape, lambda i: (0,) * len(shape))

    # Only split across cores when there is enough work per core; otherwise a
    # "parallel" axis makes each v7x core re-fetch its own copy of the weights.
    semantics = "parallel" if n_tiles >= 8 else "arbitrary"

    # TODO(synk): if this generator runs inside a sampling loop, prefetch the
    # ~3.2 MiB bf16 weights via a cross-call DMA/semaphore future (or batch
    # several sampling steps per call) so the weight fetch is not exposed.
    out_flat = pl.pallas_call(
        make_generator_kernel(bf16_tail),
        out_shape=jax.ShapeDtypeStruct((B_pad, OUT_PAD), out_dtype),
        grid=(n_tiles,),
        in_specs=[
            pl.BlockSpec((tm, Z_PAD), lambda i: (i, 0)),   # x: batch-tiled, pipelined
            const_spec(w1.shape),                           # weights/bias resident
            const_spec(w2.shape),
            const_spec(w3.shape),
            const_spec(w4.shape),
            const_spec(b_cat.shape),
        ],
        out_specs=pl.BlockSpec((tm, OUT_PAD), lambda i: (i, 0)),
        compiler_params=pltpu.CompilerParams(
            dimension_semantics=(semantics,),
            vmem_limit_bytes=16 << 20,      # actual use ~10 MiB; safe on all gens
        ),
    )(x_p, w1, w2, w3, w4, b_cat)

    # Drop output padding (896 -> 784) and batch padding, upcast, NCHW view.
    img = out_flat[:B, :IMAGE_SIZE].astype(jnp.float32)
    return img.reshape(B, 1, 28, 28)


def init_params(key):
    """Deterministic init mimicking PyTorch nn.Linear default (U[-k, k], k=1/sqrt(fan_in))."""
    dims = [(Z_DIM, H1), (H1, H2), (H2, H3), (H3, IMAGE_SIZE)]
    params = []
    for (fan_in, fan_out) in dims:
        key, kw, kb = jax.random.split(key, 3)
        bound = 1.0 / (fan_in ** 0.5)
        w = jax.random.uniform(kw, (fan_in, fan_out), jnp.float32, -bound, bound)
        b = jax.random.uniform(kb, (1, fan_out), jnp.float32, -bound, bound)
        params.append((w, b))
    return params


if __name__ == "__main__":
    key = jax.random.PRNGKey(0)
    key, kx = jax.random.split(key)

    B = 8
    x = jax.random.normal(kx, (B, Z_DIM), dtype=jnp.float32)
    params = init_params(key)
    prepared = prepare_params(params)

    img = generator_forward(x, prepared)
    jax.block_until_ready(img)

    assert img.shape == (B, 1, 28, 28), img.shape
    assert img.dtype == jnp.float32

    # Reference 1: same bf16-weight arithmetic (f32 accumulation) in pure JAX.
    def ref_bf16(x, prepped):
        w1, w2, w3, w4, b_cat = prepped
        b1 = b_cat[:, :H1]
        b2 = b_cat[:, H1:H1 + H2]
        b3 = b_cat[:, H1 + H2:H1 + H2 + H3]
        b4 = b_cat[:, H1 + H2 + H3:]
        h = jnp.zeros((x.shape[0], Z_PAD), jnp.bfloat16).at[:, :Z_DIM].set(
            x.astype(jnp.bfloat16))
        h = jnp.maximum(jnp.dot(h, w1, preferred_element_type=jnp.float32) + b1, 0.0)
        h = jnp.maximum(jnp.dot(h.astype(jnp.bfloat16), w2,
                                preferred_element_type=jnp.float32) + b2, 0.0)
        h = jnp.maximum(jnp.dot(h.astype(jnp.bfloat16), w3,
                                preferred_element_type=jnp.float32) + b3, 0.0)
        h = jnp.tanh(jnp.dot(h.astype(jnp.bfloat16), w4,
                             preferred_element_type=jnp.float32) + b4)
        return h[:, :IMAGE_SIZE].reshape(-1, 1, 28, 28)

    # Reference 2: original full-f32 forward (loose tolerance due to bf16 weights).
    def ref_f32(x, params):
        h = x
        for i, (w, b) in enumerate(params):
            h = h @ w + b
            h = jnp.maximum(h, 0.0) if i < 3 else jnp.tanh(h)
        return h.reshape(-1, 1, 28, 28)

    # 2e-2 covers the optional bf16 tanh/output path on v6e/v7x (outputs in [-1, 1]).
    assert jnp.allclose(img, ref_bf16(x, prepared), atol=2e-2, rtol=1e-2)
    assert jnp.allclose(img, ref_f32(x, params), atol=1e-1)

    print("KERNEL_OK")
</pallas_src>

<mosaic_0001>
module attributes {stable_mosaic.version = 11 : i64} {
  func.func @generator_kernel(%arg0: i32, %arg1: memref<16x128xbf16, #tpu.memory_space<vmem>>, %arg2: memref<128x256xbf16, #tpu.memory_space<vmem>>, %arg3: memref<256x512xbf16, #tpu.memory_space<vmem>>, %arg4: memref<512x1024xbf16, #tpu.memory_space<vmem>>, %arg5: memref<1024x896xbf16, #tpu.memory_space<vmem>>, %arg6: memref<1x2688xf32, #tpu.memory_space<vmem>>, %arg7: memref<16x896xf32, #tpu.memory_space<vmem>>) attributes {dimension_semantics = [#tpu.dimension_semantics<arbitrary>], iteration_bounds = array<i64: 1>, scalar_prefetch = 0 : i64, scratch_operands = 0 : i64, tpu.core_type = #tpu.core_type<tc>, window_params = [{transform_indices = @transform_0, window_bounds = array<i64: 16, 128>}, {pipeline_mode = #tpu.pipeline_mode<synchronous>, transform_indices = @transform_1, window_bounds = array<i64: 128, 256>}, {pipeline_mode = #tpu.pipeline_mode<synchronous>, transform_indices = @transform_2, window_bounds = array<i64: 256, 512>}, {pipeline_mode = #tpu.pipeline_mode<synchronous>, transform_indices = @transform_3, window_bounds = array<i64: 512, 1024>}, {pipeline_mode = #tpu.pipeline_mode<synchronous>, transform_indices = @transform_4, window_bounds = array<i64: 1024, 896>}, {pipeline_mode = #tpu.pipeline_mode<synchronous>, transform_indices = @transform_5, window_bounds = array<i64: 1, 2688>}, {transform_indices = @transform_6, window_bounds = array<i64: 16, 896>}]} {
    %c0 = arith.constant 0 : index
    %c0_0 = arith.constant 0 : index
    %0 = vector.load %arg6[%c0, %c0_0] : memref<1x2688xf32, #tpu.memory_space<vmem>>, vector<1x256xf32>
    %c0_1 = arith.constant 0 : index
    %c256 = arith.constant 256 : index
    %1 = vector.load %arg6[%c0_1, %c256] : memref<1x2688xf32, #tpu.memory_space<vmem>>, vector<1x512xf32>
    %c0_2 = arith.constant 0 : index
    %c768 = arith.constant 768 : index
    %2 = vector.load %arg6[%c0_2, %c768] : memref<1x2688xf32, #tpu.memory_space<vmem>>, vector<1x1024xf32>
    %c0_3 = arith.constant 0 : index
    %c1792 = arith.constant 1792 : index
    %3 = vector.load %arg6[%c0_3, %c1792] : memref<1x2688xf32, #tpu.memory_space<vmem>>, vector<1x896xf32>
    %c0_4 = arith.constant 0 : index
    %c0_5 = arith.constant 0 : index
    %4 = vector.load %arg1[%c0_4, %c0_5] : memref<16x128xbf16, #tpu.memory_space<vmem>>, vector<16x128xbf16>
    %c0_6 = arith.constant 0 : index
    %c0_7 = arith.constant 0 : index
    %5 = vector.load %arg2[%c0_6, %c0_7] : memref<128x256xbf16, #tpu.memory_space<vmem>>, vector<128x256xbf16>
    %cst = arith.constant dense<0.000000e+00> : vector<16x256xf32>
    %6 = tpu.matmul %4, %5, %cst {dimension_numbers = #tpu.dot_dimension_numbers<[1], [0], [0], [1], [0, 0, 1, 1], [], []>} : vector<16x128xbf16>, vector<128x256xbf16>, vector<16x256xf32> -> vector<16x256xf32>
    %7 = vector.broadcast %0 : vector<1x256xf32> to vector<16x256xf32>
    %8 = arith.addf %6, %7 : vector<16x256xf32>
    %cst_8 = arith.constant 0.000000e+00 : f32
    %9 = vector.broadcast %cst_8 : f32 to vector<16x256xf32>
    %10 = arith.maximumf %8, %9 : vector<16x256xf32>
    %11 = arith.truncf %10 : vector<16x256xf32> to vector<16x256xbf16>
    %c0_9 = arith.constant 0 : index
    %c0_10 = arith.constant 0 : index
    %12 = vector.load %arg3[%c0_9, %c0_10] : memref<256x512xbf16, #tpu.memory_space<vmem>>, vector<256x512xbf16>
    %cst_11 = arith.constant dense<0.000000e+00> : vector<16x512xf32>
    %13 = tpu.matmul %11, %12, %cst_11 {dimension_numbers = #tpu.dot_dimension_numbers<[1], [0], [0], [1], [0, 0, 1, 1], [], []>} : vector<16x256xbf16>, vector<256x512xbf16>, vector<16x512xf32> -> vector<16x512xf32>
    %14 = vector.broadcast %1 : vector<1x512xf32> to vector<16x512xf32>
    %15 = arith.addf %13, %14 : vector<16x512xf32>
    %cst_12 = arith.constant 0.000000e+00 : f32
    %16 = vector.broadcast %cst_12 : f32 to vector<16x512xf32>
    %17 = arith.maximumf %15, %16 : vector<16x512xf32>
    %18 = arith.truncf %17 : vector<16x512xf32> to vector<16x512xbf16>
    %c0_13 = arith.constant 0 : index
    %c0_14 = arith.constant 0 : index
    %19 = vector.load %arg4[%c0_13, %c0_14] : memref<512x1024xbf16, #tpu.memory_space<vmem>>, vector<512x1024xbf16>
    %cst_15 = arith.constant dense<0.000000e+00> : vector<16x1024xf32>
    %20 = tpu.matmul %18, %19, %cst_15 {dimension_numbers = #tpu.dot_dimension_numbers<[1], [0], [0], [1], [0, 0, 1, 1], [], []>} : vector<16x512xbf16>, vector<512x1024xbf16>, vector<16x1024xf32> -> vector<16x1024xf32>
    %21 = vector.broadcast %2 : vector<1x1024xf32> to vector<16x1024xf32>
    %22 = arith.addf %20, %21 : vector<16x1024xf32>
    %cst_16 = arith.constant 0.000000e+00 : f32
    %23 = vector.broadcast %cst_16 : f32 to vector<16x1024xf32>
    %24 = arith.maximumf %22, %23 : vector<16x1024xf32>
    %25 = arith.truncf %24 : vector<16x1024xf32> to vector<16x1024xbf16>
    %c0_17 = arith.constant 0 : index
    %c0_18 = arith.constant 0 : index
    %26 = vector.load %arg5[%c0_17, %c0_18] : memref<1024x896xbf16, #tpu.memory_space<vmem>>, vector<1024x896xbf16>
    %cst_19 = arith.constant dense<0.000000e+00> : vector<16x896xf32>
    %27 = tpu.matmul %25, %26, %cst_19 {dimension_numbers = #tpu.dot_dimension_numbers<[1], [0], [0], [1], [0, 0, 1, 1], [], []>} : vector<16x1024xbf16>, vector<1024x896xbf16>, vector<16x896xf32> -> vector<16x896xf32>
    %28 = vector.broadcast %3 : vector<1x896xf32> to vector<16x896xf32>
    %29 = arith.addf %27, %28 : vector<16x896xf32>
    %30 = math.tanh %29 : vector<16x896xf32>
    %c0_20 = arith.constant 0 : index
    %c0_21 = arith.constant 0 : index
    %31 = vector.load %arg7[%c0_20, %c0_21] : memref<16x896xf32, #tpu.memory_space<vmem>>, vector<16x896xf32>
    tpu.vector_store %arg7[%c0_20, %c0_21], %30 {strides = array<i32>} : memref<16x896xf32, #tpu.memory_space<vmem>>, vector<16x896xf32>,
    return
  }
  func.func @transform_0(%arg0: i32) -> (i32, i32) {
    %c0_i32 = arith.constant 0 : i32
    %c0_i32_0 = arith.constant 0 : i32
    return %arg0, %c0_i32 : i32, i32
  }
  func.func @transform_1(%arg0: i32) -> (i32, i32) {
    %c0_i32 = arith.constant 0 : i32
    %c0_i32_0 = arith.constant 0 : i32
    %c0_i32_1 = arith.constant 0 : i32
    return %c0_i32, %c0_i32_0 : i32, i32
  }
  func.func @transform_2(%arg0: i32) -> (i32, i32) {
    %c0_i32 = arith.constant 0 : i32
    %c0_i32_0 = arith.constant 0 : i32
    %c0_i32_1 = arith.constant 0 : i32
    return %c0_i32, %c0_i32_0 : i32, i32
  }
  func.func @transform_3(%arg0: i32) -> (i32, i32) {
    %c0_i32 = arith.constant 0 : i32
    %c0_i32_0 = arith.constant 0 : i32
    %c0_i32_1 = arith.constant 0 : i32
    return %c0_i32, %c0_i32_0 : i32, i32
  }
  func.func @transform_4(%arg0: i32) -> (i32, i32) {
    %c0_i32 = arith.constant 0 : i32
    %c0_i32_0 = arith.constant 0 : i32
    %c0_i32_1 = arith.constant 0 : i32
    return %c0_i32, %c0_i32_0 : i32, i32
  }
  func.func @transform_5(%arg0: i32) -> (i32, i32) {
    %c0_i32 = arith.constant 0 : i32
    %c0_i32_0 = arith.constant 0 : i32
    %c0_i32_1 = arith.constant 0 : i32
    return %c0_i32, %c0_i32_0 : i32, i32
  }
  func.func @transform_6(%arg0: i32) -> (i32, i32) {
    %c0_i32 = arith.constant 0 : i32
    %c0_i32_0 = arith.constant 0 : i32
    return %arg0, %c0_i32 : i32, i32
  }
}

</mosaic_0001>

<bundles_post_ra>
// kernel: tpu_custom_call.1
= control target key start
LH: loop header
LB: loop body
LE: loop exit
PB: predicated region body
PF: predicated region fallthrough
CT: control target
= control target key end

     0   :  { %11 = vsyncpa [#allocation3], 0  ;;  %s8533_s0 = inlined_call_operand.hbm [shape: bf16[16,128], index: 0, kind: input, shape index: {}]   ;;  %s8534_s1 = inlined_call_operand.hbm [shape: bf16[128,256], index: 1, kind: input, shape index: {}]   ;;  %s8535_s2 = inlined_call_operand.hbm [shape: bf16[256,512], index: 2, kind: input, shape index: {}]   ;;  %s8536_s3 = inlined_call_operand.hbm [shape: bf16[512,1024], index: 3, kind: input, shape index: {}]   ;;  %s8537_s4 = inlined_call_operand.hbm [shape: bf16[1024,896], index: 4, kind: input, shape index: {}]   ;;  %s8538_s5 = inlined_call_operand.hbm [shape: f32[1,2688], index: 5, kind: input, shape index: {}]   ;;  %s8539_s6 = inlined_call_operand.hbm [shape: f32[16,896], index: 6, kind: output, shape index: {}]  }
   0x1   :  { %12 = vsyncpa [#allocation6], 0 }
   0x2   :  { %13 = vsyncpa [#allocation9], 0 }
   0x3   :  { %14 = vsyncpa [#allocation12], 0 }
   0x4   :  { %15 = vsyncpa [#allocation4], 0  ;;  %s8227_s21 = smov [#allocation5]   ;;  %s8063_s25 = scalar_lea.hbm %s8534_s1, 2048 }
   0x5   :  { %s33_s22 = sshll.u32 %s8227_s21, 4  ;;  %p8064_p0 = scmp.ne.s32.totalorder %s8534_s1, %s8063_s25  ;;  %s34_s22 = int_to_ptr.vmem [resolvable:$true] %s33_s22 }
   0x6   :  { %p8067_p1 = scmp.lt.u32.totalorder %s8063_s25, %s8534_s1 }
   0x8   :  { %p8069_p2 = pnand %p8067_p1, %p8064_p0 }
   0xa   :  { %8072 = shalt.err (!%p8069_p2)
}
   0xb   :  { %s8073_s30 = scalar_lea.vmem %s34_s22, 2048  ;;  %p8078_p4 = scmp.lt.s32.totalorder %s34_s22, %s34_s22 }
   0xc   :  { %p8074_p3 = scmp.ne.s32.totalorder %s34_s22, %s8073_s30  ;;  %p8079_p5 = scmp.lt.s32.totalorder %s8073_s30, %s8073_s30 }
   0xe   :  { %p8080_p6 = por %p8079_p5, %p8078_p4 }
  0x10   :  { %p8081_p7 = pnand %p8080_p6, %p8074_p3 }
  0x12   :  { %8084 = shalt.err (!%p8081_p7)
}
  0x13   :  { %s8228_s7 = smov 128   ;;  %s8229_s8 = smov 8  }
  0x14   :  { %39 = dma.hbm_to_vmem [thread:$0]  %s8534_s1, 2048, %s34_s22, [#allocation6], %s8228_s7, %s8228_s7, %s8229_s8  }
  0x15   :  { %s8230_s11 = smov [#allocation8]   ;;  %s8085_s15 = scalar_lea.hbm %s8536_s3, 32768 }
  0x16   :  { %s57_s12 = sshll.u32 %s8230_s11, 4  ;;  %p8086_p8 = scmp.ne.s32.totalorder %s8536_s3, %s8085_s15  ;;  %s58_s12 = int_to_ptr.vmem [resolvable:$true] %s57_s12 }
  0x17   :  { %p8089_p9 = scmp.lt.u32.totalorder %s8085_s15, %s8536_s3 }
  0x19   :  { %p8091_p10 = pnand %p8089_p9, %p8086_p8 }
  0x1b   :  { %8094 = shalt.err (!%p8091_p10)
}
  0x1c   :  { %s8095_s20 = scalar_lea.vmem %s58_s12, 32768  ;;  %p8100_p12 = scmp.lt.s32.totalorder %s58_s12, %s58_s12 }
  0x1d   :  { %p8096_p11 = scmp.ne.s32.totalorder %s58_s12, %s8095_s20  ;;  %p8101_p13 = scmp.lt.s32.totalorder %s8095_s20, %s8095_s20 }
  0x1f   :  { %p8102_p0 = por %p8101_p13, %p8100_p12 }
  0x21   :  { %p8103_p1 = pnand %p8102_p0, %p8096_p11 }
  0x23   :  { %8106 = shalt.err (!%p8103_p1)
}
  0x24   :  { %s8231_s1 = smov 512   ;;  %s8232_s21 = smov 32  }
  0x25   :  { %63 = dma.hbm_to_vmem [thread:$0]  %s8536_s3, 32768, %s58_s12, [#allocation9], %s8231_s1, %s8231_s1, %s8232_s21  }
  0x26   :  { %s8233_s24 = smov [#allocation2]   ;;  %s8107_s28 = scalar_lea.hbm %s8533_s0, 128 }
  0x27   :  { %s21_s25 = sshll.u32 %s8233_s24, 4  ;;  %p8108_p2 = scmp.ne.s32.totalorder %s8533_s0, %s8107_s28  ;;  %s22_s25 = int_to_ptr.vmem [resolvable:$true] %s21_s25 }
  0x28   :  { %p8111_p3 = scmp.lt.u32.totalorder %s8107_s28, %s8533_s0 }
  0x2a   :  { %p8113_p4 = pnand %p8111_p3, %p8108_p2 }
  0x2c   :  { %8116 = shalt.err (!%p8113_p4)
}
  0x2d   :  { %s8117_s9 = scalar_lea.vmem %s22_s25, 128  ;;  %p8122_p6 = scmp.lt.s32.totalorder %s22_s25, %s22_s25 }
  0x2e   :  { %p8118_p5 = scmp.ne.s32.totalorder %s22_s25, %s8117_s9  ;;  %p8123_p7 = scmp.lt.s32.totalorder %s8117_s9, %s8117_s9 }
  0x30   :  { %p8124_p8 = por %p8123_p7, %p8122_p6 }
  0x32   :  { %p8125_p9 = pnand %p8124_p8, %p8118_p5 }
  0x34   :  { %8128 = shalt.err (!%p8125_p9)
}
  0x35   :  { %s8234_s3 = smov 64   ;;  %s8235_s10 = smov 4  }
  0x36   :  { %27 = dma.hbm_to_vmem [thread:$0]  %s8533_s0, 128, %s22_s25, [#allocation3], %s8234_s3, %s8234_s3, %s8235_s10  }
  0x37   :  { %s8236_s13 = smov [#allocation7]   ;;  %s8129_s17 = scalar_lea.hbm %s8535_s2, 8192 }
  0x38   :  { %s45_s14 = sshll.u32 %s8236_s13, 4  ;;  %p8130_p10 = scmp.ne.s32.totalorder %s8535_s2, %s8129_s17  ;;  %s46_s14 = int_to_ptr.vmem [resolvable:$true] %s45_s14 }
  0x39   :  { %p8133_p11 = scmp.lt.u32.totalorder %s8129_s17, %s8535_s2 }
  0x3b   :  { %p8135_p12 = pnand %p8133_p11, %p8130_p10 }
  0x3d   :  { %8138 = shalt.err (!%p8135_p12)
}
  0x3e   :  { %s8139_s21 = scalar_lea.vmem %s46_s14, 8192  ;;  %p8144_p0 = scmp.lt.s32.totalorder %s46_s14, %s46_s14 }
  0x3f   :  { %p8140_p13 = scmp.ne.s32.totalorder %s46_s14, %s8139_s21  ;;  %p8145_p1 = scmp.lt.s32.totalorder %s8139_s21, %s8139_s21 }
  0x41   :  { %p8146_p2 = por %p8145_p1, %p8144_p0 }
  0x43   :  { %p8147_p3 = pnand %p8146_p2, %p8140_p13 }
  0x45   :  { %8150 = shalt.err (!%p8147_p3)
}
  0x46   :  { %s8237_s0 = smov 256   ;;  %s8238_s22 = smov 16  }
  0x47   :  { %51 = dma.hbm_to_vmem [thread:$0]  %s8535_s2, 8192, %s46_s14, [#allocation6], %s8237_s0, %s8237_s0, %s8238_s22  }
  0x48   :  { %s8239_s25 = smov [#allocation10]   ;;  %s8151_s29 = scalar_lea.hbm %s8537_s4, 57344 }
  0x49   :  { %s69_s26 = sshll.u32 %s8239_s25, 4  ;;  %p8152_p4 = scmp.ne.s32.totalorder %s8537_s4, %s8151_s29  ;;  %s70_s26 = int_to_ptr.vmem [resolvable:$true] %s69_s26 }
  0x4a   :  { %p8155_p5 = scmp.lt.u32.totalorder %s8151_s29, %s8537_s4 }
  0x4c   :  { %p8157_p6 = pnand %p8155_p5, %p8152_p4 }
  0x4e   :  { %8160 = shalt.err (!%p8157_p6)
}
  0x4f   :  { %s8161_s3 = scalar_lea.vmem %s70_s26, 57344  ;;  %p8166_p8 = scmp.lt.s32.totalorder %s70_s26, %s70_s26 }
  0x50   :  { %p8162_p7 = scmp.ne.s32.totalorder %s70_s26, %s8161_s3  ;;  %p8167_p9 = scmp.lt.s32.totalorder %s8161_s3, %s8161_s3 }
  0x52   :  { %p8168_p10 = por %p8167_p9, %p8166_p8 }
  0x54   :  { %p8169_p11 = pnand %p8168_p10, %p8162_p7 }
  0x56   :  { %8172 = shalt.err (!%p8169_p11)
}
  0x57   :  { %s8240_s2 = smov 448   ;;  %s8241_s10 = smov 28  }
  0x58   :  { %75 = dma.hbm_to_vmem [thread:$0]  %s8537_s4, 57344, %s70_s26, [#allocation9], %s8240_s2, %s8240_s2, %s8241_s10  }
  0x59   :  { %s8242_s13 = smov [#allocation11]   ;;  %s8173_s17 = scalar_lea.hbm %s8538_s5, 336 }
  0x5a   :  { %s82_s14 = sshll.u32 %s8242_s13, 4  ;;  %p8174_p12 = scmp.ne.s32.totalorder %s8538_s5, %s8173_s17  ;;  %s83_s14 = int_to_ptr.vmem [resolvable:$true] %s82_s14 }
  0x5b   :  { %p8177_p13 = scmp.lt.u32.totalorder %s8173_s17, %s8538_s5 }
  0x5d   :  { %p8179_p0 = pnand %p8177_p13, %p8174_p12 }
  0x5f   :  { %8182 = shalt.err (!%p8179_p0)
}
  0x60   :  { %s8183_s21 = scalar_lea.vmem %s83_s14, 336  ;;  %s8187_s4 = scalar_lea.vmem %s83_s14, 352 }
  0x61   :  { %p8184_p1 = scmp.ne.s32.totalorder %s83_s14, %s8183_s21  ;;  %p8188_p2 = scmp.lt.s32.totalorder %s83_s14, %s83_s14 }
  0x62   :  { %p8189_p3 = scmp.lt.s32.totalorder %s8187_s4, %s8183_s21 }
  0x64   :  { %p8190_p4 = por %p8189_p3, %p8188_p2 }
  0x66   :  { %p8191_p5 = pnand %p8190_p4, %p8184_p1 }
  0x68   :  { %8194 = shalt.err (!%p8191_p5)
}
  0x69   :  { %85 = dma.hbm_to_vmem [thread:$0]  %s8538_s5, 336, %s83_s14, [#allocation12]  }
  0x6a   :  { %8217 = dma.done.wait [#allocation3], 128  }
  0x6b   :  { %8218 = vsyncadd [#allocation3], 4294967168 }
  0x6c   :  { %8219 = dma.done.wait [#allocation6], 10240  }
  0x6d   :  { %8220 = vsyncadd [#allocation6], 4294957056 }
  0x6e   :  { %8221 = dma.done.wait [#allocation9], 90112  }
  0x6f   :  { %8222 = vsyncadd [#allocation9], 4294877184 }
  0x70   :  { %8223 = dma.done.wait [#allocation12], 336  }
  0x71   :  { %8224 = vsyncadd [#allocation12], 4294966960  ;;  %v8243_v0 = vmov 0   ;;  %v7274_v1 = vld [vmem:[#allocation5 + $0x4] ss:$8 sps:$4 sm:$0xff]   ;;  %v7298_v18 = vld [vmem:[#allocation2] sm:$0xff]  }
  0x72   :  { %256 = vmatprep.mubr.bf16.mxu0 %v8243_v0  ;;  %v7276_v2 = vld [vmem:[#allocation5] ss:$8 sps:$4 sm:$0xff]   ;;  %224 = vmatprep.subr.bf16.mxu0 %v7274_v1  ;;  %v7277_v3 = vld [vmem:[#allocation5 + $0x14] ss:$8 sps:$4 sm:$0xff]   ;;  %v7279_v4 = vld [vmem:[#allocation5 + $0x10] ss:$8 sps:$4 sm:$0xff]  }
  0x73   :  { %225 = vmatpush1.bf16.msra.mxu0 %v7276_v2  ;;  %v7280_v5 = vld [vmem:[#allocation5 + $0x24] ss:$8 sps:$4 sm:$0xff]   ;;  %v7282_v6 = vld [vmem:[#allocation5 + $0x20] ss:$8 sps:$4 sm:$0xff]   ;;  %v7283_v7 = vld [vmem:[#allocation5 + $0x34] ss:$8 sps:$4 sm:$0xff]  }
  0x74   :  { %226 = vmatprep.subr.bf16.mxu0 %v7277_v3  ;;  %v7285_v8 = vld [vmem:[#allocation5 + $0x30] ss:$8 sps:$4 sm:$0xff]   ;;  %v7286_v9 = vld [vmem:[#allocation5 + $0x44] ss:$8 sps:$4 sm:$0xff]   ;;  %v7288_v10 = vld [vmem:[#allocation5 + $0x40] ss:$8 sps:$4 sm:$0xff]  }
  0x75   :  { %v7289_v11 = vld [vmem:[#allocation5 + $0x54] ss:$8 sps:$4 sm:$0xff]   ;;  %v7291_v12 = vld [vmem:[#allocation5 + $0x50] ss:$8 sps:$4 sm:$0xff]   ;;  %v7292_v13 = vld [vmem:[#allocation5 + $0x64] ss:$8 sps:$4 sm:$0xff]  }
  0x76   :  { %v7294_v14 = vld [vmem:[#allocation5 + $0x60] ss:$8 sps:$4 sm:$0xff]   ;;  %v7295_v15 = vld [vmem:[#allocation5 + $0x74] ss:$8 sps:$4 sm:$0xff]   ;;  %v7297_v16 = vld [vmem:[#allocation5 + $0x70] ss:$8 sps:$4 sm:$0xff]  }
  0x77   :  { %227 = vmatpush1.bf16.msra.mxu0 %v7279_v4  ;;  %v7301_v17 = vld [vmem:[#allocation7 + $0x4] ss:$16 sps:$4 sm:$0xff]   ;;  %v7299_v19 = vld [vmem:[#allocation7] ss:$16 sps:$4 sm:$0xff]   ;;  %v7349_v50 = vld [vmem:[#allocation7 + $0xc] ss:$16 sps:$4 sm:$0xff]  }
  0x78   :  { %228 = vmatprep.subr.bf16.mxu0 %v7280_v5  ;;  %v7304_v20 = vld [vmem:[#allocation7 + $0x24] ss:$16 sps:$4 sm:$0xff]   ;;  %v7302_v21 = vld [vmem:[#allocation7 + $0x20] ss:$16 sps:$4 sm:$0xff]   ;;  %s8244_s5 = smov [#allocation13]  }
  0x79   :  { %v7307_v22 = vld [vmem:[#allocation7 + $0x44] ss:$16 sps:$4 sm:$0xff]   ;;  %v7305_v23 = vld [vmem:[#allocation7 + $0x40] ss:$16 sps:$4 sm:$0xff]   ;;  %s6286_s23 = sshll.u32 %s8244_s5, 4  ;;  %s6287_s23 = int_to_ptr.vmem [resolvable:$true] %s6286_s23 }
  0x7a   :  { %v7310_v24 = vld [vmem:[#allocation7 + $0x64] ss:$16 sps:$4 sm:$0xff]   ;;  %v7308_v25 = vld [vmem:[#allocation7 + $0x60] ss:$16 sps:$4 sm:$0xff]   ;;  %s8195_s24 = scalar_lea.vmem %s6287_s23, 1792  ;;  %p8200_p7 = scmp.lt.s32.totalorder %s6287_s23, %s6287_s23 }
  0x7b   :  { %229 = vmatpush1.bf16.msra.mxu0 %v7282_v6  ;;  %v7313_v26 = vld [vmem:[#allocation7 + $0x84] ss:$16 sps:$4 sm:$0xff]   ;;  %v7311_v27 = vld [vmem:[#allocation7 + $0x80] ss:$16 sps:$4 sm:$0xff]   ;;  %p8196_p6 = scmp.ne.s32.totalorder %s6287_s23, %s8195_s24  ;;  %p8201_p8 = scmp.lt.s32.totalorder %s8195_s24, %s8195_s24 }
  0x7c   :  { %230 = vmatprep.subr.bf16.mxu0 %v7283_v7  ;;  %v7316_v28 = vld [vmem:[#allocation7 + $0xa4] ss:$16 sps:$4 sm:$0xff]   ;;  %v7314_v29 = vld [vmem:[#allocation7 + $0xa0] ss:$16 sps:$4 sm:$0xff]  }
  0x7d   :  { %v7319_v30 = vld [vmem:[#allocation7 + $0xc4] ss:$16 sps:$4 sm:$0xff]   ;;  %v7317_v31 = vld [vmem:[#allocation7 + $0xc0] ss:$16 sps:$4 sm:$0xff]   ;;  %p8202_p9 = por %p8201_p8, %p8200_p7 }
  0x7e   :  { %v7322_v32 = vld [vmem:[#allocation7 + $0xe4] ss:$16 sps:$4 sm:$0xff]   ;;  %v7320_v33 = vld [vmem:[#allocation7 + $0xe0] ss:$16 sps:$4 sm:$0xff]  }
  0x7f   :  { %231 = vmatpush1.bf16.msra.mxu0 %v7285_v8  ;;  %v7325_v34 = vld [vmem:[#allocation7 + $0x104] ss:$16 sps:$4 sm:$0xff]   ;;  %v7323_v35 = vld [vmem:[#allocation7 + $0x100] ss:$16 sps:$4 sm:$0xff]   ;;  %p8203_p10 = pnand %p8202_p9, %p8196_p6 }
  0x80   :  { %232 = vmatprep.subr.bf16.mxu0 %v7286_v9  ;;  %v7328_v36 = vld [vmem:[#allocation7 + $0x124] ss:$16 sps:$4 sm:$0xff]   ;;  %v7326_v37 = vld [vmem:[#allocation7 + $0x120] ss:$16 sps:$4 sm:$0xff]  }
  0x81   :  { %v7331_v38 = vld [vmem:[#allocation7 + $0x144] ss:$16 sps:$4 sm:$0xff]   ;;  %v7329_v39 = vld [vmem:[#allocation7 + $0x140] ss:$16 sps:$4 sm:$0xff]  }
  0x82   :  { %v7334_v40 = vld [vmem:[#allocation7 + $0x164] ss:$16 sps:$4 sm:$0xff]   ;;  %v7332_v41 = vld [vmem:[#allocation7 + $0x160] ss:$16 sps:$4 sm:$0xff]  }
  0x83   :  { %233 = vmatpush1.bf16.msra.mxu0 %v7288_v10  ;;  %v7337_v42 = vld [vmem:[#allocation7 + $0x184] ss:$16 sps:$4 sm:$0xff]   ;;  %v7335_v43 = vld [vmem:[#allocation7 + $0x180] ss:$16 sps:$4 sm:$0xff]  }
  0x84   :  { %234 = vmatprep.subr.bf16.mxu0 %v7289_v11  ;;  %v7340_v44 = vld [vmem:[#allocation7 + $0x1a4] ss:$16 sps:$4 sm:$0xff]   ;;  %v7338_v45 = vld [vmem:[#allocation7 + $0x1a0] ss:$16 sps:$4 sm:$0xff]  }
  0x85   :  { %v7343_v46 = vld [vmem:[#allocation7 + $0x1c4] ss:$16 sps:$4 sm:$0xff]   ;;  %v7341_v47 = vld [vmem:[#allocation7 + $0x1c0] ss:$16 sps:$4 sm:$0xff]  }
  0x86   :  { %v7346_v48 = vld [vmem:[#allocation7 + $0x1e4] ss:$16 sps:$4 sm:$0xff]   ;;  %v7344_v49 = vld [vmem:[#allocation7 + $0x1e0] ss:$16 sps:$4 sm:$0xff]  }
  0x87   :  { %235 = vmatpush1.bf16.msra.mxu0 %v7291_v12  ;;  %v776_v51 = vld [vmem:[#allocation8] sm:$0xff] }
  0x88   :  { %236 = vmatprep.subr.bf16.mxu0 %v7292_v13  ;;  %v780_v52 = vld [vmem:[#allocation8 + $0x20] sm:$0xff] }
  0x89   :  { %v6383_v53 = vcombine.high %v776_v51, %v780_v52  ;;  %v6382_v54 = vcombine.low %v776_v51, %v780_v52  ;;  %v784_v55 = vld [vmem:[#allocation8 + $0x40] sm:$0xff] }
  0x8a   :  { %v788_v56 = vld [vmem:[#allocation8 + $0x60] sm:$0xff] }
  0x8b   :  { %237 = vmatpush1.bf16.msra.mxu0 %v7294_v14  ;;  %v6391_v57 = vcombine.high %v784_v55, %v788_v56  ;;  %2353 = vmatprep.subr.bf16.mxu1 %v6383_v53  ;;  %v6390_v58 = vcombine.low %v784_v55, %v788_v56  ;;  %v792_v59 = vld [vmem:[#allocation8 + $0x80] sm:$0xff] }
  0x8c   :  { %238 = vmatprep.subr.bf16.mxu0 %v7295_v15  ;;  %2354 = vmatpush1.bf16.msra.mxu1 %v6382_v54  ;;  %v796_v60 = vld [vmem:[#allocation8 + $0xa0] sm:$0xff] }
  0x8d   :  { %2355 = vmatprep.subr.bf16.mxu1 %v6391_v57  ;;  %v6399_v61 = vcombine.high %v792_v59, %v796_v60  ;;  %v6398_v62 = vcombine.low %v792_v59, %v796_v60  ;;  %v800_v63 = vld [vmem:[#allocation8 + $0xc0] sm:$0xff] }
  0x8e   :  { %v804_v0 = vld [vmem:[#allocation8 + $0xe0] sm:$0xff] }
  0x8f   :  { %239 = vmatpush1.bf16.msra.mxu0 %v7297_v16  ;;  %v6407_v1 = vcombine.high %v800_v63, %v804_v0  ;;  %v6406_v2 = vcombine.low %v800_v63, %v804_v0  ;;  %v808_v3 = vld [vmem:[#allocation8 + $0x100] sm:$0xff]  ;;  %v7347_v0 = vld [vmem:[#allocation7 + $0x8] ss:$16 sps:$4 sm:$0xff]  }
  0x90   :  { %678 = vmatprep.subr.bf16.mxu0 %v7301_v17  ;;  %2356 = vmatpush1.bf16.msra.mxu1 %v6390_v58  ;;  %v812_v4 = vld [vmem:[#allocation8 + $0x120] sm:$0xff] }
  0x91   :  { %2357 = vmatprep.subr.bf16.mxu1 %v6399_v61  ;;  %v6415_v5 = vcombine.high %v808_v3, %v812_v4  ;;  %v6414_v6 = vcombine.low %v808_v3, %v812_v4  ;;  %v816_v7 = vld [vmem:[#allocation8 + $0x140] sm:$0xff]  ;;  %v7355_v3 = vld [vmem:[#allocation7 + $0x4c] ss:$16 sps:$4 sm:$0xff]   ;;  %v7353_v4 = vld [vmem:[#allocation7 + $0x48] ss:$16 sps:$4 sm:$0xff]  }
  0x92   :  { %257 = vmatmul.mubr.bf16.vlgmr.msra.gmra.mrb[0].mxu0 %v7298_v18  ;;  %v820_v8 = vld [vmem:[#allocation8 + $0x160] sm:$0xff] }
  0x93   :  { %679 = vmatpush1.bf16.msra.mxu0 %v7299_v19  ;;  %v6423_v9 = vcombine.high %v816_v7, %v820_v8  ;;  %v6422_v10 = vcombine.low %v816_v7, %v820_v8  ;;  %v824_v11 = vld [vmem:[#allocation8 + $0x180] sm:$0xff]  ;;  %v7361_v7 = vld [vmem:[#allocation7 + $0x8c] ss:$16 sps:$4 sm:$0xff]   ;;  %v7359_v8 = vld [vmem:[#allocation7 + $0x88] ss:$16 sps:$4 sm:$0xff]  }
  0x94   :  { %680 = vmatprep.subr.bf16.mxu0 %v7304_v20  ;;  %2358 = vmatpush1.bf16.msra.mxu1 %v6398_v62  ;;  %v828_v12 = vld [vmem:[#allocation8 + $0x1a0] sm:$0xff] }
  0x95   :  { %2359 = vmatprep.subr.bf16.mxu1 %v6407_v1  ;;  %v6431_v13 = vcombine.high %v824_v11, %v828_v12  ;;  %v6430_v14 = vcombine.low %v824_v11, %v828_v12  ;;  %v832_v15 = vld [vmem:[#allocation8 + $0x1c0] sm:$0xff]  ;;  %v7352_v1 = vld [vmem:[#allocation7 + $0x2c] ss:$16 sps:$4 sm:$0xff]   ;;  %v7365_v12 = vld [vmem:[#allocation7 + $0xc8] ss:$16 sps:$4 sm:$0xff]  }
  0x96   :  { %v836_v16 = vld [vmem:[#allocation8 + $0x1e0] sm:$0xff]  ;;  %v7367_v11 = vld [vmem:[#allocation7 + $0xcc] ss:$16 sps:$4 sm:$0xff]  }
  0x97   :  { %681 = vmatpush1.bf16.msra.mxu0 %v7302_v21  ;;  %v6439_v17 = vcombine.high %v832_v15, %v836_v16  ;;  %v6438_v18 = vcombine.low %v832_v15, %v836_v16  ;;  %v840_v19 = vld [vmem:[#allocation8 + $0x200] sm:$0xff]  ;;  %v7373_v15 = vld [vmem:[#allocation7 + $0x10c] ss:$16 sps:$4 sm:$0xff]   ;;  %v7371_v16 = vld [vmem:[#allocation7 + $0x108] ss:$16 sps:$4 sm:$0xff]  }
  0x98   :  { %682 = vmatprep.subr.bf16.mxu0 %v7307_v22  ;;  %2360 = vmatpush1.bf16.msra.mxu1 %v6406_v2  ;;  %v844_v20 = vld [vmem:[#allocation8 + $0x220] sm:$0xff]  ;;  %v7350_v2 = vld [vmem:[#allocation7 + $0x28] ss:$16 sps:$4 sm:$0xff]  }
  0x99   :  { %2361 = vmatprep.subr.bf16.mxu1 %v6415_v5  ;;  %v6447_v21 = vcombine.high %v840_v19, %v844_v20  ;;  %v6446_v22 = vcombine.low %v840_v19, %v844_v20  ;;  %v7358_v5 = vld [vmem:[#allocation7 + $0x6c] ss:$16 sps:$4 sm:$0xff]   ;;  %v7377_v20 = vld [vmem:[#allocation7 + $0x148] ss:$16 sps:$4 sm:$0xff]  }
  0x9a   :  { %v7379_v19 = vld [vmem:[#allocation7 + $0x14c] ss:$16 sps:$4 sm:$0xff]  }
  0x9b   :  { %683 = vmatpush1.bf16.msra.mxu0 %v7305_v23  ;;  %v848_v23 = vld [vmem:[#allocation8 + $0x240] sm:$0xff] }
  0x9c   :  { %684 = vmatprep.subr.bf16.mxu0 %v7310_v24  ;;  %2362 = vmatpush1.bf16.msra.mxu1 %v6414_v6  ;;  %v852_v24 = vld [vmem:[#allocation8 + $0x260] sm:$0xff]  ;;  %v7356_v6 = vld [vmem:[#allocation7 + $0x68] ss:$16 sps:$4 sm:$0xff]  }
  0x9d   :  { %2363 = vmatprep.subr.bf16.mxu1 %v6423_v9  ;;  %v7364_v9 = vld [vmem:[#allocation7 + $0xac] ss:$16 sps:$4 sm:$0xff]  }
  0x9f   :  { %685 = vmatpush1.bf16.msra.mxu0 %v7308_v25  ;;  %v6455_v25 = vcombine.high %v848_v23, %v852_v24 }
  0xa0   :  { %686 = vmatprep.subr.bf16.mxu0 %v7313_v26  ;;  %2364 = vmatpush1.bf16.msra.mxu1 %v6422_v10  ;;  %v6454_v26 = vcombine.low %v848_v23, %v852_v24  ;;  %v7362_v10 = vld [vmem:[#allocation7 + $0xa8] ss:$16 sps:$4 sm:$0xff]   ;;  %v7385_v23 = vld [vmem:[#allocation7 + $0x18c] ss:$16 sps:$4 sm:$0xff]  }
  0xa1   :  { %2365 = vmatprep.subr.bf16.mxu1 %v6431_v13  ;;  %v7370_v13 = vld [vmem:[#allocation7 + $0xec] ss:$16 sps:$4 sm:$0xff]   ;;  %v7383_v24 = vld [vmem:[#allocation7 + $0x188] ss:$16 sps:$4 sm:$0xff]  }
  0xa3   :  { %687 = vmatpush1.bf16.msra.mxu0 %v7311_v27  ;;  %v856_v27 = vld [vmem:[#allocation8 + $0x280] sm:$0xff] }
  0xa4   :  { %688 = vmatprep.subr.bf16.mxu0 %v7316_v28  ;;  %2366 = vmatpush1.bf16.msra.mxu1 %v6430_v14  ;;  %v860_v28 = vld [vmem:[#allocation8 + $0x2a0] sm:$0xff]  ;;  %v7368_v14 = vld [vmem:[#allocation7 + $0xe8] ss:$16 sps:$4 sm:$0xff]  }
  0xa5   :  { %2367 = vmatprep.subr.bf16.mxu1 %v6439_v17  ;;  %v7376_v17 = vld [vmem:[#allocation7 + $0x12c] ss:$16 sps:$4 sm:$0xff]  }
  0xa7   :  { %689 = vmatpush1.bf16.msra.mxu0 %v7314_v29  ;;  %v128_v29 = vlaneseq }
  0xa8   :  { %690 = vmatprep.subr.bf16.mxu0 %v7319_v30  ;;  %2368 = vmatpush1.bf16.msra.mxu1 %v6438_v18  ;;  %v6463_v30 = vcombine.high %v856_v27, %v860_v28  ;;  %v7374_v18 = vld [vmem:[#allocation7 + $0x128] ss:$16 sps:$4 sm:$0xff]  }
  0xa9   :  { %2369 = vmatprep.subr.bf16.mxu1 %v6447_v21  ;;  %v7382_v21 = vld [vmem:[#allocation7 + $0x16c] ss:$16 sps:$4 sm:$0xff]  }
  0xab   :  { %691 = vmatpush1.bf16.msra.mxu0 %v7317_v31  ;;  %v6462_v31 = vcombine.low %v856_v27, %v860_v28  ;;  %v7391_v27 = vld [vmem:[#allocation7 + $0x1cc] ss:$16 sps:$4 sm:$0xff]   ;;  %v7389_v28 = vld [vmem:[#allocation7 + $0x1c8] ss:$16 sps:$4 sm:$0xff]  }
  0xac   :  { %692 = vmatprep.subr.bf16.mxu0 %v7322_v32  ;;  %2370 = vmatpush1.bf16.msra.mxu1 %v6446_v22  ;;  %v864_v32 = vld [vmem:[#allocation8 + $0x2c0] sm:$0xff]  ;;  %v7380_v22 = vld [vmem:[#allocation7 + $0x168] ss:$16 sps:$4 sm:$0xff]  }
  0xad   :  { %2371 = vmatprep.subr.bf16.mxu1 %v6455_v25  ;;  %v7388_v25 = vld [vmem:[#allocation7 + $0x1ac] ss:$16 sps:$4 sm:$0xff]  }
  0xaf   :  { %693 = vmatpush1.bf16.msra.mxu0 %v7320_v33  ;;  %v868_v33 = vld [vmem:[#allocation8 + $0x2e0] sm:$0xff] }
  0xb0   :  { %694 = vmatprep.subr.bf16.mxu0 %v7325_v34  ;;  %2372 = vmatpush1.bf16.msra.mxu1 %v6454_v26  ;;  %v8354_v34 = vshrl.u32 %v128_v29, 7  ;;  %v7386_v26 = vld [vmem:[#allocation7 + $0x1a8] ss:$16 sps:$4 sm:$0xff]   ;;  %v7394_v29 = vld [vmem:[#allocation7 + $0x1ec] ss:$16 sps:$4 sm:$0xff]  }
  0xb1   :  { %2373 = vmatprep.subr.bf16.mxu1 %v6463_v30  ;;  %v777_v30 = vld [vmem:[#allocation8 + $0x8] sm:$0xff] }
  0xb3   :  { %695 = vmatpush1.bf16.msra.mxu0 %v7323_v35  ;;  %v6471_v35 = vcombine.high %v864_v32, %v868_v33 }
  0xb4   :  { %696 = vmatprep.subr.bf16.mxu0 %v7328_v36  ;;  %2374 = vmatpush1.bf16.msra.mxu1 %v6462_v31  ;;  %v6470_v36 = vcombine.low %v864_v32, %v868_v33  ;;  %v781_v31 = vld [vmem:[#allocation8 + $0x28] sm:$0xff] }
  0xb5   :  { %2375 = vmatprep.subr.bf16.mxu1 %v6471_v35  ;;  %v7392_v32 = vld [vmem:[#allocation7 + $0x1e8] ss:$16 sps:$4 sm:$0xff]   ;;  %v6385_v33 = vcombine.high %v777_v30, %v781_v31 }
  0xb6   :  { %v785_v35 = vld [vmem:[#allocation8 + $0x48] sm:$0xff] }
  0xb7   :  { %697 = vmatpush1.bf16.msra.mxu0 %v7326_v37  ;;  %v872_v37 = vld [vmem:[#allocation8 + $0x300] sm:$0xff] }
  0xb8   :  { %698 = vmatprep.subr.bf16.mxu0 %v7331_v38  ;;  %v876_v38 = vld [vmem:[#allocation8 + $0x320] sm:$0xff]  ;;  %2376 = vmatpush1.bf16.msra.mxu1 %v6470_v36  ;;  %v789_v36 = vld [vmem:[#allocation8 + $0x68] sm:$0xff] }
  0xbb   :  { %699 = vmatpush1.bf16.msra.mxu0 %v7329_v39  ;;  %v105_v39 = vld [vmem:[#allocation11] sm:$0x3] }
  0xbc   :  { %700 = vmatprep.subr.bf16.mxu0 %v7334_v40  ;;  %v8357_v40 = vsub.s32 0, %v8354_v34 }
  0xbf   :  { %701 = vmatpush1.bf16.msra.mxu0 %v7332_v41  ;;  %v6479_v41 = vcombine.high %v872_v37, %v876_v38 }
  0xc0   :  { %702 = vmatprep.subr.bf16.mxu0 %v7337_v42  ;;  %v8360_v42 = vsub.s32 1, %v8354_v34 }
  0xc1   :  { %2377 = vmatprep.subr.bf16.mxu1 %v6479_v41  ;;  %v797_v41 = vld [vmem:[#allocation8 + $0xa8] sm:$0xff] }
  0xc3   :  { %703 = vmatpush1.bf16.msra.mxu0 %v7335_v43  ;;  %v6478_v43 = vcombine.low %v872_v37, %v876_v38  ;;  %v6384_v37 = vcombine.low %v777_v30, %v781_v31  ;;  %v6393_v38 = vcombine.high %v785_v35, %v789_v36 }
  0xc4   :  { %704 = vmatprep.subr.bf16.mxu0 %v7340_v44  ;;  %v880_v44 = vld [vmem:[#allocation8 + $0x340] sm:$0xff] }
  0xc5   :  { %2378 = vmatpush1.bf16.msra.mxu1 %v6478_v43  ;;  %v6392_v43 = vcombine.low %v785_v35, %v789_v36 }
  0xc7   :  { %705 = vmatpush1.bf16.msra.mxu0 %v7338_v45  ;;  %v884_v45 = vld [vmem:[#allocation8 + $0x360] sm:$0xff] }
  0xc8   :  { %706 = vmatprep.subr.bf16.mxu0 %v7343_v46  ;;  %v131_v46 = vrot.slane %v105_v39, %v8357_v40 }
  0xcb   :  { %707 = vmatpush1.bf16.msra.mxu0 %v7341_v47  ;;  %v6487_v47 = vcombine.high %v880_v44, %v884_v45 }
  0xcc   :  { %708 = vmatprep.subr.bf16.mxu0 %v7346_v48  ;;  %v135_v48 = vrot.slane %v105_v39, %v8360_v42  ;;  %v793_v39 = vld [vmem:[#allocation8 + $0x88] sm:$0xff] }
  0xcd   :  { %2379 = vmatprep.subr.bf16.mxu1 %v6487_v47  ;;  %v6400_v47 = vcombine.low %v793_v39, %v797_v41 }
  0xcf   :  { %709 = vmatpush1.bf16.msra.mxu0 %v7344_v49  ;;  %v6486_v49 = vcombine.low %v880_v44, %v884_v45  ;;  %v6401_v44 = vcombine.high %v793_v39, %v797_v41  ;;  %v801_v45 = vld [vmem:[#allocation8 + $0xc8] sm:$0xff] }
  0xd0   :  { %721 = vmatprep.subr.bf16.mxu0 %v7349_v50 }
  0xd1   :  { %2380 = vmatpush1.bf16.msra.mxu1 %v6486_v49  ;;  %v809_v49 = vld [vmem:[#allocation8 + $0x108] sm:$0xff] }
 0x165   :  { %v258_v50 = vpop.f32.mrb[0].mxu0 }
 0x166   :  { %v259_v51 = vadd.f32 %v258_v50, %v131_v46  ;;  %v260_v52 = vpop.f32.mrb[1].mxu0  ;;  %v813_v50 = vld [vmem:[#allocation8 + $0x128] sm:$0xff] }
 0x167   :  { %v261_v53 = vadd.f32 %v260_v52, %v135_v48  ;;  %v262_v54 = vpop.f32.mrb[2].mxu0  ;;  %v6417_v52 = vcombine.high %v809_v49, %v813_v50 }
 0x168   :  { %v263_v55 = vadd.f32 %v262_v54, %v131_v46  ;;  %v264_v56 = vpop.f32.mrb[3].mxu0  ;;  %v267_v58 = vmax.f32 %v259_v51, 0.0  ;;  %v805_v46 = vld [vmem:[#allocation8 + $0xe8] sm:$0xff] }
 0x169   :  { %v265_v57 = vadd.f32 %v264_v56, %v135_v48  ;;  %v268_v60 = vmax.f32 %v261_v53, 0.0  ;;  %v6409_v48 = vcombine.high %v801_v45, %v805_v46  ;;  %v6408_v51 = vcombine.low %v801_v45, %v805_v46  ;;  %v817_v53 = vld [vmem:[#allocation8 + $0x148] sm:$0xff] }
 0x16a   :  { %v269_v59 = vmax.f32 %v263_v55, 0.0  ;;  %v821_v54 = vld [vmem:[#allocation8 + $0x168] sm:$0xff]  ;;  %v6416_v55 = vcombine.low %v809_v49, %v813_v50 }
 0x16b   :  { %v270_v61 = vmax.f32 %v265_v57, 0.0  ;;  %v6425_v56 = vcombine.high %v817_v53, %v821_v54  ;;  %v825_v57 = vld [vmem:[#allocation8 + $0x188] sm:$0xff] }
 0x16c   :  { %v8364_v62 = vpack.c.bf16 %v269_v59, %v267_v58  ;;  %v829_v58 = vld [vmem:[#allocation8 + $0x1a8] sm:$0xff]  ;;  %v6424_v59 = vcombine.low %v817_v53, %v821_v54  ;;  %v8384_v53 = vld [vmem:[#allocation11 + $0x2] sm:$0xf] }
 0x16d   :  { %v272_v63 = vpack.c.bf16 %v270_v61, %v268_v60  ;;  %v6433_v60 = vcombine.high %v825_v57, %v829_v58  ;;  %v833_v61 = vld [vmem:[#allocation8 + $0x1c8] sm:$0xff]  ;;  %v341_v54 = vrot.slane %v8384_v53, %v8357_v40 }
 0x16f   :  { %710 = vmatprep.mubr.bf16.mxu0 %v272_v63 }
 0x170   :  { %711 = vmatmul.mubr.bf16.vlgmr.msra.gmra.mrb[4].mxu0 %v8364_v62 }
 0x171   :  { %722 = vmatpush1.bf16.msra.mxu0 %v7347_v0  ;;  %753 = vmatprep.mubr.bf16.mxu0 %v272_v63  ;;  %v888_v63 = vld [vmem:[#allocation8 + $0x380] sm:$0xff] }
 0x172   :  { %723 = vmatprep.subr.bf16.mxu0 %v7352_v1  ;;  %v892_v0 = vld [vmem:[#allocation8 + $0x3a0] sm:$0xff] }
 0x173   :  { %v6495_v1 = vcombine.high %v888_v63, %v892_v0 }
 0x175   :  { %724 = vmatpush1.bf16.msra.mxu0 %v7350_v2  ;;  %v6432_v2 = vcombine.low %v825_v57, %v829_v58  ;;  %2381 = vmatprep.subr.bf16.mxu1 %v6495_v1 }
 0x176   :  { %725 = vmatprep.subr.bf16.mxu0 %v7355_v3  ;;  %v6494_v3 = vcombine.low %v888_v63, %v892_v0 }
 0x178   :  { %2382 = vmatpush1.bf16.msra.mxu1 %v6494_v3 }
 0x179   :  { %726 = vmatpush1.bf16.msra.mxu0 %v7353_v4 }
 0x17a   :  { %727 = vmatprep.subr.bf16.mxu0 %v7358_v5  ;;  %v841_v5 = vld [vmem:[#allocation8 + $0x208] sm:$0xff] }
 0x17d   :  { %728 = vmatpush1.bf16.msra.mxu0 %v7356_v6  ;;  %v845_v6 = vld [vmem:[#allocation8 + $0x228] sm:$0xff] }
 0x17e   :  { %729 = vmatprep.subr.bf16.mxu0 %v7361_v7  ;;  %v896_v7 = vld [vmem:[#allocation8 + $0x3c0] sm:$0xff] }
 0x181   :  { %730 = vmatpush1.bf16.msra.mxu0 %v7359_v8  ;;  %v900_v8 = vld [vmem:[#allocation8 + $0x3e0] sm:$0xff] }
 0x182   :  { %731 = vmatprep.subr.bf16.mxu0 %v7364_v9  ;;  %v6503_v9 = vcombine.high %v896_v7, %v900_v8 }
 0x184   :  { %2383 = vmatprep.subr.bf16.mxu1 %v6503_v9 }
 0x185   :  { %732 = vmatpush1.bf16.msra.mxu0 %v7362_v10 }
 0x186   :  { %733 = vmatprep.subr.bf16.mxu0 %v7367_v11  ;;  %v6502_v11 = vcombine.low %v896_v7, %v900_v8  ;;  %v917_v7 = vld [vmem:[#allocation8 + $0x468] sm:$0xff] }
 0x188   :  { %2384 = vmatpush1.bf16.msra.mxu1 %v6502_v11 }
 0x189   :  { %734 = vmatpush1.bf16.msra.mxu0 %v7365_v12  ;;  %v6449_v12 = vcombine.high %v841_v5, %v845_v6 }
 0x18a   :  { %735 = vmatprep.subr.bf16.mxu0 %v7370_v13  ;;  %v849_v13 = vld [vmem:[#allocation8 + $0x248] sm:$0xff] }
 0x18d   :  { %736 = vmatpush1.bf16.msra.mxu0 %v7368_v14  ;;  %v853_v14 = vld [vmem:[#allocation8 + $0x268] sm:$0xff] }
 0x18e   :  { %737 = vmatprep.subr.bf16.mxu0 %v7373_v15  ;;  %v8368_v15 = vld [vmem:[#allocation8 + $0x400] sm:$0xff] }
 0x191   :  { %738 = vmatpush1.bf16.msra.mxu0 %v7371_v16  ;;  %v8370_v16 = vld [vmem:[#allocation8 + $0x420] sm:$0xff] }
 0x192   :  { %739 = vmatprep.subr.bf16.mxu0 %v7376_v17  ;;  %v8372_v17 = vld [vmem:[#allocation8 + $0x408] sm:$0xff] }
 0x195   :  { %740 = vmatpush1.bf16.msra.mxu0 %v7374_v18  ;;  %v6511_v18 = vcombine.high %v8368_v15, %v8370_v16 }
 0x196   :  { %741 = vmatprep.subr.bf16.mxu0 %v7379_v19  ;;  %v8376_v19 = vld [vmem:[#allocation8 + $0x428] sm:$0xff] }
 0x197   :  { %2396 = vmatprep.subr.bf16.mxu1 %v6511_v18  ;;  %v925_v18 = vld [vmem:[#allocation8 + $0x4a8] sm:$0xff] }
 0x199   :  { %742 = vmatpush1.bf16.msra.mxu0 %v7377_v20  ;;  %v6448_v20 = vcombine.low %v841_v5, %v845_v6  ;;  %v916_v5 = vld [vmem:[#allocation8 + $0x460] sm:$0xff]  ;;  %v913_v6 = vld [vmem:[#allocation8 + $0x448] sm:$0xff] }
 0x19a   :  { %743 = vmatprep.subr.bf16.mxu0 %v7382_v21  ;;  %v6510_v21 = vcombine.low %v8368_v15, %v8370_v16  ;;  %v6521_v11 = vcombine.high %v913_v6, %v917_v7 }
 0x19d   :  { %744 = vmatpush1.bf16.msra.mxu0 %v7380_v22  ;;  %v6512_v22 = vcombine.low %v8372_v17, %v8376_v19 }
 0x19e   :  { %745 = vmatprep.subr.bf16.mxu0 %v7385_v23  ;;  %v6457_v23 = vcombine.high %v849_v13, %v853_v14 }
 0x1a1   :  { %746 = vmatpush1.bf16.msra.mxu0 %v7383_v24  ;;  %v857_v24 = vld [vmem:[#allocation8 + $0x288] sm:$0xff] }
 0x1a2   :  { %747 = vmatprep.subr.bf16.mxu0 %v7388_v25  ;;  %v861_v25 = vld [vmem:[#allocation8 + $0x2a8] sm:$0xff] }
 0x1a3   :  { %v6464_v30 = vcombine.low %v857_v24, %v861_v25 }
 0x1a5   :  { %748 = vmatpush1.bf16.msra.mxu0 %v7386_v26  ;;  %v6456_v26 = vcombine.low %v849_v13, %v853_v14  ;;  %v924_v13 = vld [vmem:[#allocation8 + $0x4a0] sm:$0xff]  ;;  %v921_v14 = vld [vmem:[#allocation8 + $0x488] sm:$0xff] }
 0x1a6   :  { %749 = vmatprep.subr.bf16.mxu0 %v7391_v27  ;;  %v6465_v27 = vcombine.high %v857_v24, %v861_v25  ;;  %v6529_v25 = vcombine.high %v921_v14, %v925_v18 }
 0x1a9   :  { %750 = vmatpush1.bf16.msra.mxu0 %v7389_v28  ;;  %v865_v28 = vld [vmem:[#allocation8 + $0x2c8] sm:$0xff] }
 0x1aa   :  { %751 = vmatprep.subr.bf16.mxu0 %v7394_v29  ;;  %v869_v29 = vld [vmem:[#allocation8 + $0x2e8] sm:$0xff] }
 0x1ab   :  { %v6473_v31 = vcombine.high %v865_v28, %v869_v29  ;;  %v6472_v35 = vcombine.low %v865_v28, %v869_v29  ;;  %v929_v28 = vld [vmem:[#allocation8 + $0x4c8] sm:$0xff] }
 0x1ac   :  { %v933_v29 = vld [vmem:[#allocation8 + $0x4e8] sm:$0xff] }
 0x1ad   :  { %752 = vmatpush1.bf16.msra.mxu0 %v7392_v32  ;;  %v873_v32 = vld [vmem:[#allocation8 + $0x308] sm:$0xff]  ;;  %v6537_v16 = vcombine.high %v929_v28, %v933_v29 }
 0x1ae   :  { %2439 = vmatprep.subr.bf16.mxu0 %v6385_v33  ;;  %v877_v33 = vld [vmem:[#allocation8 + $0x328] sm:$0xff] }
 0x1af   :  { %v6481_v36 = vcombine.high %v873_v32, %v877_v33  ;;  %v6480_v39 = vcombine.low %v873_v32, %v877_v33  ;;  %v6536_v33 = vcombine.low %v929_v28, %v933_v29 }
 0x1b0   :  { %754 = vmatmul.mubr.bf16.vlgmr.msra.gmra.mrb[8].mxu0 %v8364_v62  ;;  %v837_v62 = vld [vmem:[#allocation8 + $0x1e8] sm:$0xff] }
 0x1b1   :  { %2440 = vmatpush1.bf16.msra.mxu0 %v6384_v37  ;;  %v6441_v4 = vcombine.high %v833_v61, %v837_v62  ;;  %v6440_v10 = vcombine.low %v833_v61, %v837_v62  ;;  %v881_v37 = vld [vmem:[#allocation8 + $0x348] sm:$0xff] }
 0x1b2   :  { %2441 = vmatprep.subr.bf16.mxu0 %v6393_v38  ;;  %v885_v38 = vld [vmem:[#allocation8 + $0x368] sm:$0xff] }
 0x1b3   :  { %v6489_v41 = vcombine.high %v881_v37, %v885_v38  ;;  %v6488_v45 = vcombine.low %v881_v37, %v885_v38  ;;  %v944_v37 = vld [vmem:[#allocation8 + $0x540] sm:$0xff] }
 0x1b4   :  { %v948_v38 = vld [vmem:[#allocation8 + $0x560] sm:$0xff] }
 0x1b5   :  { %2442 = vmatpush1.bf16.msra.mxu0 %v6392_v43  ;;  %v889_v43 = vld [vmem:[#allocation8 + $0x388] sm:$0xff] }
 0x1b6   :  { %2443 = vmatprep.subr.bf16.mxu0 %v6401_v44  ;;  %v893_v44 = vld [vmem:[#allocation8 + $0x3a8] sm:$0xff] }
 0x1b7   :  { %v6497_v46 = vcombine.high %v889_v43, %v893_v44  ;;  %v6496_v49 = vcombine.low %v889_v43, %v893_v44 }
 0x1b9   :  { %2444 = vmatpush1.bf16.msra.mxu0 %v6400_v47  ;;  %v897_v47 = vld [vmem:[#allocation8 + $0x3c8] sm:$0xff] }
 0x1ba   :  { %2445 = vmatprep.subr.bf16.mxu0 %v6409_v48  ;;  %v901_v48 = vld [vmem:[#allocation8 + $0x3e8] sm:$0xff] }
 0x1bb   :  { %v6505_v50 = vcombine.high %v897_v47, %v901_v48 }
 0x1bd   :  { %2446 = vmatpush1.bf16.msra.mxu0 %v6408_v51  ;;  %v6504_v51 = vcombine.low %v897_v47, %v901_v48  ;;  %v952_v47 = vld [vmem:[#allocation8 + $0x580] sm:$0xff] }
 0x1be   :  { %2447 = vmatprep.subr.bf16.mxu0 %v6417_v52  ;;  %v6513_v52 = vcombine.high %v8372_v17, %v8376_v19  ;;  %v936_v17 = vld [vmem:[#allocation8 + $0x500] sm:$0xff] }
 0x1bf   :  { %v940_v19 = vld [vmem:[#allocation8 + $0x520] sm:$0xff] }
 0x1c0   :  { %v6542_v43 = vcombine.low %v936_v17, %v940_v19  ;;  %v956_v48 = vld [vmem:[#allocation8 + $0x5a0] sm:$0xff] }
 0x1c1   :  { %2448 = vmatpush1.bf16.msra.mxu0 %v6416_v55  ;;  %v345_v55 = vrot.slane %v8384_v53, %v8360_v42 }
 0x1c2   :  { %2449 = vmatprep.subr.bf16.mxu0 %v6425_v56 }
 0x1c5   :  { %2450 = vmatpush1.bf16.msra.mxu0 %v6424_v59 }
 0x1c6   :  { %2451 = vmatprep.subr.bf16.mxu0 %v6433_v60 }
 0x1c9   :  { %2452 = vmatpush1.bf16.msra.mxu0 %v6432_v2  ;;  %v912_v2 = vld [vmem:[#allocation8 + $0x440] sm:$0xff] }
 0x1ca   :  { %2453 = vmatprep.subr.bf16.mxu0 %v6441_v4 }
 0x1cd   :  { %2454 = vmatpush1.bf16.msra.mxu0 %v6440_v10  ;;  %v6519_v10 = vcombine.high %v912_v2, %v916_v5 }
 0x1ce   :  { %2455 = vmatprep.subr.bf16.mxu0 %v6449_v12  ;;  %v920_v12 = vld [vmem:[#allocation8 + $0x480] sm:$0xff] }
 0x1cf   :  { %v6527_v24 = vcombine.high %v920_v12, %v924_v13 }
 0x1d1   :  { %2456 = vmatpush1.bf16.msra.mxu0 %v6448_v20  ;;  %v6518_v20 = vcombine.low %v912_v2, %v916_v5  ;;  %v969_v2 = vld [vmem:[#allocation8 + $0x608] sm:$0xff] }
 0x1d2   :  { %2457 = vmatprep.subr.bf16.mxu0 %v6457_v23  ;;  %v6520_v23 = vcombine.low %v913_v6, %v917_v7 }
 0x1d5   :  { %2458 = vmatpush1.bf16.msra.mxu0 %v6456_v26  ;;  %v928_v26 = vld [vmem:[#allocation8 + $0x4c0] sm:$0xff] }
 0x1d6   :  { %2459 = vmatprep.subr.bf16.mxu0 %v6465_v27  ;;  %v932_v27 = vld [vmem:[#allocation8 + $0x4e0] sm:$0xff] }
 0x1d7   :  { %v6535_v15 = vcombine.high %v928_v26, %v932_v27  ;;  %v6534_v32 = vcombine.low %v928_v26, %v932_v27  ;;  %v985_v26 = vld [vmem:[#allocation8 + $0x688] sm:$0xff] }
 0x1d8   :  { %v989_v27 = vld [vmem:[#allocation8 + $0x6a8] sm:$0xff] }
 0x1d9   :  { %2460 = vmatpush1.bf16.msra.mxu0 %v6464_v30  ;;  %v6526_v30 = vcombine.low %v920_v12, %v924_v13  ;;  %v977_v12 = vld [vmem:[#allocation8 + $0x648] sm:$0xff] }
 0x1da   :  { %2461 = vmatprep.subr.bf16.mxu0 %v6473_v31  ;;  %v6528_v31 = vcombine.low %v921_v14, %v925_v18  ;;  %v981_v13 = vld [vmem:[#allocation8 + $0x668] sm:$0xff] }
 0x1db   :  { %v6584_v29 = vcombine.low %v977_v12, %v981_v13 }
 0x1dd   :  { %2462 = vmatpush1.bf16.msra.mxu0 %v6472_v35  ;;  %v6543_v35 = vcombine.high %v936_v17, %v940_v19  ;;  %v993_v17 = vld [vmem:[#allocation8 + $0x6c8] sm:$0xff] }
 0x1de   :  { %2463 = vmatprep.subr.bf16.mxu0 %v6481_v36  ;;  %v997_v19 = vld [vmem:[#allocation8 + $0x6e8] sm:$0xff] }
 0x1e1   :  { %2464 = vmatpush1.bf16.msra.mxu0 %v6480_v39  ;;  %v945_v39 = vld [vmem:[#allocation8 + $0x548] sm:$0xff] }
 0x1e2   :  { %2465 = vmatprep.subr.bf16.mxu0 %v6489_v41  ;;  %v949_v41 = vld [vmem:[#allocation8 + $0x568] sm:$0xff] }
 0x1e5   :  { %2466 = vmatpush1.bf16.msra.mxu0 %v6488_v45  ;;  %v6551_v45 = vcombine.high %v944_v37, %v948_v38 }
 0x1e6   :  { %2467 = vmatprep.subr.bf16.mxu0 %v6497_v46  ;;  %v6553_v46 = vcombine.high %v945_v39, %v949_v41 }
 0x1e9   :  { %2468 = vmatpush1.bf16.msra.mxu0 %v6496_v49  ;;  %v953_v49 = vld [vmem:[#allocation8 + $0x588] sm:$0xff] }
 0x1ea   :  { %2469 = vmatprep.subr.bf16.mxu0 %v6505_v50  ;;  %v957_v50 = vld [vmem:[#allocation8 + $0x5a8] sm:$0xff] }
 0x1ed   :  { %2470 = vmatpush1.bf16.msra.mxu0 %v6504_v51  ;;  %v6550_v51 = vcombine.low %v944_v37, %v948_v38  ;;  %v1001_v37 = vld [vmem:[#allocation8 + $0x708] sm:$0xff] }
 0x1ee   :  { %2482 = vmatprep.subr.bf16.mxu0 %v6513_v52  ;;  %v6552_v52 = vcombine.low %v945_v39, %v949_v41  ;;  %v1005_v38 = vld [vmem:[#allocation8 + $0x728] sm:$0xff]  ;;  %v6600_v41 = vcombine.low %v993_v17, %v997_v19 }
 0x243   :  { %v712_v56 = vpop.f32.mrb[4].mxu0 }
 0x244   :  { %v713_v57 = vadd.f32 %v712_v56, %v341_v54  ;;  %v714_v58 = vpop.f32.mrb[5].mxu0  ;;  %v960_v56 = vld [vmem:[#allocation8 + $0x5c0] sm:$0xff] }
 0x245   :  { %v715_v59 = vadd.f32 %v714_v58, %v345_v55  ;;  %v716_v60 = vpop.f32.mrb[6].mxu0  ;;  %v961_v58 = vld [vmem:[#allocation8 + $0x5c8] sm:$0xff] }
 0x246   :  { %v717_v61 = vadd.f32 %v716_v60, %v341_v54  ;;  %v718_v62 = vpop.f32.mrb[7].mxu0  ;;  %v764_v0 = vmax.f32 %v713_v57, 0.0  ;;  %v6559_v54 = vcombine.high %v952_v47, %v956_v48  ;;  %v964_v57 = vld [vmem:[#allocation8 + $0x5e0] sm:$0xff]  ;;  %v6558_v60 = vcombine.low %v952_v47, %v956_v48  ;;  %v1009_v47 = vld [vmem:[#allocation8 + $0x748] sm:$0xff] }
 0x247   :  { %v719_v63 = vadd.f32 %v718_v62, %v345_v55  ;;  %v765_v3 = vmax.f32 %v715_v59, 0.0  ;;  %v6561_v55 = vcombine.high %v953_v49, %v957_v50  ;;  %v965_v59 = vld [vmem:[#allocation8 + $0x5e8] sm:$0xff]  ;;  %v6567_v62 = vcombine.high %v960_v56, %v964_v57 }
 0x248   :  { %v768_v1 = vmax.f32 %v717_v61, 0.0  ;;  %v6560_v61 = vcombine.low %v953_v49, %v957_v50  ;;  %v6568_v5 = vcombine.low %v961_v58, %v965_v59  ;;  %v1013_v48 = vld [vmem:[#allocation8 + $0x768] sm:$0xff]  ;;  %v6608_v50 = vcombine.low %v1001_v37, %v1005_v38 }
 0x249   :  { %v769_v4 = vmax.f32 %v719_v63, 0.0  ;;  %v6569_v63 = vcombine.high %v961_v58, %v965_v59  ;;  %v1017_v58 = vld [vmem:[#allocation8 + $0x788] sm:$0xff] }
 0x24a   :  { %v8390_v8 = vpack.c.bf16 %v768_v1, %v764_v0  ;;  %v968_v0 = vld [vmem:[#allocation8 + $0x600] sm:$0xff]  ;;  %v1021_v59 = vld [vmem:[#allocation8 + $0x7a8] sm:$0xff] }
 0x24b   :  { %v8392_v9 = vpack.c.bf16 %v769_v4, %v765_v3  ;;  %v972_v1 = vld [vmem:[#allocation8 + $0x620] sm:$0xff]  ;;  %v973_v3 = vld [vmem:[#allocation8 + $0x628] sm:$0xff]  ;;  %v6566_v4 = vcombine.low %v960_v56, %v964_v57  ;;  %v8408_v56 = vsub.s32 3, %v8354_v34 }
 0x24c   :  { %v6575_v6 = vcombine.high %v968_v0, %v972_v1  ;;  %v6577_v7 = vcombine.high %v969_v2, %v973_v3  ;;  %v6574_v14 = vcombine.low %v968_v0, %v972_v1  ;;  %v6576_v18 = vcombine.low %v969_v2, %v973_v3  ;;  %v1020_v57 = vld [vmem:[#allocation8 + $0x7a0] sm:$0xff] }
 0x24d   :  { %2385 = vmatprep.mubr.bf16.mxu1 %v8392_v9  ;;  %2471 = vmatprep.mubr.bf16.mxu0 %v8392_v9  ;;  %v6625_v0 = vcombine.high %v1017_v58, %v1021_v59  ;;  %v1024_v1 = vld [vmem:[#allocation8 + $0x7c0] sm:$0xff]  ;;  %v353_v2 = vrot.slane %v8384_v53, %v8408_v56 }
 0x24e   :  { %2386 = vmatmul.mubr.bf16.vlgmr.msra.gmra.mrb[0].mxu1 %v8390_v8  ;;  %2472 = vmatmul.mubr.bf16.vlgmr.msra.gmra.mrb[12].mxu0 %v8390_v8  ;;  %v1028_v3 = vld [vmem:[#allocation8 + $0x7e0] sm:$0xff] }
 0x24f   :  { %2397 = vmatpush1.bf16.msra.mxu1 %v6510_v21  ;;  %2483 = vmatpush1.bf16.msra.mxu0 %v6512_v22  ;;  %v937_v21 = vld [vmem:[#allocation8 + $0x508] sm:$0xff] }
 0x250   :  { %2398 = vmatprep.subr.bf16.mxu1 %v6519_v10  ;;  %2484 = vmatprep.subr.bf16.mxu0 %v6521_v11  ;;  %v941_v22 = vld [vmem:[#allocation8 + $0x528] sm:$0xff]  ;;  %v976_v10 = vld [vmem:[#allocation8 + $0x640] sm:$0xff] }
 0x251   :  { %v6545_v36 = vcombine.high %v937_v21, %v941_v22  ;;  %v6544_v44 = vcombine.low %v937_v21, %v941_v22  ;;  %v980_v11 = vld [vmem:[#allocation8 + $0x660] sm:$0xff]  ;;  %v6592_v22 = vcombine.low %v985_v26, %v989_v27 }
 0x252   :  { %v6582_v28 = vcombine.low %v976_v10, %v980_v11 }
 0x253   :  { %2399 = vmatpush1.bf16.msra.mxu1 %v6518_v20  ;;  %2485 = vmatpush1.bf16.msra.mxu0 %v6520_v23  ;;  %v6583_v20 = vcombine.high %v976_v10, %v980_v11  ;;  %v6585_v23 = vcombine.high %v977_v12, %v981_v13  ;;  %v6624_v10 = vcombine.low %v1017_v58, %v1021_v59  ;;  %v807_v58 = vld [vmem:[#allocation8 + $0xf8] sm:$0xff] }
 0x254   :  { %2400 = vmatprep.subr.bf16.mxu1 %v6527_v24  ;;  %2486 = vmatprep.subr.bf16.mxu0 %v6529_v25  ;;  %v984_v24 = vld [vmem:[#allocation8 + $0x680] sm:$0xff]  ;;  %v6631_v13 = vcombine.high %v1024_v1, %v1028_v3 }
 0x255   :  { %v988_v25 = vld [vmem:[#allocation8 + $0x6a0] sm:$0xff] }
 0x256   :  { %v6590_v21 = vcombine.low %v984_v24, %v988_v25 }
 0x257   :  { %2401 = vmatpush1.bf16.msra.mxu1 %v6526_v30  ;;  %2487 = vmatpush1.bf16.msra.mxu0 %v6528_v31  ;;  %v6591_v30 = vcombine.high %v984_v24, %v988_v25  ;;  %v6593_v31 = vcombine.high %v985_v26, %v989_v27  ;;  %v782_v24 = vld [vmem:[#allocation8 + $0x30] sm:$0xff]  ;;  %v779_v25 = vld [vmem:[#allocation8 + $0x18] sm:$0xff] }
 0x258   :  { %2402 = vmatprep.subr.bf16.mxu1 %v6535_v15  ;;  %2488 = vmatprep.subr.bf16.mxu0 %v6537_v16  ;;  %v992_v15 = vld [vmem:[#allocation8 + $0x6c0] sm:$0xff] }
 0x259   :  { %v996_v16 = vld [vmem:[#allocation8 + $0x6e0] sm:$0xff] }
 0x25a   :  { %v6598_v39 = vcombine.low %v992_v15, %v996_v16 }
 0x25b   :  { %2403 = vmatpush1.bf16.msra.mxu1 %v6534_v32  ;;  %2489 = vmatpush1.bf16.msra.mxu0 %v6536_v33  ;;  %v6599_v32 = vcombine.high %v992_v15, %v996_v16  ;;  %v6601_v33 = vcombine.high %v993_v17, %v997_v19 }
 0x25c   :  { %2404 = vmatprep.subr.bf16.mxu1 %v6543_v35  ;;  %2490 = vmatprep.subr.bf16.mxu0 %v6545_v36  ;;  %v1000_v35 = vld [vmem:[#allocation8 + $0x700] sm:$0xff] }
 0x25d   :  { %v1004_v36 = vld [vmem:[#allocation8 + $0x720] sm:$0xff] }
 0x25e   :  { %v6606_v49 = vcombine.low %v1000_v35, %v1004_v36 }
 0x25f   :  { %2405 = vmatpush1.bf16.msra.mxu1 %v6542_v43  ;;  %2491 = vmatpush1.bf16.msra.mxu0 %v6544_v44  ;;  %v6607_v43 = vcombine.high %v1000_v35, %v1004_v36  ;;  %v6609_v44 = vcombine.high %v1001_v37, %v1005_v38  ;;  %v787_v35 = vld [vmem:[#allocation8 + $0x58] sm:$0xff] }
 0x260   :  { %2406 = vmatprep.subr.bf16.mxu1 %v6551_v45  ;;  %2492 = vmatprep.subr.bf16.mxu0 %v6553_v46  ;;  %v1008_v45 = vld [vmem:[#allocation8 + $0x740] sm:$0xff]  ;;  %v791_v36 = vld [vmem:[#allocation8 + $0x78] sm:$0xff] }
 0x261   :  { %v1012_v46 = vld [vmem:[#allocation8 + $0x760] sm:$0xff] }
 0x263   :  { %2407 = vmatpush1.bf16.msra.mxu1 %v6550_v51  ;;  %2493 = vmatpush1.bf16.msra.mxu0 %v6552_v52  ;;  %v6615_v51 = vcombine.high %v1008_v45, %v1012_v46  ;;  %v6617_v52 = vcombine.high %v1009_v47, %v1013_v48 }
 0x264   :  { %2408 = vmatprep.subr.bf16.mxu1 %v6559_v54  ;;  %2494 = vmatprep.subr.bf16.mxu0 %v6561_v55  ;;  %v8405_v54 = vsub.s32 2, %v8354_v34  ;;  %v1016_v55 = vld [vmem:[#allocation8 + $0x780] sm:$0xff] }
 0x267   :  { %2409 = vmatpush1.bf16.msra.mxu1 %v6558_v60  ;;  %2495 = vmatpush1.bf16.msra.mxu0 %v6560_v61  ;;  %v6614_v60 = vcombine.low %v1008_v45, %v1012_v46  ;;  %v6616_v61 = vcombine.low %v1009_v47, %v1013_v48  ;;  %v798_v45 = vld [vmem:[#allocation8 + $0xb0] sm:$0xff]  ;;  %v795_v46 = vld [vmem:[#allocation8 + $0x98] sm:$0xff] }
 0x268   :  { %2410 = vmatprep.subr.bf16.mxu1 %v6567_v62  ;;  %2496 = vmatprep.subr.bf16.mxu0 %v6569_v63  ;;  %v349_v62 = vrot.slane %v8384_v53, %v8405_v54  ;;  %v6623_v63 = vcombine.high %v1016_v55, %v1020_v57  ;;  %v783_v53 = vld [vmem:[#allocation8 + $0x38] sm:$0xff] }
 0x269   :  { %v6389_v17 = vcombine.high %v779_v25, %v783_v53  ;;  %v799_v47 = vld [vmem:[#allocation8 + $0xb8] sm:$0xff] }
 0x26b   :  { %2411 = vmatpush1.bf16.msra.mxu1 %v6566_v4  ;;  %2497 = vmatpush1.bf16.msra.mxu0 %v6568_v5  ;;  %v1025_v4 = vld [vmem:[#allocation8 + $0x7c8] sm:$0xff] }
 0x26c   :  { %2412 = vmatprep.subr.bf16.mxu1 %v6575_v6  ;;  %2498 = vmatprep.subr.bf16.mxu0 %v6577_v7  ;;  %v1029_v5 = vld [vmem:[#allocation8 + $0x7e8] sm:$0xff]  ;;  %v6622_v7 = vcombine.low %v1016_v55, %v1020_v57  ;;  %v806_v55 = vld [vmem:[#allocation8 + $0xf0] sm:$0xff]  ;;  %v803_v57 = vld [vmem:[#allocation8 + $0xd8] sm:$0xff] }
 0x26f   :  { %2413 = vmatpush1.bf16.msra.mxu1 %v6574_v14  ;;  %2499 = vmatpush1.bf16.msra.mxu0 %v6576_v18  ;;  %v6633_v14 = vcombine.high %v1025_v4, %v1029_v5  ;;  %v778_v18 = vld [vmem:[#allocation8 + $0x10] sm:$0xff] }
 0x270   :  { %2414 = vmatprep.subr.bf16.mxu1 %v6583_v20  ;;  %2500 = vmatprep.subr.bf16.mxu0 %v6585_v23  ;;  %v6387_v16 = vcombine.high %v778_v18, %v782_v24  ;;  %v6386_v38 = vcombine.low %v778_v18, %v782_v24  ;;  %v827_v24 = vld [vmem:[#allocation8 + $0x198] sm:$0xff] }
 0x273   :  { %2415 = vmatpush1.bf16.msra.mxu1 %v6582_v28  ;;  %2501 = vmatpush1.bf16.msra.mxu0 %v6584_v29  ;;  %v6630_v29 = vcombine.low %v1024_v1, %v1028_v3  ;;  %v815_v1 = vld [vmem:[#allocation8 + $0x138] sm:$0xff]  ;;  %v6412_v3 = vcombine.low %v803_v57, %v807_v58 }
 0x274   :  { %2416 = vmatprep.subr.bf16.mxu1 %v6591_v30  ;;  %2502 = vmatprep.subr.bf16.mxu0 %v6593_v31  ;;  %v6632_v30 = vcombine.low %v1025_v4, %v1029_v5 }
 0x277   :  { %2417 = vmatpush1.bf16.msra.mxu1 %v6590_v21  ;;  %2503 = vmatpush1.bf16.msra.mxu0 %v6592_v22  ;;  %v786_v22 = vld [vmem:[#allocation8 + $0x50] sm:$0xff] }
 0x278   :  { %2418 = vmatprep.subr.bf16.mxu1 %v6599_v32  ;;  %2504 = vmatprep.subr.bf16.mxu0 %v6601_v33  ;;  %v790_v33 = vld [vmem:[#allocation8 + $0x70] sm:$0xff] }
 0x279   :  { %v6394_v48 = vcombine.low %v786_v22, %v790_v33 }
 0x27b   :  { %2419 = vmatpush1.bf16.msra.mxu1 %v6598_v39  ;;  %2505 = vmatpush1.bf16.msra.mxu0 %v6600_v41  ;;  %v6388_v39 = vcombine.low %v779_v25, %v783_v53  ;;  %v6395_v41 = vcombine.high %v786_v22, %v790_v33  ;;  %v831_v25 = vld [vmem:[#allocation8 + $0x1b8] sm:$0xff]  ;;  %v842_v22 = vld [vmem:[#allocation8 + $0x210] sm:$0xff] }
 0x27c   :  { %2420 = vmatprep.subr.bf16.mxu1 %v6607_v43  ;;  %2506 = vmatprep.subr.bf16.mxu0 %v6609_v44  ;;  %v6397_v43 = vcombine.high %v787_v35, %v791_v36  ;;  %v794_v44 = vld [vmem:[#allocation8 + $0x90] sm:$0xff] }
 0x27d   :  { %v6402_v59 = vcombine.low %v794_v44, %v798_v45  ;;  %v846_v33 = vld [vmem:[#allocation8 + $0x230] sm:$0xff] }
 0x27f   :  { %2421 = vmatpush1.bf16.msra.mxu1 %v6606_v49  ;;  %2507 = vmatpush1.bf16.msra.mxu0 %v6608_v50  ;;  %v6396_v49 = vcombine.low %v787_v35, %v791_v36  ;;  %v6403_v50 = vcombine.high %v794_v44, %v798_v45  ;;  %v843_v35 = vld [vmem:[#allocation8 + $0x218] sm:$0xff]  ;;  %v850_v44 = vld [vmem:[#allocation8 + $0x250] sm:$0xff] }
 0x280   :  { %2422 = vmatprep.subr.bf16.mxu1 %v6615_v51  ;;  %2508 = vmatprep.subr.bf16.mxu0 %v6617_v52  ;;  %v6405_v51 = vcombine.high %v795_v46, %v799_v47  ;;  %v802_v52 = vld [vmem:[#allocation8 + $0xd0] sm:$0xff]  ;;  %v847_v36 = vld [vmem:[#allocation8 + $0x238] sm:$0xff] }
 0x281   :  { %v854_v45 = vld [vmem:[#allocation8 + $0x270] sm:$0xff] }
 0x283   :  { %v755_v6 = vpop.f32.mrb[8].mxu0  ;;  %2423 = vmatpush1.bf16.msra.mxu1 %v6614_v60  ;;  %2509 = vmatpush1.bf16.msra.mxu0 %v6616_v61  ;;  %v6404_v60 = vcombine.low %v795_v46, %v799_v47  ;;  %v6411_v61 = vcombine.high %v802_v52, %v806_v55  ;;  %v851_v46 = vld [vmem:[#allocation8 + $0x258] sm:$0xff] }
 0x284   :  { %v756_v11 = vadd.f32 %v755_v6, %v349_v62  ;;  %v757_v12 = vpop.f32.mrb[9].mxu0  ;;  %2424 = vmatprep.subr.bf16.mxu1 %v6623_v63  ;;  %2510 = vmatprep.subr.bf16.mxu0 %v6625_v0  ;;  %v810_v63 = vld [vmem:[#allocation8 + $0x110] sm:$0xff]  ;;  %v855_v47 = vld [vmem:[#allocation8 + $0x278] sm:$0xff] }
 0x285   :  { %v758_v20 = vadd.f32 %v757_v12, %v353_v2  ;;  %v759_v23 = vpop.f32.mrb[10].mxu0  ;;  %v814_v0 = vld [vmem:[#allocation8 + $0x130] sm:$0xff] }
 0x286   :  { %v760_v26 = vadd.f32 %v759_v23, %v349_v62  ;;  %v761_v27 = vpop.f32.mrb[11].mxu0  ;;  %v766_v31 = vmax.f32 %v756_v11, 0.0  ;;  %v6413_v62 = vcombine.high %v803_v57, %v807_v58  ;;  %v6419_v4 = vcombine.high %v810_v63, %v814_v0  ;;  %v818_v6 = vld [vmem:[#allocation8 + $0x150] sm:$0xff]  ;;  %v823_v11 = vld [vmem:[#allocation8 + $0x178] sm:$0xff] }
 0x287   :  { %v762_v28 = vadd.f32 %v761_v27, %v353_v2  ;;  %2425 = vmatpush1.bf16.msra.mxu1 %v6622_v7  ;;  %2511 = vmatpush1.bf16.msra.mxu0 %v6624_v10  ;;  %v767_v19 = vmax.f32 %v758_v20, 0.0  ;;  %v6410_v2 = vcombine.low %v802_v52, %v806_v55  ;;  %v822_v7 = vld [vmem:[#allocation8 + $0x170] sm:$0xff]  ;;  %v819_v10 = vld [vmem:[#allocation8 + $0x158] sm:$0xff]  ;;  %v6418_v12 = vcombine.low %v810_v63, %v814_v0 }
 0x288   :  { %v770_v15 = vmax.f32 %v760_v26, 0.0  ;;  %2426 = vmatprep.subr.bf16.mxu1 %v6631_v13  ;;  %2512 = vmatprep.subr.bf16.mxu0 %v6633_v14  ;;  %v6427_v14 = vcombine.high %v818_v6, %v822_v7  ;;  %v6429_v18 = vcombine.high %v819_v10, %v823_v11  ;;  %v826_v20 = vld [vmem:[#allocation8 + $0x190] sm:$0xff]  ;;  %v6426_v53 = vcombine.low %v818_v6, %v822_v7  ;;  %v859_v57 = vld [vmem:[#allocation8 + $0x298] sm:$0xff] }
 0x289   :  { %v771_v21 = vmax.f32 %v762_v28, 0.0  ;;  %v830_v23 = vld [vmem:[#allocation8 + $0x1b0] sm:$0xff]  ;;  %v6428_v26 = vcombine.low %v819_v10, %v823_v11  ;;  %v6437_v28 = vcombine.high %v827_v24, %v831_v25  ;;  %v863_v58 = vld [vmem:[#allocation8 + $0x2b8] sm:$0xff] }
 0x28a   :  { %v8414_v32 = vpack.c.bf16 %v770_v15, %v766_v31  ;;  %v6435_v27 = vcombine.high %v826_v20, %v830_v23  ;;  %v835_v31 = vld [vmem:[#allocation8 + $0x1d8] sm:$0xff]  ;;  %v858_v52 = vld [vmem:[#allocation8 + $0x290] sm:$0xff] }
 0x28b   :  { %v8416_v37 = vpack.c.bf16 %v771_v21, %v767_v19  ;;  %2427 = vmatpush1.bf16.msra.mxu1 %v6630_v29  ;;  %2513 = vmatpush1.bf16.msra.mxu0 %v6632_v30  ;;  %v834_v29 = vld [vmem:[#allocation8 + $0x1d0] sm:$0xff]  ;;  %v839_v15 = vld [vmem:[#allocation8 + $0x1f8] sm:$0xff] }
 0x28c   :  { %2525 = vmatprep.subr.bf16.mxu1 %v6387_v16  ;;  %2611 = vmatprep.subr.bf16.mxu0 %v6389_v17  ;;  %v838_v30 = vld [vmem:[#allocation8 + $0x1f0] sm:$0xff]  ;;  %v6434_v16 = vcombine.low %v826_v20, %v830_v23  ;;  %v6436_v17 = vcombine.low %v827_v24, %v831_v25  ;;  %v6445_v21 = vcombine.high %v835_v31, %v839_v15  ;;  %v875_v10 = vld [vmem:[#allocation8 + $0x318] sm:$0xff] }
 0x28d   :  { %2428 = vmatprep.mubr.bf16.mxu1 %v8416_v37  ;;  %2514 = vmatprep.mubr.bf16.mxu0 %v8416_v37  ;;  %v6443_v19 = vcombine.high %v834_v29, %v838_v30  ;;  %v862_v55 = vld [vmem:[#allocation8 + $0x2b0] sm:$0xff]  ;;  %v879_v11 = vld [vmem:[#allocation8 + $0x338] sm:$0xff] }
 0x28e   :  { %2429 = vmatmul.mubr.bf16.vlgmr.msra.gmra.mrb[0].mxu1 %v8414_v32  ;;  %2515 = vmatmul.mubr.bf16.vlgmr.msra.gmra.mrb[12].mxu0 %v8414_v32  ;;  %v866_v63 = vld [vmem:[#allocation8 + $0x2d0] sm:$0xff]  ;;  %v883_v24 = vld [vmem:[#allocation8 + $0x358] sm:$0xff] }
 0x28f   :  { %2526 = vmatpush1.bf16.msra.mxu1 %v6386_v38  ;;  %2557 = vmatprep.mubr.bf16.mxu1 %v8392_v9  ;;  %v6442_v38 = vcombine.low %v834_v29, %v838_v30  ;;  %v870_v0 = vld [vmem:[#allocation8 + $0x2f0] sm:$0xff]  ;;  %v887_v25 = vld [vmem:[#allocation8 + $0x378] sm:$0xff] }
 0x290   :  { %2612 = vmatpush1.bf16.msra.mxu0 %v6388_v39  ;;  %2643 = vmatprep.mubr.bf16.mxu0 %v8392_v9  ;;  %v811_v9 = vld [vmem:[#allocation8 + $0x118] sm:$0xff]  ;;  %v6444_v39 = vcombine.low %v835_v31, %v839_v15  ;;  %v874_v6 = vld [vmem:[#allocation8 + $0x310] sm:$0xff] }
 0x291   :  { %2527 = vmatprep.subr.bf16.mxu1 %v6395_v41  ;;  %2613 = vmatprep.subr.bf16.mxu0 %v6397_v43  ;;  %v6421_v5 = vcombine.high %v811_v9, %v815_v1  ;;  %v6420_v13 = vcombine.low %v811_v9, %v815_v1  ;;  %v6451_v41 = vcombine.high %v842_v22, %v846_v33  ;;  %v867_v9 = vld [vmem:[#allocation8 + $0x2d8] sm:$0xff]  ;;  %v878_v7 = vld [vmem:[#allocation8 + $0x330] sm:$0xff] }
 0x292   :  { %v6453_v43 = vcombine.high %v843_v35, %v847_v36  ;;  %v871_v1 = vld [vmem:[#allocation8 + $0x2f8] sm:$0xff]  ;;  %v882_v20 = vld [vmem:[#allocation8 + $0x350] sm:$0xff] }
 0x293   :  { %2528 = vmatpush1.bf16.msra.mxu1 %v6394_v48  ;;  %v6450_v48 = vcombine.low %v842_v22, %v846_v33  ;;  %v886_v23 = vld [vmem:[#allocation8 + $0x370] sm:$0xff]  ;;  %v891_v31 = vld [vmem:[#allocation8 + $0x398] sm:$0xff] }
 0x294   :  { %2614 = vmatpush1.bf16.msra.mxu0 %v6396_v49  ;;  %2529 = vmatprep.subr.bf16.mxu1 %v6403_v50  ;;  %v6452_v49 = vcombine.low %v843_v35, %v847_v36  ;;  %v6459_v50 = vcombine.high %v850_v44, %v854_v45  ;;  %v890_v29 = vld [vmem:[#allocation8 + $0x390] sm:$0xff]  ;;  %v895_v15 = vld [vmem:[#allocation8 + $0x3b8] sm:$0xff] }
 0x295   :  { %2615 = vmatprep.subr.bf16.mxu0 %v6405_v51  ;;  %v6461_v51 = vcombine.high %v851_v46, %v855_v47  ;;  %v894_v30 = vld [vmem:[#allocation8 + $0x3b0] sm:$0xff]  ;;  %v899_v35 = vld [vmem:[#allocation8 + $0x3d8] sm:$0xff] }
 0x296   :  { %v898_v22 = vld [vmem:[#allocation8 + $0x3d0] sm:$0xff]  ;;  %v903_v36 = vld [vmem:[#allocation8 + $0x3f8] sm:$0xff] }
 0x297   :  { %2530 = vmatpush1.bf16.msra.mxu1 %v6402_v59  ;;  %v6458_v59 = vcombine.low %v850_v44, %v854_v45  ;;  %v902_v33 = vld [vmem:[#allocation8 + $0x3f0] sm:$0xff] }
 0x298   :  { %2616 = vmatpush1.bf16.msra.mxu0 %v6404_v60  ;;  %2531 = vmatprep.subr.bf16.mxu1 %v6411_v61  ;;  %v6460_v60 = vcombine.low %v851_v46, %v855_v47  ;;  %v6467_v61 = vcombine.high %v858_v52, %v862_v55  ;;  %v906_v44 = vld [vmem:[#allocation8 + $0x410] sm:$0xff]  ;;  %v907_v46 = vld [vmem:[#allocation8 + $0x418] sm:$0xff] }
 0x299   :  { %2617 = vmatprep.subr.bf16.mxu0 %v6413_v62  ;;  %v6469_v62 = vcombine.high %v859_v57, %v863_v58  ;;  %v910_v45 = vld [vmem:[#allocation8 + $0x430] sm:$0xff]  ;;  %v911_v47 = vld [vmem:[#allocation8 + $0x438] sm:$0xff] }
 0x29b   :  { %2532 = vmatpush1.bf16.msra.mxu1 %v6410_v2  ;;  %v6466_v2 = vcombine.low %v858_v52, %v862_v55  ;;  %v914_v52 = vld [vmem:[#allocation8 + $0x450] sm:$0xff] }
 0x29c   :  { %2618 = vmatpush1.bf16.msra.mxu0 %v6412_v3  ;;  %2533 = vmatprep.subr.bf16.mxu1 %v6419_v4  ;;  %v6468_v3 = vcombine.low %v859_v57, %v863_v58  ;;  %v6475_v4 = vcombine.high %v866_v63, %v870_v0  ;;  %v918_v55 = vld [vmem:[#allocation8 + $0x470] sm:$0xff]  ;;  %v6514_v57 = vcombine.low %v906_v44, %v910_v45  ;;  %v915_v58 = vld [vmem:[#allocation8 + $0x458] sm:$0xff] }
 0x29d   :  { %2619 = vmatprep.subr.bf16.mxu0 %v6421_v5  ;;  %v6477_v5 = vcombine.high %v867_v9, %v871_v1 }
 0x29f   :  { %2534 = vmatpush1.bf16.msra.mxu1 %v6418_v12  ;;  %v6474_v12 = vcombine.low %v866_v63, %v870_v0  ;;  %v926_v63 = vld [vmem:[#allocation8 + $0x4b0] sm:$0xff] }
 0x2a0   :  { %2620 = vmatpush1.bf16.msra.mxu0 %v6420_v13  ;;  %2535 = vmatprep.subr.bf16.mxu1 %v6427_v14  ;;  %v6476_v13 = vcombine.low %v867_v9, %v871_v1  ;;  %v6483_v14 = vcombine.high %v874_v6, %v878_v7  ;;  %v923_v9 = vld [vmem:[#allocation8 + $0x498] sm:$0xff] }
 0x2a1   :  { %2621 = vmatprep.subr.bf16.mxu0 %v6429_v18  ;;  %v6485_v18 = vcombine.high %v875_v10, %v879_v11  ;;  %v927_v1 = vld [vmem:[#allocation8 + $0x4b8] sm:$0xff] }
 0x2a3   :  { %2536 = vmatpush1.bf16.msra.mxu1 %v6426_v53  ;;  %v6482_v53 = vcombine.low %v874_v6, %v878_v7  ;;  %v930_v6 = vld [vmem:[#allocation8 + $0x4d0] sm:$0xff] }
 0x2a4   :  { %2622 = vmatpush1.bf16.msra.mxu0 %v6428_v26  ;;  %2537 = vmatprep.subr.bf16.mxu1 %v6435_v27  ;;  %v6484_v26 = vcombine.low %v875_v10, %v879_v11  ;;  %v6491_v27 = vcombine.high %v882_v20, %v886_v23  ;;  %v934_v7 = vld [vmem:[#allocation8 + $0x4f0] sm:$0xff]  ;;  %v931_v10 = vld [vmem:[#allocation8 + $0x4d8] sm:$0xff] }
 0x2a5   :  { %2623 = vmatprep.subr.bf16.mxu0 %v6437_v28  ;;  %v6493_v28 = vcombine.high %v883_v24, %v887_v25  ;;  %v935_v11 = vld [vmem:[#allocation8 + $0x4f8] sm:$0xff] }
 0x2a7   :  { %2538 = vmatpush1.bf16.msra.mxu1 %v6434_v16  ;;  %v6490_v16 = vcombine.low %v882_v20, %v886_v23  ;;  %v942_v20 = vld [vmem:[#allocation8 + $0x530] sm:$0xff]  ;;  %v939_v23 = vld [vmem:[#allocation8 + $0x518] sm:$0xff] }
 0x2a8   :  { %2624 = vmatpush1.bf16.msra.mxu0 %v6436_v17  ;;  %2539 = vmatprep.subr.bf16.mxu1 %v6443_v19  ;;  %v6492_v17 = vcombine.low %v883_v24, %v887_v25  ;;  %v6499_v19 = vcombine.high %v890_v29, %v894_v30  ;;  %v943_v24 = vld [vmem:[#allocation8 + $0x538] sm:$0xff]  ;;  %v6540_v25 = vcombine.low %v931_v10, %v935_v11 }
 0x2a9   :  { %2625 = vmatprep.subr.bf16.mxu0 %v6445_v21  ;;  %v6501_v21 = vcombine.high %v891_v31, %v895_v15 }
 0x2ab   :  { %2540 = vmatpush1.bf16.msra.mxu1 %v6442_v38  ;;  %v6498_v38 = vcombine.low %v890_v29, %v894_v30  ;;  %v947_v29 = vld [vmem:[#allocation8 + $0x558] sm:$0xff] }
 0x2ac   :  { %2626 = vmatpush1.bf16.msra.mxu0 %v6444_v39  ;;  %2541 = vmatprep.subr.bf16.mxu1 %v6451_v41  ;;  %v6500_v39 = vcombine.low %v891_v31, %v895_v15  ;;  %v6507_v41 = vcombine.high %v898_v22, %v902_v33  ;;  %v951_v30 = vld [vmem:[#allocation8 + $0x578] sm:$0xff]  ;;  %v6548_v15 = vcombine.low %v939_v23, %v943_v24 }
 0x2ad   :  { %2627 = vmatprep.subr.bf16.mxu0 %v6453_v43  ;;  %v6509_v43 = vcombine.high %v899_v35, %v903_v36 }
 0x2af   :  { %2542 = vmatpush1.bf16.msra.mxu1 %v6450_v48  ;;  %v6506_v48 = vcombine.low %v898_v22, %v902_v33  ;;  %v955_v22 = vld [vmem:[#allocation8 + $0x598] sm:$0xff] }
 0x2b0   :  { %2628 = vmatpush1.bf16.msra.mxu0 %v6452_v49  ;;  %2543 = vmatprep.subr.bf16.mxu1 %v6459_v50  ;;  %v6508_v49 = vcombine.low %v899_v35, %v903_v36  ;;  %v6515_v50 = vcombine.high %v906_v44, %v910_v45  ;;  %v959_v33 = vld [vmem:[#allocation8 + $0x5b8] sm:$0xff]  ;;  %v6556_v36 = vcombine.low %v947_v29, %v951_v30 }
 0x2b1   :  { %2629 = vmatprep.subr.bf16.mxu0 %v6461_v51  ;;  %v6517_v51 = vcombine.high %v907_v46, %v911_v47  ;;  %v963_v44 = vld [vmem:[#allocation8 + $0x5d8] sm:$0xff] }
 0x2b2   :  { %v967_v45 = vld [vmem:[#allocation8 + $0x5f8] sm:$0xff] }
 0x2b3   :  { %2544 = vmatpush1.bf16.msra.mxu1 %v6458_v59  ;;  %v919_v59 = vld [vmem:[#allocation8 + $0x478] sm:$0xff] }
 0x2b4   :  { %2630 = vmatpush1.bf16.msra.mxu0 %v6460_v60  ;;  %2545 = vmatprep.subr.bf16.mxu1 %v6467_v61  ;;  %v6516_v60 = vcombine.low %v907_v46, %v911_v47  ;;  %v6523_v61 = vcombine.high %v914_v52, %v918_v55  ;;  %v6525_v0 = vcombine.high %v915_v58, %v919_v59 }
 0x2b5   :  { %2631 = vmatprep.subr.bf16.mxu0 %v6469_v62  ;;  %v922_v62 = vld [vmem:[#allocation8 + $0x490] sm:$0xff]  ;;  %v6564_v47 = vcombine.low %v955_v22, %v959_v33 }
 0x2b7   :  { %2546 = vmatpush1.bf16.msra.mxu1 %v6466_v2  ;;  %v6522_v2 = vcombine.low %v914_v52, %v918_v55  ;;  %v971_v52 = vld [vmem:[#allocation8 + $0x618] sm:$0xff] }
 0x2b8   :  { %2632 = vmatpush1.bf16.msra.mxu0 %v6468_v3  ;;  %2547 = vmatprep.subr.bf16.mxu1 %v6475_v4  ;;  %v6524_v3 = vcombine.low %v915_v58, %v919_v59  ;;  %v6531_v4 = vcombine.high %v922_v62, %v926_v63  ;;  %v975_v55 = vld [vmem:[#allocation8 + $0x638] sm:$0xff]  ;;  %v6572_v58 = vcombine.low %v963_v44, %v967_v45 }
 0x2b9   :  { %2633 = vmatprep.subr.bf16.mxu0 %v6477_v5  ;;  %v6533_v5 = vcombine.high %v923_v9, %v927_v1 }
 0x2bb   :  { %2548 = vmatpush1.bf16.msra.mxu1 %v6474_v12  ;;  %v6530_v12 = vcombine.low %v922_v62, %v926_v63  ;;  %v982_v62 = vld [vmem:[#allocation8 + $0x670] sm:$0xff]  ;;  %v979_v63 = vld [vmem:[#allocation8 + $0x658] sm:$0xff] }
 0x2bc   :  { %2634 = vmatpush1.bf16.msra.mxu0 %v6476_v13  ;;  %2549 = vmatprep.subr.bf16.mxu1 %v6483_v14  ;;  %v6539_v13 = vcombine.high %v930_v6, %v934_v7  ;;  %v6541_v14 = vcombine.high %v931_v10, %v935_v11 }
 0x2bd   :  { %2635 = vmatprep.subr.bf16.mxu0 %v6485_v18  ;;  %v938_v18 = vld [vmem:[#allocation8 + $0x510] sm:$0xff] }
 0x2be   :  { %v6546_v31 = vcombine.low %v938_v18, %v942_v20 }
 0x2bf   :  { %2550 = vmatpush1.bf16.msra.mxu1 %v6482_v53  ;;  %v6547_v53 = vcombine.high %v938_v18, %v942_v20  ;;  %v995_v18 = vld [vmem:[#allocation8 + $0x6d8] sm:$0xff] }
 0x2c0   :  { %2636 = vmatpush1.bf16.msra.mxu0 %v6484_v26  ;;  %2551 = vmatprep.subr.bf16.mxu1 %v6491_v27  ;;  %v6549_v26 = vcombine.high %v939_v23, %v943_v24  ;;  %v946_v27 = vld [vmem:[#allocation8 + $0x550] sm:$0xff]  ;;  %v999_v20 = vld [vmem:[#allocation8 + $0x6f8] sm:$0xff] }
 0x2c1   :  { %2637 = vmatprep.subr.bf16.mxu0 %v6493_v28  ;;  %v950_v28 = vld [vmem:[#allocation8 + $0x570] sm:$0xff] }
 0x2c2   :  { %v6554_v35 = vcombine.low %v946_v27, %v950_v28 }
 0x2c3   :  { %2552 = vmatpush1.bf16.msra.mxu1 %v6490_v16  ;;  %v6555_v16 = vcombine.high %v946_v27, %v950_v28  ;;  %v1003_v27 = vld [vmem:[#allocation8 + $0x718] sm:$0xff] }
 0x2c4   :  { %2638 = vmatpush1.bf16.msra.mxu0 %v6492_v17  ;;  %2553 = vmatprep.subr.bf16.mxu1 %v6499_v19  ;;  %v6557_v17 = vcombine.high %v947_v29, %v951_v30  ;;  %v954_v19 = vld [vmem:[#allocation8 + $0x590] sm:$0xff]  ;;  %v1007_v28 = vld [vmem:[#allocation8 + $0x738] sm:$0xff]  ;;  %v6604_v30 = vcombine.low %v995_v18, %v999_v20 }
 0x2c5   :  { %2639 = vmatprep.subr.bf16.mxu0 %v6501_v21  ;;  %v958_v21 = vld [vmem:[#allocation8 + $0x5b0] sm:$0xff] }
 0x2c6   :  { %v6562_v46 = vcombine.low %v954_v19, %v958_v21 }
 0x2c7   :  { %2554 = vmatpush1.bf16.msra.mxu1 %v6498_v38  ;;  %v6563_v38 = vcombine.high %v954_v19, %v958_v21  ;;  %v1011_v19 = vld [vmem:[#allocation8 + $0x758] sm:$0xff] }
 0x2c8   :  { %2640 = vmatpush1.bf16.msra.mxu0 %v6500_v39  ;;  %2555 = vmatprep.subr.bf16.mxu1 %v6507_v41  ;;  %v6565_v39 = vcombine.high %v955_v22, %v959_v33  ;;  %v962_v41 = vld [vmem:[#allocation8 + $0x5d0] sm:$0xff]  ;;  %v1015_v21 = vld [vmem:[#allocation8 + $0x778] sm:$0xff]  ;;  %v6612_v33 = vcombine.low %v1003_v27, %v1007_v28 }
 0x2c9   :  { %2641 = vmatprep.subr.bf16.mxu0 %v6509_v43  ;;  %v966_v43 = vld [vmem:[#allocation8 + $0x5f0] sm:$0xff] }
 0x2cb   :  { %2556 = vmatpush1.bf16.msra.mxu1 %v6506_v48  ;;  %v6571_v48 = vcombine.high %v962_v41, %v966_v43 }
 0x2cc   :  { %2642 = vmatpush1.bf16.msra.mxu0 %v6508_v49  ;;  %2568 = vmatprep.subr.bf16.mxu1 %v6515_v50  ;;  %v6573_v49 = vcombine.high %v963_v44, %v967_v45  ;;  %v970_v50 = vld [vmem:[#allocation8 + $0x610] sm:$0xff]  ;;  %v6620_v45 = vcombine.low %v1011_v19, %v1015_v21 }
 0x2cd   :  { %2654 = vmatprep.subr.bf16.mxu0 %v6517_v51  ;;  %v974_v51 = vld [vmem:[#allocation8 + $0x630] sm:$0xff] }
 0x2ce   :  { %2558 = vmatmul.mubr.bf16.vlgmr.msra.gmra.mrb[4].mxu1 %v8390_v8  ;;  %v6579_v59 = vcombine.high %v970_v50, %v974_v51 }
 0x2cf   :  { %2644 = vmatmul.mubr.bf16.vlgmr.msra.gmra.mrb[16].mxu0 %v8390_v8  ;;  %2569 = vmatpush1.bf16.msra.mxu1 %v6514_v57  ;;  %v6532_v8 = vcombine.low %v923_v9, %v927_v1  ;;  %v6570_v57 = vcombine.low %v962_v41, %v966_v43  ;;  %v6578_v9 = vcombine.low %v970_v50, %v974_v51  ;;  %v1019_v41 = vld [vmem:[#allocation8 + $0x798] sm:$0xff] }
 0x2d0   :  { %2600 = vmatprep.mubr.bf16.mxu1 %v8416_v37  ;;  %2655 = vmatpush1.bf16.msra.mxu0 %v6516_v60  ;;  %v6581_v60 = vcombine.high %v971_v52, %v975_v55  ;;  %v6580_v1 = vcombine.low %v971_v52, %v975_v55  ;;  %v1023_v43 = vld [vmem:[#allocation8 + $0x7b8] sm:$0xff] }
 0x2d1   :  { %2686 = vmatprep.mubr.bf16.mxu0 %v8416_v37  ;;  %2570 = vmatprep.subr.bf16.mxu1 %v6523_v61  ;;  %v6538_v37 = vcombine.low %v930_v6, %v934_v7  ;;  %v978_v61 = vld [vmem:[#allocation8 + $0x650] sm:$0xff]  ;;  %v987_v6 = vld [vmem:[#allocation8 + $0x698] sm:$0xff]  ;;  %v6628_v55 = vcombine.low %v1019_v41, %v1023_v43 }
 0x2d2   :  { %2656 = vmatprep.subr.bf16.mxu0 %v6525_v0  ;;  %v983_v0 = vld [vmem:[#allocation8 + $0x678] sm:$0xff]  ;;  %v6586_v10 = vcombine.low %v978_v61, %v982_v62 }
 0x2d3   :  { %2571 = vmatpush1.bf16.msra.mxu1 %v6522_v2  ;;  %v6587_v2 = vcombine.high %v978_v61, %v982_v62  ;;  %v991_v7 = vld [vmem:[#allocation8 + $0x6b8] sm:$0xff]  ;;  %v6588_v11 = vcombine.low %v979_v63, %v983_v0  ;;  %v7397_v61 = vld [vmem:[#allocation10 + $0x4] ss:$28 sps:$4 sm:$0xff]   ;;  %v7400_v62 = vld [vmem:[#allocation10 + $0xc] ss:$28 sps:$4 sm:$0xff]  }
 0x2d4   :  { %2657 = vmatpush1.bf16.msra.mxu0 %v6524_v3  ;;  %2572 = vmatprep.subr.bf16.mxu1 %v6531_v4  ;;  %v6589_v3 = vcombine.high %v979_v63, %v983_v0  ;;  %v986_v4 = vld [vmem:[#allocation8 + $0x690] sm:$0xff]  ;;  %v6596_v24 = vcombine.low %v987_v6, %v991_v7  ;;  %v1027_v50 = vld [vmem:[#allocation8 + $0x7d8] sm:$0xff]  ;;  %v7398_v0 = vld [vmem:[#allocation10 + $0x8] ss:$28 sps:$4 sm:$0xff]  }
 0x2d5   :  { %2658 = vmatprep.subr.bf16.mxu0 %v6533_v5  ;;  %v990_v5 = vld [vmem:[#allocation8 + $0x6b0] sm:$0xff]  ;;  %v1031_v51 = vld [vmem:[#allocation8 + $0x7f8] sm:$0xff] }
 0x2d6   :  { %v6594_v23 = vcombine.low %v986_v4, %v990_v5  ;;  %v7395_v63 = vld [vmem:[#allocation10] ss:$28 sps:$4 sm:$0xff]  }
 0x2d7   :  { %2573 = vmatpush1.bf16.msra.mxu1 %v6530_v12  ;;  %v6595_v12 = vcombine.high %v986_v4, %v990_v5  ;;  %v7409_v4 = vld [vmem:[#allocation10 + $0x74] ss:$28 sps:$4 sm:$0xff]   ;;  %v7412_v5 = vld [vmem:[#allocation10 + $0x7c] ss:$28 sps:$4 sm:$0xff]  }
 0x2d8   :  { %2659 = vmatpush1.bf16.msra.mxu0 %v6532_v8  ;;  %2574 = vmatprep.subr.bf16.mxu1 %v6539_v13  ;;  %v6597_v8 = vcombine.high %v987_v6, %v991_v7  ;;  %v994_v13 = vld [vmem:[#allocation8 + $0x6d0] sm:$0xff] }
 0x2d9   :  { %2660 = vmatprep.subr.bf16.mxu0 %v6541_v14  ;;  %v998_v14 = vld [vmem:[#allocation8 + $0x6f0] sm:$0xff] }
 0x2da   :  { %v6602_v29 = vcombine.low %v994_v13, %v998_v14  ;;  %v7407_v6 = vld [vmem:[#allocation10 + $0x70] ss:$28 sps:$4 sm:$0xff]   ;;  %v7410_v7 = vld [vmem:[#allocation10 + $0x78] ss:$28 sps:$4 sm:$0xff]  }
 0x2db   :  { %2575 = vmatpush1.bf16.msra.mxu1 %v6538_v37  ;;  %v6603_v37 = vcombine.high %v994_v13, %v998_v14  ;;  %v7424_v13 = vld [vmem:[#allocation10 + $0xec] ss:$28 sps:$4 sm:$0xff]   ;;  %v7419_v14 = vld [vmem:[#allocation10 + $0xe0] ss:$28 sps:$4 sm:$0xff]  }
 0x2dc   :  { %2661 = vmatpush1.bf16.msra.mxu0 %v6540_v25  ;;  %2576 = vmatprep.subr.bf16.mxu1 %v6547_v53  ;;  %v6605_v25 = vcombine.high %v995_v18, %v999_v20  ;;  %v1002_v53 = vld [vmem:[#allocation8 + $0x710] sm:$0xff]  ;;  %v7422_v18 = vld [vmem:[#allocation10 + $0xe8] ss:$28 sps:$4 sm:$0xff]   ;;  %v7427_v20 = vld [vmem:[#allocation10 + $0x11c] ss:$28 sps:$4 sm:$0xff]  }
 0x2dd   :  { %2662 = vmatprep.subr.bf16.mxu0 %v6549_v26  ;;  %v1006_v26 = vld [vmem:[#allocation8 + $0x730] sm:$0xff] }
 0x2de   :  { %v6610_v22 = vcombine.low %v1002_v53, %v1006_v26 }
 0x2df   :  { %2577 = vmatpush1.bf16.msra.mxu1 %v6546_v31  ;;  %v6611_v31 = vcombine.high %v1002_v53, %v1006_v26  ;;  %v7436_v53 = vld [vmem:[#allocation10 + $0x15c] ss:$28 sps:$4 sm:$0xff]   ;;  %v7431_v26 = vld [vmem:[#allocation10 + $0x150] ss:$28 sps:$4 sm:$0xff]  }
 0x2e0   :  { %2663 = vmatpush1.bf16.msra.mxu0 %v6548_v15  ;;  %2578 = vmatprep.subr.bf16.mxu1 %v6555_v16  ;;  %v6613_v15 = vcombine.high %v1003_v27, %v1007_v28  ;;  %v1010_v16 = vld [vmem:[#allocation8 + $0x750] sm:$0xff]  ;;  %v7439_v28 = vld [vmem:[#allocation10 + $0x18c] ss:$28 sps:$4 sm:$0xff]  }
 0x2e1   :  { %2664 = vmatprep.subr.bf16.mxu0 %v6557_v17  ;;  %v1014_v17 = vld [vmem:[#allocation8 + $0x770] sm:$0xff] }
 0x2e2   :  { %v6618_v44 = vcombine.low %v1010_v16, %v1014_v17  ;;  %v7434_v27 = vld [vmem:[#allocation10 + $0x158] ss:$28 sps:$4 sm:$0xff]  }
 0x2e3   :  { %2579 = vmatpush1.bf16.msra.mxu1 %v6554_v35  ;;  %v6619_v35 = vcombine.high %v1010_v16, %v1014_v17  ;;  %v7448_v16 = vld [vmem:[#allocation10 + $0x1cc] ss:$28 sps:$4 sm:$0xff]   ;;  %v7443_v17 = vld [vmem:[#allocation10 + $0x1c0] ss:$28 sps:$4 sm:$0xff]  }
 0x2e4   :  { %2665 = vmatpush1.bf16.msra.mxu0 %v6556_v36  ;;  %2580 = vmatprep.subr.bf16.mxu1 %v6563_v38  ;;  %v6621_v36 = vcombine.high %v1011_v19, %v1015_v21  ;;  %v1018_v38 = vld [vmem:[#allocation8 + $0x790] sm:$0xff]  ;;  %v7446_v19 = vld [vmem:[#allocation10 + $0x1c8] ss:$28 sps:$4 sm:$0xff]   ;;  %v7451_v21 = vld [vmem:[#allocation10 + $0x1fc] ss:$28 sps:$4 sm:$0xff]  }
 0x2e5   :  { %2666 = vmatprep.subr.bf16.mxu0 %v6565_v39  ;;  %v1022_v39 = vld [vmem:[#allocation8 + $0x7b0] sm:$0xff] }
 0x2e6   :  { %v6626_v52 = vcombine.low %v1018_v38, %v1022_v39 }
 0x2e7   :  { %2581 = vmatpush1.bf16.msra.mxu1 %v6562_v46  ;;  %v6627_v46 = vcombine.high %v1018_v38, %v1022_v39  ;;  %v7460_v38 = vld [vmem:[#allocation10 + $0x23c] ss:$28 sps:$4 sm:$0xff]   ;;  %v7455_v39 = vld [vmem:[#allocation10 + $0x230] ss:$28 sps:$4 sm:$0xff]  }
 0x2e8   :  { %2667 = vmatpush1.bf16.msra.mxu0 %v6564_v47  ;;  %2582 = vmatprep.subr.bf16.mxu1 %v6571_v48  ;;  %v6629_v47 = vcombine.high %v1019_v41, %v1023_v43  ;;  %v1026_v48 = vld [vmem:[#allocation8 + $0x7d0] sm:$0xff]  ;;  %v7463_v43 = vld [vmem:[#allocation10 + $0x26c] ss:$28 sps:$4 sm:$0xff]  }
 0x2e9   :  { %2668 = vmatprep.subr.bf16.mxu0 %v6573_v49  ;;  %v1030_v49 = vld [vmem:[#allocation8 + $0x7f0] sm:$0xff] }
 0x2ea   :  { %v7458_v41 = vld [vmem:[#allocation10 + $0x238] ss:$28 sps:$4 sm:$0xff]  }
 0x2eb   :  { %2583 = vmatpush1.bf16.msra.mxu1 %v6570_v57  ;;  %v6635_v57 = vcombine.high %v1026_v48, %v1030_v49 }
 0x2ec   :  { %2669 = vmatpush1.bf16.msra.mxu0 %v6572_v58  ;;  %2584 = vmatprep.subr.bf16.mxu1 %v6579_v59  ;;  %v6637_v58 = vcombine.high %v1027_v50, %v1031_v51  ;;  %v6634_v59 = vcombine.low %v1026_v48, %v1030_v49  ;;  %v7472_v48 = vld [vmem:[#allocation10 + $0x2ac] ss:$28 sps:$4 sm:$0xff]   ;;  %v7467_v49 = vld [vmem:[#allocation10 + $0x2a0] ss:$28 sps:$4 sm:$0xff]  }
 0x2ed   :  { %2670 = vmatprep.subr.bf16.mxu0 %v6581_v60  ;;  %v6636_v60 = vcombine.low %v1027_v50, %v1031_v51  ;;  %v7470_v50 = vld [vmem:[#allocation10 + $0x2a8] ss:$28 sps:$4 sm:$0xff]   ;;  %v7475_v51 = vld [vmem:[#allocation10 + $0x2dc] ss:$28 sps:$4 sm:$0xff]  }
 0x2ef   :  { %2585 = vmatpush1.bf16.msra.mxu1 %v6578_v9  ;;  %v7403_v9 = vld [vmem:[#allocation10 + $0x3c] ss:$28 sps:$4 sm:$0xff]  }
 0x2f0   :  { %2671 = vmatpush1.bf16.msra.mxu0 %v6580_v1  ;;  %2586 = vmatprep.subr.bf16.mxu1 %v6587_v2  ;;  %v7406_v1 = vld [vmem:[#allocation10 + $0x44] ss:$28 sps:$4 sm:$0xff]   ;;  %v7401_v2 = vld [vmem:[#allocation10 + $0x38] ss:$28 sps:$4 sm:$0xff]  }
 0x2f1   :  { %2672 = vmatprep.subr.bf16.mxu0 %v6589_v3  ;;  %v7404_v3 = vld [vmem:[#allocation10 + $0x40] ss:$28 sps:$4 sm:$0xff]  }
 0x2f3   :  { %2587 = vmatpush1.bf16.msra.mxu1 %v6586_v10  ;;  %v7415_v10 = vld [vmem:[#allocation10 + $0xac] ss:$28 sps:$4 sm:$0xff]  }
 0x2f4   :  { %2673 = vmatpush1.bf16.msra.mxu0 %v6588_v11  ;;  %2588 = vmatprep.subr.bf16.mxu1 %v6595_v12  ;;  %v7418_v11 = vld [vmem:[#allocation10 + $0xb4] ss:$28 sps:$4 sm:$0xff]   ;;  %v7413_v12 = vld [vmem:[#allocation10 + $0xa8] ss:$28 sps:$4 sm:$0xff]  }
 0x2f5   :  { %2674 = vmatprep.subr.bf16.mxu0 %v6597_v8  ;;  %v7421_v8 = vld [vmem:[#allocation10 + $0xe4] ss:$28 sps:$4 sm:$0xff]  }
 0x2f7   :  { %2589 = vmatpush1.bf16.msra.mxu1 %v6594_v23  ;;  %v7430_v23 = vld [vmem:[#allocation10 + $0x124] ss:$28 sps:$4 sm:$0xff]  }
 0x2f8   :  { %2675 = vmatpush1.bf16.msra.mxu0 %v6596_v24  ;;  %2590 = vmatprep.subr.bf16.mxu1 %v6603_v37  ;;  %v7425_v24 = vld [vmem:[#allocation10 + $0x118] ss:$28 sps:$4 sm:$0xff]   ;;  %v7428_v37 = vld [vmem:[#allocation10 + $0x120] ss:$28 sps:$4 sm:$0xff]  }
 0x2f9   :  { %2676 = vmatprep.subr.bf16.mxu0 %v6605_v25  ;;  %v7433_v25 = vld [vmem:[#allocation10 + $0x154] ss:$28 sps:$4 sm:$0xff]  }
 0x2fb   :  { %2591 = vmatpush1.bf16.msra.mxu1 %v6602_v29  ;;  %v7442_v29 = vld [vmem:[#allocation10 + $0x194] ss:$28 sps:$4 sm:$0xff]  }
 0x2fc   :  { %2677 = vmatpush1.bf16.msra.mxu0 %v6604_v30  ;;  %2592 = vmatprep.subr.bf16.mxu1 %v6611_v31  ;;  %v7437_v30 = vld [vmem:[#allocation10 + $0x188] ss:$28 sps:$4 sm:$0xff]   ;;  %v7440_v31 = vld [vmem:[#allocation10 + $0x190] ss:$28 sps:$4 sm:$0xff]  }
 0x2fd   :  { %2678 = vmatprep.subr.bf16.mxu0 %v6613_v15  ;;  %v7445_v15 = vld [vmem:[#allocation10 + $0x1c4] ss:$28 sps:$4 sm:$0xff]  }
 0x2ff   :  { %2593 = vmatpush1.bf16.msra.mxu1 %v6610_v22  ;;  %v7454_v22 = vld [vmem:[#allocation10 + $0x204] ss:$28 sps:$4 sm:$0xff]  }
 0x300   :  { %2679 = vmatpush1.bf16.msra.mxu0 %v6612_v33  ;;  %2594 = vmatprep.subr.bf16.mxu1 %v6619_v35  ;;  %v7449_v33 = vld [vmem:[#allocation10 + $0x1f8] ss:$28 sps:$4 sm:$0xff]   ;;  %v7452_v35 = vld [vmem:[#allocation10 + $0x200] ss:$28 sps:$4 sm:$0xff]  }
 0x301   :  { %2680 = vmatprep.subr.bf16.mxu0 %v6621_v36  ;;  %v7457_v36 = vld [vmem:[#allocation10 + $0x234] ss:$28 sps:$4 sm:$0xff]  }
 0x303   :  { %2595 = vmatpush1.bf16.msra.mxu1 %v6618_v44  ;;  %v7466_v44 = vld [vmem:[#allocation10 + $0x274] ss:$28 sps:$4 sm:$0xff]  }
 0x304   :  { %2681 = vmatpush1.bf16.msra.mxu0 %v6620_v45  ;;  %2596 = vmatprep.subr.bf16.mxu1 %v6627_v46  ;;  %v7461_v45 = vld [vmem:[#allocation10 + $0x268] ss:$28 sps:$4 sm:$0xff]   ;;  %v7464_v46 = vld [vmem:[#allocation10 + $0x270] ss:$28 sps:$4 sm:$0xff]  }
 0x305   :  { %2682 = vmatprep.subr.bf16.mxu0 %v6629_v47  ;;  %v7469_v47 = vld [vmem:[#allocation10 + $0x2a4] ss:$28 sps:$4 sm:$0xff]  }
 0x307   :  { %2597 = vmatpush1.bf16.msra.mxu1 %v6626_v52  ;;  %v7478_v52 = vld [vmem:[#allocation10 + $0x2e4] ss:$28 sps:$4 sm:$0xff]  }
 0x308   :  { %2683 = vmatpush1.bf16.msra.mxu0 %v6628_v55  ;;  %2598 = vmatprep.subr.bf16.mxu1 %v6635_v57  ;;  %v7473_v55 = vld [vmem:[#allocation10 + $0x2d8] ss:$28 sps:$4 sm:$0xff]   ;;  %v7476_v57 = vld [vmem:[#allocation10 + $0x2e0] ss:$28 sps:$4 sm:$0xff]  }
 0x309   :  { %2684 = vmatprep.subr.bf16.mxu0 %v6637_v58  ;;  %v7481_v58 = vld [vmem:[#allocation10 + $0x314] ss:$28 sps:$4 sm:$0xff]  }
 0x30b   :  { %2599 = vmatpush1.bf16.msra.mxu1 %v6634_v59  ;;  %v7484_v59 = vld [vmem:[#allocation10 + $0x31c] ss:$28 sps:$4 sm:$0xff]  }
 0x30c   :  { %2685 = vmatpush1.bf16.msra.mxu0 %v6636_v60  ;;  %5573 = vmatprep.subr.bf16.mxu1 %v7397_v61  ;;  %v7479_v60 = vld [vmem:[#allocation10 + $0x310] ss:$28 sps:$4 sm:$0xff]   ;;  %v7482_v61 = vld [vmem:[#allocation10 + $0x318] ss:$28 sps:$4 sm:$0xff]  }
 0x30d   :  { %5745 = vmatprep.subr.bf16.mxu0 %v7400_v62  ;;  %v7487_v62 = vld [vmem:[#allocation10 + $0x34c] ss:$28 sps:$4 sm:$0xff]  }
 0x30e   :  { %2601 = vmatmul.mubr.bf16.vlgmr.msra.gmra.mrb[4].mxu1 %v8414_v32 }
 0x30f   :  { %2687 = vmatmul.mubr.bf16.vlgmr.msra.gmra.mrb[16].mxu0 %v8414_v32  ;;  %5574 = vmatpush1.bf16.msra.mxu1 %v7395_v63  ;;  %v7416_v32 = vld [vmem:[#allocation10 + $0xb0] ss:$28 sps:$4 sm:$0xff]  }
 0x310   :  { %5746 = vmatpush1.bf16.msra.mxu0 %v7398_v0  ;;  %5575 = vmatprep.subr.bf16.mxu1 %v7403_v9  ;;  %v7490_v63 = vld [vmem:[#allocation10 + $0x354] ss:$28 sps:$4 sm:$0xff]   ;;  %v7485_v0 = vld [vmem:[#allocation10 + $0x348] ss:$28 sps:$4 sm:$0xff]  }
 0x311   :  { %5747 = vmatprep.subr.bf16.mxu0 %v7406_v1  ;;  %v7488_v9 = vld [vmem:[#allocation10 + $0x350] ss:$28 sps:$4 sm:$0xff]   ;;  %v7493_v1 = vld [vmem:[#allocation10 + $0x384] ss:$28 sps:$4 sm:$0xff]  }
 0x313   :  { %5576 = vmatpush1.bf16.msra.mxu1 %v7401_v2  ;;  %v7496_v2 = vld [vmem:[#allocation10 + $0x38c] ss:$28 sps:$4 sm:$0xff]  }
 0x314   :  { %5748 = vmatpush1.bf16.msra.mxu0 %v7404_v3  ;;  %5577 = vmatprep.subr.bf16.mxu1 %v7409_v4  ;;  %v8430_v3 = vld [vmem:[#allocation11 + $0x6] sm:$0xff] }
 0x315   :  { %5749 = vmatprep.subr.bf16.mxu0 %v7412_v5  ;;  %v1036_v4 = vrot.slane %v8430_v3, %v8357_v40  ;;  %v1044_v5 = vrot.slane %v8430_v3, %v8405_v54 }
 0x317   :  { %5578 = vmatpush1.bf16.msra.mxu1 %v7407_v6  ;;  %v1040_v6 = vrot.slane %v8430_v3, %v8360_v42 }
 0x318   :  { %5750 = vmatpush1.bf16.msra.mxu0 %v7410_v7  ;;  %5579 = vmatprep.subr.bf16.mxu1 %v7415_v10  ;;  %v1048_v7 = vrot.slane %v8430_v3, %v8408_v56 }
 0x319   :  { %5751 = vmatprep.subr.bf16.mxu0 %v7418_v11 }
 0x31b   :  { %5580 = vmatpush1.bf16.msra.mxu1 %v7413_v12 }
 0x31c   :  { %5752 = vmatpush1.bf16.msra.mxu0 %v7416_v32  ;;  %5581 = vmatprep.subr.bf16.mxu1 %v7421_v8 }
 0x31d   :  { %5753 = vmatprep.subr.bf16.mxu0 %v7424_v13 }
 0x31f   :  { %5582 = vmatpush1.bf16.msra.mxu1 %v7419_v14 }
 0x320   :  { %5754 = vmatpush1.bf16.msra.mxu0 %v7422_v18  ;;  %5583 = vmatprep.subr.bf16.mxu1 %v7427_v20 }
 0x321   :  { %5755 = vmatprep.subr.bf16.mxu0 %v7430_v23 }
 0x323   :  { %5584 = vmatpush1.bf16.msra.mxu1 %v7425_v24 }
 0x324   :  { %5756 = vmatpush1.bf16.msra.mxu0 %v7428_v37  ;;  %5585 = vmatprep.subr.bf16.mxu1 %v7433_v25 }
 0x325   :  { %5757 = vmatprep.subr.bf16.mxu0 %v7436_v53 }
 0x327   :  { %5586 = vmatpush1.bf16.msra.mxu1 %v7431_v26 }
 0x328   :  { %5758 = vmatpush1.bf16.msra.mxu0 %v7434_v27  ;;  %5587 = vmatprep.subr.bf16.mxu1 %v7439_v28 }
 0x329   :  { %5759 = vmatprep.subr.bf16.mxu0 %v7442_v29 }
 0x32b   :  { %5588 = vmatpush1.bf16.msra.mxu1 %v7437_v30 }
 0x32c   :  { %5760 = vmatpush1.bf16.msra.mxu0 %v7440_v31  ;;  %5589 = vmatprep.subr.bf16.mxu1 %v7445_v15 }
 0x32d   :  { %5761 = vmatprep.subr.bf16.mxu0 %v7448_v16 }
 0x32f   :  { %5590 = vmatpush1.bf16.msra.mxu1 %v7443_v17 }
 0x330   :  { %5762 = vmatpush1.bf16.msra.mxu0 %v7446_v19  ;;  %5591 = vmatprep.subr.bf16.mxu1 %v7451_v21 }
 0x331   :  { %5763 = vmatprep.subr.bf16.mxu0 %v7454_v22 }
 0x333   :  { %5592 = vmatpush1.bf16.msra.mxu1 %v7449_v33 }
 0x334   :  { %5764 = vmatpush1.bf16.msra.mxu0 %v7452_v35  ;;  %5593 = vmatprep.subr.bf16.mxu1 %v7457_v36  ;;  %v7491_v36 = vld [vmem:[#allocation10 + $0x380] ss:$28 sps:$4 sm:$0xff]  }
 0x335   :  { %5765 = vmatprep.subr.bf16.mxu0 %v7460_v38  ;;  %v7494_v38 = vld [vmem:[#allocation10 + $0x388] ss:$28 sps:$4 sm:$0xff]  }
 0x337   :  { %5594 = vmatpush1.bf16.msra.mxu1 %v7455_v39  ;;  %v7499_v39 = vld [vmem:[#allocation10 + $0x3bc] ss:$28 sps:$4 sm:$0xff]  }
 0x338   :  { %5766 = vmatpush1.bf16.msra.mxu0 %v7458_v41  ;;  %5595 = vmatprep.subr.bf16.mxu1 %v7463_v43  ;;  %v7502_v41 = vld [vmem:[#allocation10 + $0x3c4] ss:$28 sps:$4 sm:$0xff]   ;;  %v7497_v43 = vld [vmem:[#allocation10 + $0x3b8] ss:$28 sps:$4 sm:$0xff]  }
 0x339   :  { %5767 = vmatprep.subr.bf16.mxu0 %v7466_v44  ;;  %v7500_v44 = vld [vmem:[#allocation10 + $0x3c0] ss:$28 sps:$4 sm:$0xff]  }
 0x33b   :  { %5596 = vmatpush1.bf16.msra.mxu1 %v7461_v45  ;;  %v7505_v45 = vld [vmem:[#allocation10 + $0x3f4] ss:$28 sps:$4 sm:$0xff]  }
 0x33c   :  { %5768 = vmatpush1.bf16.msra.mxu0 %v7464_v46  ;;  %5597 = vmatprep.subr.bf16.mxu1 %v7469_v47  ;;  %v7508_v46 = vld [vmem:[#allocation10 + $0x3fc] ss:$28 sps:$4 sm:$0xff]   ;;  %v7503_v47 = vld [vmem:[#allocation10 + $0x3f0] ss:$28 sps:$4 sm:$0xff]  }
 0x33d   :  { %5769 = vmatprep.subr.bf16.mxu0 %v7472_v48  ;;  %v7506_v48 = vld [vmem:[#allocation10 + $0x3f8] ss:$28 sps:$4 sm:$0xff]  }
 0x33f   :  { %5598 = vmatpush1.bf16.msra.mxu1 %v7467_v49  ;;  %v7511_v49 = vld [vmem:[#allocation10 + $0x42c] ss:$28 sps:$4 sm:$0xff]  }
 0x340   :  { %5770 = vmatpush1.bf16.msra.mxu0 %v7470_v50  ;;  %5599 = vmatprep.subr.bf16.mxu1 %v7475_v51  ;;  %v7514_v50 = vld [vmem:[#allocation10 + $0x434] ss:$28 sps:$4 sm:$0xff]   ;;  %v7509_v51 = vld [vmem:[#allocation10 + $0x428] ss:$28 sps:$4 sm:$0xff]  }
 0x341   :  { %5771 = vmatprep.subr.bf16.mxu0 %v7478_v52  ;;  %v7512_v52 = vld [vmem:[#allocation10 + $0x430] ss:$28 sps:$4 sm:$0xff]  }
 0x343   :  { %5600 = vmatpush1.bf16.msra.mxu1 %v7473_v55  ;;  %v7517_v55 = vld [vmem:[#allocation10 + $0x464] ss:$28 sps:$4 sm:$0xff]  }
 0x344   :  { %5772 = vmatpush1.bf16.msra.mxu0 %v7476_v57  ;;  %5601 = vmatprep.subr.bf16.mxu1 %v7481_v58  ;;  %v7520_v57 = vld [vmem:[#allocation10 + $0x46c] ss:$28 sps:$4 sm:$0xff]   ;;  %v7515_v58 = vld [vmem:[#allocation10 + $0x460] ss:$28 sps:$4 sm:$0xff]  }
 0x345   :  { %5773 = vmatprep.subr.bf16.mxu0 %v7484_v59  ;;  %v7518_v59 = vld [vmem:[#allocation10 + $0x468] ss:$28 sps:$4 sm:$0xff]  }
 0x347   :  { %5602 = vmatpush1.bf16.msra.mxu1 %v7479_v60  ;;  %v7523_v60 = vld [vmem:[#allocation10 + $0x49c] ss:$28 sps:$4 sm:$0xff]  }
 0x348   :  { %5774 = vmatpush1.bf16.msra.mxu0 %v7482_v61  ;;  %5603 = vmatprep.subr.bf16.mxu1 %v7487_v62  ;;  %v7526_v61 = vld [vmem:[#allocation10 + $0x4a4] ss:$28 sps:$4 sm:$0xff]   ;;  %v7521_v62 = vld [vmem:[#allocation10 + $0x498] ss:$28 sps:$4 sm:$0xff]  }
 0x349   :  { %5775 = vmatprep.subr.bf16.mxu0 %v7490_v63  ;;  %v7524_v63 = vld [vmem:[#allocation10 + $0x4a0] ss:$28 sps:$4 sm:$0xff]  }
 0x34b   :  { %5604 = vmatpush1.bf16.msra.mxu1 %v7485_v0  ;;  %v7529_v0 = vld [vmem:[#allocation10 + $0x4d4] ss:$28 sps:$4 sm:$0xff]  }
 0x34c   :  { %5776 = vmatpush1.bf16.msra.mxu0 %v7488_v9  ;;  %5616 = vmatprep.subr.bf16.mxu1 %v7493_v1  ;;  %v7532_v9 = vld [vmem:[#allocation10 + $0x4dc] ss:$28 sps:$4 sm:$0xff]   ;;  %v7527_v1 = vld [vmem:[#allocation10 + $0x4d0] ss:$28 sps:$4 sm:$0xff]  }
 0x34d   :  { %5788 = vmatprep.subr.bf16.mxu0 %v7496_v2  ;;  %v7530_v2 = vld [vmem:[#allocation10 + $0x4d8] ss:$28 sps:$4 sm:$0xff]  }
 0x361   :  { %v2430_v10 = vpop.f32.mrb[0].mxu1  ;;  %v2516_v11 = vpop.f32.mrb[12].mxu0 }
 0x362   :  { %v7174_v12 = vadd.f32 %v2430_v10, %v1036_v4  ;;  %v7178_v32 = vadd.f32 %v2516_v11, %v1044_v5  ;;  %v2432_v8 = vpop.f32.mrb[1].mxu1  ;;  %v2518_v13 = vpop.f32.mrb[13].mxu0  ;;  %v7541_v10 = vld [vmem:[#allocation10 + $0x544] ss:$28 sps:$4 sm:$0xff]   ;;  %v7544_v11 = vld [vmem:[#allocation10 + $0x54c] ss:$28 sps:$4 sm:$0xff]  }
 0x363   :  { %v7175_v14 = vadd.f32 %v2432_v8, %v1040_v6  ;;  %v7179_v18 = vadd.f32 %v2518_v13, %v1048_v7  ;;  %v2434_v20 = vpop.f32.mrb[2].mxu1  ;;  %v2520_v23 = vpop.f32.mrb[14].mxu0  ;;  %v7547_v8 = vld [vmem:[#allocation10 + $0x57c] ss:$28 sps:$4 sm:$0xff]   ;;  %v7550_v13 = vld [vmem:[#allocation10 + $0x584] ss:$28 sps:$4 sm:$0xff]  }
 0x364   :  { %v7176_v24 = vadd.f32 %v2434_v20, %v1036_v4  ;;  %v7180_v37 = vadd.f32 %v2520_v23, %v1044_v5  ;;  %v2436_v25 = vpop.f32.mrb[3].mxu1  ;;  %v2522_v53 = vpop.f32.mrb[15].mxu0  ;;  %v2697_v28 = vmax.f32 %v7174_v12, 0.0  ;;  %v2699_v29 = vmax.f32 %v7178_v32, 0.0  ;;  %v7535_v4 = vld [vmem:[#allocation10 + $0x50c] ss:$28 sps:$4 sm:$0xff]  }
 0x365   :  { %v7177_v26 = vadd.f32 %v2436_v25, %v1040_v6  ;;  %v7181_v27 = vadd.f32 %v2522_v53, %v1048_v7  ;;  %v2698_v15 = vmax.f32 %v7175_v14, 0.0  ;;  %v2700_v16 = vmax.f32 %v7179_v18, 0.0  ;;  %v7538_v5 = vld [vmem:[#allocation10 + $0x514] ss:$28 sps:$4 sm:$0xff]   ;;  %v7533_v6 = vld [vmem:[#allocation10 + $0x508] ss:$28 sps:$4 sm:$0xff]  }
 0x366   :  { %v2705_v30 = vmax.f32 %v7176_v24, 0.0  ;;  %v2707_v31 = vmax.f32 %v7180_v37, 0.0  ;;  %v7536_v7 = vld [vmem:[#allocation10 + $0x510] ss:$28 sps:$4 sm:$0xff]   ;;  %v7539_v12 = vld [vmem:[#allocation10 + $0x540] ss:$28 sps:$4 sm:$0xff]  }
 0x367   :  { %v2706_v17 = vmax.f32 %v7177_v26, 0.0  ;;  %v2708_v19 = vmax.f32 %v7181_v27, 0.0  ;;  %v7542_v32 = vld [vmem:[#allocation10 + $0x548] ss:$28 sps:$4 sm:$0xff]   ;;  %v7545_v14 = vld [vmem:[#allocation10 + $0x578] ss:$28 sps:$4 sm:$0xff]  }
 0x368   :  { %v8440_v21 = vpack.c.bf16 %v2705_v30, %v2697_v28  ;;  %v8442_v22 = vpack.c.bf16 %v2707_v31, %v2699_v29  ;;  %v7548_v18 = vld [vmem:[#allocation10 + $0x580] ss:$28 sps:$4 sm:$0xff]   ;;  %v7553_v20 = vld [vmem:[#allocation10 + $0x5b4] ss:$28 sps:$4 sm:$0xff]   ;;  %v7559_v25 = vld [vmem:[#allocation10 + $0x5ec] ss:$28 sps:$4 sm:$0xff]  }
 0x369   :  { %v8444_v33 = vpack.c.bf16 %v2706_v17, %v2698_v15  ;;  %v8446_v35 = vpack.c.bf16 %v2708_v19, %v2700_v16  ;;  %v7556_v23 = vld [vmem:[#allocation10 + $0x5bc] ss:$28 sps:$4 sm:$0xff]   ;;  %v7551_v24 = vld [vmem:[#allocation10 + $0x5b0] ss:$28 sps:$4 sm:$0xff]   ;;  %v7557_v26 = vld [vmem:[#allocation10 + $0x5e8] ss:$28 sps:$4 sm:$0xff]  }
 0x36a   :  { %v7554_v37 = vld [vmem:[#allocation10 + $0x5b8] ss:$28 sps:$4 sm:$0xff]   ;;  %v7560_v27 = vld [vmem:[#allocation10 + $0x5f0] ss:$28 sps:$4 sm:$0xff]   ;;  %v7565_v28 = vld [vmem:[#allocation10 + $0x624] ss:$28 sps:$4 sm:$0xff]  }
 0x36b   :  { %5605 = vmatprep.mubr.bf16.mxu1 %v8444_v33  ;;  %5777 = vmatprep.mubr.bf16.mxu0 %v8444_v33  ;;  %v7562_v53 = vld [vmem:[#allocation10 + $0x5f4] ss:$28 sps:$4 sm:$0xff]   ;;  %v7568_v29 = vld [vmem:[#allocation10 + $0x62c] ss:$28 sps:$4 sm:$0xff]   ;;  %v7563_v30 = vld [vmem:[#allocation10 + $0x620] ss:$28 sps:$4 sm:$0xff]  }
 0x36c   :  { %5606 = vmatmul.mubr.bf16.vlgmr.msra.gmra.mrb[8].mxu1 %v8440_v21  ;;  %5778 = vmatmul.mubr.bf16.vlgmr.msra.gmra.mrb[20].mxu0 %v8440_v21  ;;  %v7566_v31 = vld [vmem:[#allocation10 + $0x628] ss:$28 sps:$4 sm:$0xff]   ;;  %v7571_v15 = vld [vmem:[#allocation10 + $0x65c] ss:$28 sps:$4 sm:$0xff]  }
 0x36d   :  { %5617 = vmatpush1.bf16.msra.mxu1 %v7491_v36  ;;  %5789 = vmatpush1.bf16.msra.mxu0 %v7494_v38  ;;  %v7574_v16 = vld [vmem:[#allocation10 + $0x664] ss:$28 sps:$4 sm:$0xff]   ;;  %v7569_v17 = vld [vmem:[#allocation10 + $0x658] ss:$28 sps:$4 sm:$0xff]  }
 0x36e   :  { %5648 = vmatprep.mubr.bf16.mxu1 %v8446_v35  ;;  %5820 = vmatprep.mubr.bf16.mxu0 %v8446_v35  ;;  %v7572_v19 = vld [vmem:[#allocation10 + $0x660] ss:$28 sps:$4 sm:$0xff]   ;;  %v7577_v36 = vld [vmem:[#allocation10 + $0x694] ss:$28 sps:$4 sm:$0xff]  }
 0x36f   :  { %5618 = vmatprep.subr.bf16.mxu1 %v7499_v39  ;;  %5790 = vmatprep.subr.bf16.mxu0 %v7502_v41  ;;  %v7580_v38 = vld [vmem:[#allocation10 + $0x69c] ss:$28 sps:$4 sm:$0xff]   ;;  %v7575_v39 = vld [vmem:[#allocation10 + $0x690] ss:$28 sps:$4 sm:$0xff]  }
 0x370   :  { %v7578_v41 = vld [vmem:[#allocation10 + $0x698] ss:$28 sps:$4 sm:$0xff]  }
 0x371   :  { %5619 = vmatpush1.bf16.msra.mxu1 %v7497_v43  ;;  %5791 = vmatpush1.bf16.msra.mxu0 %v7500_v44  ;;  %v7583_v43 = vld [vmem:[#allocation10 + $0x6cc] ss:$28 sps:$4 sm:$0xff]   ;;  %v7586_v44 = vld [vmem:[#allocation10 + $0x6d4] ss:$28 sps:$4 sm:$0xff]  }
 0x372   :  { %5620 = vmatprep.subr.bf16.mxu1 %v7505_v45  ;;  %5792 = vmatprep.subr.bf16.mxu0 %v7508_v46  ;;  %v7581_v45 = vld [vmem:[#allocation10 + $0x6c8] ss:$28 sps:$4 sm:$0xff]   ;;  %v7584_v46 = vld [vmem:[#allocation10 + $0x6d0] ss:$28 sps:$4 sm:$0xff]  }
 0x375   :  { %5621 = vmatpush1.bf16.msra.mxu1 %v7503_v47  ;;  %5793 = vmatpush1.bf16.msra.mxu0 %v7506_v48  ;;  %v7589_v47 = vld [vmem:[#allocation10 + $0x704] ss:$28 sps:$4 sm:$0xff]   ;;  %v7592_v48 = vld [vmem:[#allocation10 + $0x70c] ss:$28 sps:$4 sm:$0xff]  }
 0x376   :  { %5622 = vmatprep.subr.bf16.mxu1 %v7511_v49  ;;  %5794 = vmatprep.subr.bf16.mxu0 %v7514_v50  ;;  %v7587_v49 = vld [vmem:[#allocation10 + $0x700] ss:$28 sps:$4 sm:$0xff]   ;;  %v7590_v50 = vld [vmem:[#allocation10 + $0x708] ss:$28 sps:$4 sm:$0xff]  }
 0x379   :  { %5623 = vmatpush1.bf16.msra.mxu1 %v7509_v51  ;;  %5795 = vmatpush1.bf16.msra.mxu0 %v7512_v52  ;;  %v7595_v51 = vld [vmem:[#allocation10 + $0x73c] ss:$28 sps:$4 sm:$0xff]   ;;  %v7598_v52 = vld [vmem:[#allocation10 + $0x744] ss:$28 sps:$4 sm:$0xff]  }
 0x37a   :  { %5624 = vmatprep.subr.bf16.mxu1 %v7517_v55  ;;  %5796 = vmatprep.subr.bf16.mxu0 %v7520_v57  ;;  %v7593_v55 = vld [vmem:[#allocation10 + $0x738] ss:$28 sps:$4 sm:$0xff]   ;;  %v7596_v57 = vld [vmem:[#allocation10 + $0x740] ss:$28 sps:$4 sm:$0xff]  }
 0x37d   :  { %5625 = vmatpush1.bf16.msra.mxu1 %v7515_v58  ;;  %5797 = vmatpush1.bf16.msra.mxu0 %v7518_v59  ;;  %v7601_v58 = vld [vmem:[#allocation10 + $0x774] ss:$28 sps:$4 sm:$0xff]   ;;  %v7604_v59 = vld [vmem:[#allocation10 + $0x77c] ss:$28 sps:$4 sm:$0xff]  }
 0x37e   :  { %5626 = vmatprep.subr.bf16.mxu1 %v7523_v60  ;;  %5798 = vmatprep.subr.bf16.mxu0 %v7526_v61  ;;  %v7599_v60 = vld [vmem:[#allocation10 + $0x770] ss:$28 sps:$4 sm:$0xff]   ;;  %v7602_v61 = vld [vmem:[#allocation10 + $0x778] ss:$28 sps:$4 sm:$0xff]  }
 0x381   :  { %5627 = vmatpush1.bf16.msra.mxu1 %v7521_v62  ;;  %5799 = vmatpush1.bf16.msra.mxu0 %v7524_v63  ;;  %v7607_v62 = vld [vmem:[#allocation10 + $0x7ac] ss:$28 sps:$4 sm:$0xff]   ;;  %v7610_v63 = vld [vmem:[#allocation10 + $0x7b4] ss:$28 sps:$4 sm:$0xff]  }
 0x382   :  { %5628 = vmatprep.subr.bf16.mxu1 %v7529_v0  ;;  %5800 = vmatprep.subr.bf16.mxu0 %v7532_v9  ;;  %v7605_v0 = vld [vmem:[#allocation10 + $0x7a8] ss:$28 sps:$4 sm:$0xff]   ;;  %v7608_v9 = vld [vmem:[#allocation10 + $0x7b0] ss:$28 sps:$4 sm:$0xff]  }
 0x385   :  { %5629 = vmatpush1.bf16.msra.mxu1 %v7527_v1  ;;  %5801 = vmatpush1.bf16.msra.mxu0 %v7530_v2  ;;  %v7613_v1 = vld [vmem:[#allocation10 + $0x7e4] ss:$28 sps:$4 sm:$0xff]   ;;  %v7616_v2 = vld [vmem:[#allocation10 + $0x7ec] ss:$28 sps:$4 sm:$0xff]  }
 0x386   :  { %5630 = vmatprep.subr.bf16.mxu1 %v7535_v4  ;;  %5802 = vmatprep.subr.bf16.mxu0 %v7538_v5  ;;  %v7611_v4 = vld [vmem:[#allocation10 + $0x7e0] ss:$28 sps:$4 sm:$0xff]   ;;  %v7614_v5 = vld [vmem:[#allocation10 + $0x7e8] ss:$28 sps:$4 sm:$0xff]  }
 0x389   :  { %5631 = vmatpush1.bf16.msra.mxu1 %v7533_v6  ;;  %5803 = vmatpush1.bf16.msra.mxu0 %v7536_v7  ;;  %v7619_v6 = vld [vmem:[#allocation10 + $0x81c] ss:$28 sps:$4 sm:$0xff]   ;;  %v7622_v7 = vld [vmem:[#allocation10 + $0x824] ss:$28 sps:$4 sm:$0xff]  }
 0x38a   :  { %5632 = vmatprep.subr.bf16.mxu1 %v7541_v10  ;;  %5804 = vmatprep.subr.bf16.mxu0 %v7544_v11  ;;  %v7617_v10 = vld [vmem:[#allocation10 + $0x818] ss:$28 sps:$4 sm:$0xff]   ;;  %v7620_v11 = vld [vmem:[#allocation10 + $0x820] ss:$28 sps:$4 sm:$0xff]  }
 0x38d   :  { %5633 = vmatpush1.bf16.msra.mxu1 %v7539_v12  ;;  %5805 = vmatpush1.bf16.msra.mxu0 %v7542_v32  ;;  %v7625_v12 = vld [vmem:[#allocation10 + $0x854] ss:$28 sps:$4 sm:$0xff]   ;;  %v7628_v32 = vld [vmem:[#allocation10 + $0x85c] ss:$28 sps:$4 sm:$0xff]  }
 0x38e   :  { %5634 = vmatprep.subr.bf16.mxu1 %v7547_v8  ;;  %5806 = vmatprep.subr.bf16.mxu0 %v7550_v13  ;;  %v7623_v8 = vld [vmem:[#allocation10 + $0x850] ss:$28 sps:$4 sm:$0xff]   ;;  %v7626_v13 = vld [vmem:[#allocation10 + $0x858] ss:$28 sps:$4 sm:$0xff]  }
 0x391   :  { %5635 = vmatpush1.bf16.msra.mxu1 %v7545_v14  ;;  %5807 = vmatpush1.bf16.msra.mxu0 %v7548_v18  ;;  %v7631_v14 = vld [vmem:[#allocation10 + $0x88c] ss:$28 sps:$4 sm:$0xff]   ;;  %v7634_v18 = vld [vmem:[#allocation10 + $0x894] ss:$28 sps:$4 sm:$0xff]  }
 0x392   :  { %5636 = vmatprep.subr.bf16.mxu1 %v7553_v20  ;;  %5808 = vmatprep.subr.bf16.mxu0 %v7556_v23  ;;  %v7629_v20 = vld [vmem:[#allocation10 + $0x888] ss:$28 sps:$4 sm:$0xff]   ;;  %v7632_v23 = vld [vmem:[#allocation10 + $0x890] ss:$28 sps:$4 sm:$0xff]  }
 0x395   :  { %5637 = vmatpush1.bf16.msra.mxu1 %v7551_v24  ;;  %5809 = vmatpush1.bf16.msra.mxu0 %v7554_v37  ;;  %v7637_v24 = vld [vmem:[#allocation10 + $0x8c4] ss:$28 sps:$4 sm:$0xff]   ;;  %v7640_v37 = vld [vmem:[#allocation10 + $0x8cc] ss:$28 sps:$4 sm:$0xff]  }
 0x396   :  { %5638 = vmatprep.subr.bf16.mxu1 %v7559_v25  ;;  %5810 = vmatprep.subr.bf16.mxu0 %v7562_v53  ;;  %v7635_v25 = vld [vmem:[#allocation10 + $0x8c0] ss:$28 sps:$4 sm:$0xff]   ;;  %v7638_v53 = vld [vmem:[#allocation10 + $0x8c8] ss:$28 sps:$4 sm:$0xff]  }
 0x399   :  { %5639 = vmatpush1.bf16.msra.mxu1 %v7557_v26  ;;  %5811 = vmatpush1.bf16.msra.mxu0 %v7560_v27  ;;  %v7643_v26 = vld [vmem:[#allocation10 + $0x8fc] ss:$28 sps:$4 sm:$0xff]   ;;  %v7646_v27 = vld [vmem:[#allocation10 + $0x904] ss:$28 sps:$4 sm:$0xff]  }
 0x39a   :  { %5640 = vmatprep.subr.bf16.mxu1 %v7565_v28  ;;  %5812 = vmatprep.subr.bf16.mxu0 %v7568_v29  ;;  %v7641_v28 = vld [vmem:[#allocation10 + $0x8f8] ss:$28 sps:$4 sm:$0xff]   ;;  %v7644_v29 = vld [vmem:[#allocation10 + $0x900] ss:$28 sps:$4 sm:$0xff]  }
 0x39d   :  { %5641 = vmatpush1.bf16.msra.mxu1 %v7563_v30  ;;  %5813 = vmatpush1.bf16.msra.mxu0 %v7566_v31  ;;  %v7649_v30 = vld [vmem:[#allocation10 + $0x934] ss:$28 sps:$4 sm:$0xff]   ;;  %v7652_v31 = vld [vmem:[#allocation10 + $0x93c] ss:$28 sps:$4 sm:$0xff]  }
 0x39e   :  { %5642 = vmatprep.subr.bf16.mxu1 %v7571_v15  ;;  %5814 = vmatprep.subr.bf16.mxu0 %v7574_v16  ;;  %v7647_v15 = vld [vmem:[#allocation10 + $0x930] ss:$28 sps:$4 sm:$0xff]   ;;  %v7650_v16 = vld [vmem:[#allocation10 + $0x938] ss:$28 sps:$4 sm:$0xff]  }
 0x3a1   :  { %5643 = vmatpush1.bf16.msra.mxu1 %v7569_v17  ;;  %5815 = vmatpush1.bf16.msra.mxu0 %v7572_v19  ;;  %v7655_v17 = vld [vmem:[#allocation10 + $0x96c] ss:$28 sps:$4 sm:$0xff]   ;;  %v7658_v19 = vld [vmem:[#allocation10 + $0x974] ss:$28 sps:$4 sm:$0xff]  }
 0x3a2   :  { %5644 = vmatprep.subr.bf16.mxu1 %v7577_v36  ;;  %5816 = vmatprep.subr.bf16.mxu0 %v7580_v38  ;;  %v7653_v36 = vld [vmem:[#allocation10 + $0x968] ss:$28 sps:$4 sm:$0xff]   ;;  %v7656_v38 = vld [vmem:[#allocation10 + $0x970] ss:$28 sps:$4 sm:$0xff]  }
 0x3a5   :  { %5645 = vmatpush1.bf16.msra.mxu1 %v7575_v39  ;;  %5817 = vmatpush1.bf16.msra.mxu0 %v7578_v41  ;;  %v7661_v39 = vld [vmem:[#allocation10 + $0x9a4] ss:$28 sps:$4 sm:$0xff]   ;;  %v7664_v41 = vld [vmem:[#allocation10 + $0x9ac] ss:$28 sps:$4 sm:$0xff]  }
 0x3a6   :  { %5646 = vmatprep.subr.bf16.mxu1 %v7583_v43  ;;  %5818 = vmatprep.subr.bf16.mxu0 %v7586_v44  ;;  %v7659_v43 = vld [vmem:[#allocation10 + $0x9a0] ss:$28 sps:$4 sm:$0xff]   ;;  %v7662_v44 = vld [vmem:[#allocation10 + $0x9a8] ss:$28 sps:$4 sm:$0xff]  }
 0x3a9   :  { %5647 = vmatpush1.bf16.msra.mxu1 %v7581_v45  ;;  %5819 = vmatpush1.bf16.msra.mxu0 %v7584_v46  ;;  %v7667_v45 = vld [vmem:[#allocation10 + $0x9dc] ss:$28 sps:$4 sm:$0xff]   ;;  %v7670_v46 = vld [vmem:[#allocation10 + $0x9e4] ss:$28 sps:$4 sm:$0xff]  }
 0x3aa   :  { %5659 = vmatprep.subr.bf16.mxu1 %v7589_v47  ;;  %5831 = vmatprep.subr.bf16.mxu0 %v7592_v48  ;;  %v1051_v47 = vsub.s32 4, %v8354_v34  ;;  %v1059_v48 = vsub.s32 6, %v8354_v34 }
 0x3ac   :  { %5649 = vmatmul.mubr.bf16.vlgmr.msra.gmra.mrb[8].mxu1 %v8442_v22  ;;  %5821 = vmatmul.mubr.bf16.vlgmr.msra.gmra.mrb[20].mxu0 %v8442_v22 }
 0x3ad   :  { %5660 = vmatpush1.bf16.msra.mxu1 %v7587_v49  ;;  %5832 = vmatpush1.bf16.msra.mxu0 %v7590_v50  ;;  %v1055_v49 = vsub.s32 5, %v8354_v34  ;;  %v1063_v50 = vsub.s32 7, %v8354_v34 }
 0x3ae   :  { %5661 = vmatprep.subr.bf16.mxu1 %v7595_v51  ;;  %5833 = vmatprep.subr.bf16.mxu0 %v7598_v52  ;;  %v7665_v51 = vld [vmem:[#allocation10 + $0x9d8] ss:$28 sps:$4 sm:$0xff]   ;;  %v7668_v52 = vld [vmem:[#allocation10 + $0x9e0] ss:$28 sps:$4 sm:$0xff]  }
 0x3b1   :  { %5662 = vmatpush1.bf16.msra.mxu1 %v7593_v55  ;;  %5834 = vmatpush1.bf16.msra.mxu0 %v7596_v57  ;;  %v1052_v55 = vrot.slane %v8430_v3, %v1051_v47  ;;  %v7673_v57 = vld [vmem:[#allocation10 + $0xa14] ss:$28 sps:$4 sm:$0xff]  }
 0x3b2   :  { %5663 = vmatprep.subr.bf16.mxu1 %v7601_v58  ;;  %5835 = vmatprep.subr.bf16.mxu0 %v7604_v59  ;;  %v7676_v58 = vld [vmem:[#allocation10 + $0xa1c] ss:$28 sps:$4 sm:$0xff]   ;;  %v1060_v59 = vrot.slane %v8430_v3, %v1059_v48 }
 0x3b5   :  { %5664 = vmatpush1.bf16.msra.mxu1 %v7599_v60  ;;  %5836 = vmatpush1.bf16.msra.mxu0 %v7602_v61  ;;  %v1056_v60 = vrot.slane %v8430_v3, %v1055_v49  ;;  %v1064_v61 = vrot.slane %v8430_v3, %v1063_v50  ;;  %v7700_v50 = vld [vmem:[#allocation10 + $0xafc] ss:$28 sps:$4 sm:$0xff]  }
 0x3b6   :  { %5665 = vmatprep.subr.bf16.mxu1 %v7607_v62  ;;  %5837 = vmatprep.subr.bf16.mxu0 %v7610_v63  ;;  %v7671_v63 = vld [vmem:[#allocation10 + $0xa10] ss:$28 sps:$4 sm:$0xff]  }
 0x3b9   :  { %5666 = vmatpush1.bf16.msra.mxu1 %v7605_v0  ;;  %5838 = vmatpush1.bf16.msra.mxu0 %v7608_v9  ;;  %v7674_v0 = vld [vmem:[#allocation10 + $0xa18] ss:$28 sps:$4 sm:$0xff]  }
 0x3ba   :  { %5667 = vmatprep.subr.bf16.mxu1 %v7613_v1  ;;  %5839 = vmatprep.subr.bf16.mxu0 %v7616_v2 }
 0x3bd   :  { %5668 = vmatpush1.bf16.msra.mxu1 %v7611_v4  ;;  %5840 = vmatpush1.bf16.msra.mxu0 %v7614_v5  ;;  %v7679_v4 = vld [vmem:[#allocation10 + $0xa4c] ss:$28 sps:$4 sm:$0xff]   ;;  %v7682_v5 = vld [vmem:[#allocation10 + $0xa54] ss:$28 sps:$4 sm:$0xff]  }
 0x3be   :  { %5669 = vmatprep.subr.bf16.mxu1 %v7619_v6  ;;  %5841 = vmatprep.subr.bf16.mxu0 %v7622_v7 }
 0x3c1   :  { %5670 = vmatpush1.bf16.msra.mxu1 %v7617_v10  ;;  %5842 = vmatpush1.bf16.msra.mxu0 %v7620_v11 }
 0x3c2   :  { %5671 = vmatprep.subr.bf16.mxu1 %v7625_v12  ;;  %5843 = vmatprep.subr.bf16.mxu0 %v7628_v32 }
 0x3c5   :  { %5672 = vmatpush1.bf16.msra.mxu1 %v7623_v8  ;;  %5844 = vmatpush1.bf16.msra.mxu0 %v7626_v13 }
 0x3c6   :  { %5673 = vmatprep.subr.bf16.mxu1 %v7631_v14  ;;  %5845 = vmatprep.subr.bf16.mxu0 %v7634_v18 }
 0x3c9   :  { %5674 = vmatpush1.bf16.msra.mxu1 %v7629_v20  ;;  %5846 = vmatpush1.bf16.msra.mxu0 %v7632_v23  ;;  %v7677_v20 = vld [vmem:[#allocation10 + $0xa48] ss:$28 sps:$4 sm:$0xff]   ;;  %v7680_v23 = vld [vmem:[#allocation10 + $0xa50] ss:$28 sps:$4 sm:$0xff]  }
 0x3ca   :  { %5675 = vmatprep.subr.bf16.mxu1 %v7637_v24  ;;  %5847 = vmatprep.subr.bf16.mxu0 %v7640_v37 }
 0x3cd   :  { %5676 = vmatpush1.bf16.msra.mxu1 %v7635_v25  ;;  %5848 = vmatpush1.bf16.msra.mxu0 %v7638_v53  ;;  %v7685_v53 = vld [vmem:[#allocation10 + $0xa84] ss:$28 sps:$4 sm:$0xff]  }
 0x3ce   :  { %5677 = vmatprep.subr.bf16.mxu1 %v7643_v26  ;;  %5849 = vmatprep.subr.bf16.mxu0 %v7646_v27  ;;  %v7688_v26 = vld [vmem:[#allocation10 + $0xa8c] ss:$28 sps:$4 sm:$0xff]  }
 0x3d1   :  { %5678 = vmatpush1.bf16.msra.mxu1 %v7641_v28  ;;  %5850 = vmatpush1.bf16.msra.mxu0 %v7644_v29 }
 0x3d2   :  { %5679 = vmatprep.subr.bf16.mxu1 %v7649_v30  ;;  %5851 = vmatprep.subr.bf16.mxu0 %v7652_v31 }
 0x3d5   :  { %5680 = vmatpush1.bf16.msra.mxu1 %v7647_v15  ;;  %5852 = vmatpush1.bf16.msra.mxu0 %v7650_v16 }
 0x3d6   :  { %5681 = vmatprep.subr.bf16.mxu1 %v7655_v17  ;;  %5853 = vmatprep.subr.bf16.mxu0 %v7658_v19 }
 0x3d9   :  { %5682 = vmatpush1.bf16.msra.mxu1 %v7653_v36  ;;  %5854 = vmatpush1.bf16.msra.mxu0 %v7656_v38  ;;  %v7683_v36 = vld [vmem:[#allocation10 + $0xa80] ss:$28 sps:$4 sm:$0xff]   ;;  %v7686_v38 = vld [vmem:[#allocation10 + $0xa88] ss:$28 sps:$4 sm:$0xff]  }
 0x3da   :  { %5683 = vmatprep.subr.bf16.mxu1 %v7661_v39  ;;  %5855 = vmatprep.subr.bf16.mxu0 %v7664_v41  ;;  %v7691_v41 = vld [vmem:[#allocation10 + $0xabc] ss:$28 sps:$4 sm:$0xff]  }
 0x3dd   :  { %5684 = vmatpush1.bf16.msra.mxu1 %v7659_v43  ;;  %5856 = vmatpush1.bf16.msra.mxu0 %v7662_v44  ;;  %v7694_v43 = vld [vmem:[#allocation10 + $0xac4] ss:$28 sps:$4 sm:$0xff]   ;;  %v7689_v44 = vld [vmem:[#allocation10 + $0xab8] ss:$28 sps:$4 sm:$0xff]  }
 0x3de   :  { %5685 = vmatprep.subr.bf16.mxu1 %v7667_v45  ;;  %5857 = vmatprep.subr.bf16.mxu0 %v7670_v46  ;;  %v7692_v45 = vld [vmem:[#allocation10 + $0xac0] ss:$28 sps:$4 sm:$0xff]   ;;  %v7697_v46 = vld [vmem:[#allocation10 + $0xaf4] ss:$28 sps:$4 sm:$0xff]  }
 0x3e1   :  { %5686 = vmatpush1.bf16.msra.mxu1 %v7665_v51  ;;  %5858 = vmatpush1.bf16.msra.mxu0 %v7668_v52  ;;  %v2602_v62 = vpop.f32.mrb[4].mxu1  ;;  %v7695_v51 = vld [vmem:[#allocation10 + $0xaf0] ss:$28 sps:$4 sm:$0xff]   ;;  %v7698_v52 = vld [vmem:[#allocation10 + $0xaf8] ss:$28 sps:$4 sm:$0xff]  }
 0x3e2   :  { %v7182_v9 = vadd.f32 %v2602_v62, %v1052_v55  ;;  %v2688_v1 = vpop.f32.mrb[16].mxu0  ;;  %v2604_v2 = vpop.f32.mrb[5].mxu1  ;;  %5687 = vmatprep.subr.bf16.mxu1 %v7673_v57  ;;  %5859 = vmatprep.subr.bf16.mxu0 %v7676_v58  ;;  %v7706_v57 = vld [vmem:[#allocation10 + $0xb34] ss:$28 sps:$4 sm:$0xff]   ;;  %v7701_v58 = vld [vmem:[#allocation10 + $0xb28] ss:$28 sps:$4 sm:$0xff]  }
 0x3e3   :  { %v7186_v6 = vadd.f32 %v2688_v1, %v1060_v59  ;;  %v7183_v7 = vadd.f32 %v2604_v2, %v1056_v60  ;;  %v2690_v10 = vpop.f32.mrb[17].mxu0  ;;  %v2606_v11 = vpop.f32.mrb[6].mxu1  ;;  %v7707_v62 = vld [vmem:[#allocation10 + $0xb60] ss:$28 sps:$4 sm:$0xff]   ;;  %v7713_v1 = vld [vmem:[#allocation10 + $0xb98] ss:$28 sps:$4 sm:$0xff]  }
 0x3e4   :  { %v7187_v12 = vadd.f32 %v2690_v10, %v1064_v61  ;;  %v7184_v32 = vadd.f32 %v2606_v11, %v1052_v55  ;;  %v2692_v8 = vpop.f32.mrb[18].mxu0  ;;  %v2608_v3 = vpop.f32.mrb[7].mxu1  ;;  %v2701_v24 = vmax.f32 %v7182_v9, 0.0  ;;  %v7703_v55 = vld [vmem:[#allocation10 + $0xb2c] ss:$28 sps:$4 sm:$0xff]  }
 0x3e5   :  { %v7188_v13 = vadd.f32 %v2692_v8, %v1060_v59  ;;  %v7185_v14 = vadd.f32 %v2608_v3, %v1056_v60  ;;  %v2694_v18 = vpop.f32.mrb[19].mxu0  ;;  %5688 = vmatpush1.bf16.msra.mxu1 %v7671_v63  ;;  %5860 = vmatpush1.bf16.msra.mxu0 %v7674_v0  ;;  %v2703_v27 = vmax.f32 %v7186_v6, 0.0  ;;  %v2702_v28 = vmax.f32 %v7183_v7, 0.0  ;;  %v7704_v59 = vld [vmem:[#allocation10 + $0xb30] ss:$28 sps:$4 sm:$0xff]  }
 0x3e6   :  { %v2709_v37 = vmax.f32 %v7184_v32, 0.0  ;;  %v7189_v25 = vadd.f32 %v2694_v18, %v1064_v61  ;;  %5689 = vmatprep.subr.bf16.mxu1 %v7679_v4  ;;  %5861 = vmatprep.subr.bf16.mxu0 %v7682_v5  ;;  %v2704_v31 = vmax.f32 %v7187_v12, 0.0  ;;  %v7709_v60 = vld [vmem:[#allocation10 + $0xb64] ss:$28 sps:$4 sm:$0xff]   ;;  %v7712_v61 = vld [vmem:[#allocation10 + $0xb6c] ss:$28 sps:$4 sm:$0xff]  }
 0x3e7   :  { %v2711_v29 = vmax.f32 %v7188_v13, 0.0  ;;  %v2710_v30 = vmax.f32 %v7185_v14, 0.0  ;;  %v7710_v63 = vld [vmem:[#allocation10 + $0xb68] ss:$28 sps:$4 sm:$0xff]   ;;  %v7715_v0 = vld [vmem:[#allocation10 + $0xb9c] ss:$28 sps:$4 sm:$0xff]  }
 0x3e8   :  { %v8470_v15 = vpack.c.bf16 %v2709_v37, %v2701_v24  ;;  %v2712_v16 = vmax.f32 %v7189_v25, 0.0  ;;  %v7718_v9 = vld [vmem:[#allocation10 + $0xba4] ss:$28 sps:$4 sm:$0xff]   ;;  %v7721_v4 = vld [vmem:[#allocation10 + $0xbd4] ss:$28 sps:$4 sm:$0xff]  }
 0x3e9   :  { %v8472_v17 = vpack.c.bf16 %v2711_v29, %v2703_v27  ;;  %v8474_v19 = vpack.c.bf16 %v2710_v30, %v2702_v28  ;;  %5690 = vmatpush1.bf16.msra.mxu1 %v7677_v20  ;;  %5862 = vmatpush1.bf16.msra.mxu0 %v7680_v23  ;;  %v7716_v2 = vld [vmem:[#allocation10 + $0xba0] ss:$28 sps:$4 sm:$0xff]   ;;  %v7719_v6 = vld [vmem:[#allocation10 + $0xbd0] ss:$28 sps:$4 sm:$0xff]   ;;  %v7722_v7 = vld [vmem:[#allocation10 + $0xbd8] ss:$28 sps:$4 sm:$0xff]  }
 0x3ea   :  { %v8476_v39 = vpack.c.bf16 %v2712_v16, %v2704_v31  ;;  %5702 = vmatprep.subr.bf16.mxu1 %v7685_v53  ;;  %5874 = vmatprep.subr.bf16.mxu0 %v7688_v26  ;;  %v7724_v5 = vld [vmem:[#allocation10 + $0xbdc] ss:$28 sps:$4 sm:$0xff]   ;;  %v7727_v10 = vld [vmem:[#allocation10 + $0xc0c] ss:$28 sps:$4 sm:$0xff]   ;;  %v7730_v11 = vld [vmem:[#allocation10 + $0xc14] ss:$28 sps:$4 sm:$0xff]  }
 0x3eb   :  { %5691 = vmatprep.mubr.bf16.mxu1 %v8474_v19  ;;  %5863 = vmatprep.mubr.bf16.mxu0 %v8474_v19  ;;  %v7725_v12 = vld [vmem:[#allocation10 + $0xc08] ss:$28 sps:$4 sm:$0xff]   ;;  %v7728_v32 = vld [vmem:[#allocation10 + $0xc10] ss:$28 sps:$4 sm:$0xff]   ;;  %v7731_v13 = vld [vmem:[#allocation10 + $0xc40] ss:$28 sps:$4 sm:$0xff]  }
 0x3ec   :  { %5692 = vmatmul.mubr.bf16.vlgmr.msra.gmra.mrb[8].mxu1 %v8470_v15  ;;  %5864 = vmatmul.mubr.bf16.vlgmr.msra.gmra.mrb[20].mxu0 %v8470_v15  ;;  %v7733_v8 = vld [vmem:[#allocation10 + $0xc44] ss:$28 sps:$4 sm:$0xff]   ;;  %v7736_v3 = vld [vmem:[#allocation10 + $0xc4c] ss:$28 sps:$4 sm:$0xff]   ;;  %v7739_v18 = vld [vmem:[#allocation10 + $0xc7c] ss:$28 sps:$4 sm:$0xff]  }
 0x3ed   :  { %5703 = vmatpush1.bf16.msra.mxu1 %v7683_v36  ;;  %5875 = vmatpush1.bf16.msra.mxu0 %v7686_v38  ;;  %v7734_v14 = vld [vmem:[#allocation10 + $0xc48] ss:$28 sps:$4 sm:$0xff]   ;;  %v7737_v23 = vld [vmem:[#allocation10 + $0xc78] ss:$28 sps:$4 sm:$0xff]   ;;  %v7740_v24 = vld [vmem:[#allocation10 + $0xc80] ss:$28 sps:$4 sm:$0xff]  }
 0x3ee   :  { %5734 = vmatprep.mubr.bf16.mxu1 %v8476_v39  ;;  %5906 = vmatprep.mubr.bf16.mxu0 %v8476_v39  ;;  %v7742_v20 = vld [vmem:[#allocation10 + $0xc84] ss:$28 sps:$4 sm:$0xff]   ;;  %v7745_v37 = vld [vmem:[#allocation10 + $0xcb4] ss:$28 sps:$4 sm:$0xff]   ;;  %v7748_v25 = vld [vmem:[#allocation10 + $0xcbc] ss:$28 sps:$4 sm:$0xff]  }
 0x3ef   :  { %5704 = vmatprep.subr.bf16.mxu1 %v7691_v41  ;;  %5876 = vmatprep.subr.bf16.mxu0 %v7694_v43  ;;  %v7743_v53 = vld [vmem:[#allocation10 + $0xcb0] ss:$28 sps:$4 sm:$0xff]   ;;  %v7746_v26 = vld [vmem:[#allocation10 + $0xcb8] ss:$28 sps:$4 sm:$0xff]   ;;  %v7749_v29 = vld [vmem:[#allocation10 + $0xce8] ss:$28 sps:$4 sm:$0xff]  }
 0x3f0   :  { %v7751_v27 = vld [vmem:[#allocation10 + $0xcec] ss:$28 sps:$4 sm:$0xff]   ;;  %v7754_v28 = vld [vmem:[#allocation10 + $0xcf4] ss:$28 sps:$4 sm:$0xff]   ;;  %v7757_v31 = vld [vmem:[#allocation10 + $0xd24] ss:$28 sps:$4 sm:$0xff]  }
 0x3f1   :  { %5705 = vmatpush1.bf16.msra.mxu1 %v7689_v44  ;;  %5877 = vmatpush1.bf16.msra.mxu0 %v7692_v45  ;;  %v7752_v30 = vld [vmem:[#allocation10 + $0xcf0] ss:$28 sps:$4 sm:$0xff]   ;;  %v7755_v36 = vld [vmem:[#allocation10 + $0xd20] ss:$28 sps:$4 sm:$0xff]   ;;  %v7758_v38 = vld [vmem:[#allocation10 + $0xd28] ss:$28 sps:$4 sm:$0xff]  }
 0x3f2   :  { %5706 = vmatprep.subr.bf16.mxu1 %v7697_v46  ;;  %5878 = vmatprep.subr.bf16.mxu0 %v7700_v50  ;;  %v7760_v16 = vld [vmem:[#allocation10 + $0xd2c] ss:$28 sps:$4 sm:$0xff]   ;;  %v7763_v41 = vld [vmem:[#allocation10 + $0xd5c] ss:$28 sps:$4 sm:$0xff]   ;;  %v7766_v43 = vld [vmem:[#allocation10 + $0xd64] ss:$28 sps:$4 sm:$0xff]  }
 0x3f3   :  { %v7761_v44 = vld [vmem:[#allocation10 + $0xd58] ss:$28 sps:$4 sm:$0xff]   ;;  %v7764_v45 = vld [vmem:[#allocation10 + $0xd60] ss:$28 sps:$4 sm:$0xff]  }
 0x3f4   :  { %v7769_v46 = vld [vmem:[#allocation10 + $0xd94] ss:$28 sps:$4 sm:$0xff]   ;;  %v7772_v50 = vld [vmem:[#allocation10 + $0xd9c] ss:$28 sps:$4 sm:$0xff]  }
 0x3f5   :  { %5707 = vmatpush1.bf16.msra.mxu1 %v7695_v51  ;;  %5879 = vmatpush1.bf16.msra.mxu0 %v7698_v52  ;;  %v7767_v51 = vld [vmem:[#allocation10 + $0xd90] ss:$28 sps:$4 sm:$0xff]   ;;  %v7770_v52 = vld [vmem:[#allocation10 + $0xd98] ss:$28 sps:$4 sm:$0xff]  }
 0x3f6   :  { %5708 = vmatprep.subr.bf16.mxu1 %v7703_v55  ;;  %5880 = vmatprep.subr.bf16.mxu0 %v7706_v57  ;;  %v7775_v55 = vld [vmem:[#allocation10 + $0xdcc] ss:$28 sps:$4 sm:$0xff]   ;;  %v7778_v57 = vld [vmem:[#allocation10 + $0xdd4] ss:$28 sps:$4 sm:$0xff]  }
 0x3f9   :  { %5709 = vmatpush1.bf16.msra.mxu1 %v7701_v58  ;;  %5881 = vmatpush1.bf16.msra.mxu0 %v7704_v59  ;;  %v7773_v58 = vld [vmem:[#allocation10 + $0xdc8] ss:$28 sps:$4 sm:$0xff]   ;;  %v7776_v59 = vld [vmem:[#allocation10 + $0xdd0] ss:$28 sps:$4 sm:$0xff]  }
 0x3fa   :  { %5710 = vmatprep.subr.bf16.mxu1 %v7709_v60  ;;  %5882 = vmatprep.subr.bf16.mxu0 %v7712_v61  ;;  %v7781_v60 = vld [vmem:[#allocation10 + $0x14] ss:$28 sps:$4 sm:$0xff]  }
 0x3fb   :  { %v7782_v61 = vld [vmem:[#allocation10 + $0x1d8] ss:$28 sps:$4 sm:$0xff]  }
 0x3fd   :  { %5711 = vmatpush1.bf16.msra.mxu1 %v7707_v62  ;;  %5883 = vmatpush1.bf16.msra.mxu0 %v7710_v63  ;;  %v7779_v62 = vld [vmem:[#allocation10 + $0x10] ss:$28 sps:$4 sm:$0xff]   ;;  %v7783_v63 = vld [vmem:[#allocation10 + $0x18] ss:$28 sps:$4 sm:$0xff]  }
 0x3fe   :  { %5712 = vmatprep.subr.bf16.mxu1 %v7715_v0  ;;  %5884 = vmatprep.subr.bf16.mxu0 %v7718_v9  ;;  %v7786_v0 = vld [vmem:[#allocation10 + $0x4c] ss:$28 sps:$4 sm:$0xff]  }
 0x3ff   :  { %v7787_v9 = vld [vmem:[#allocation10 + $0x210] ss:$28 sps:$4 sm:$0xff]  }
 0x401   :  { %5713 = vmatpush1.bf16.msra.mxu1 %v7713_v1  ;;  %5885 = vmatpush1.bf16.msra.mxu0 %v7716_v2  ;;  %v7784_v1 = vld [vmem:[#allocation10 + $0x48] ss:$28 sps:$4 sm:$0xff]   ;;  %v7788_v2 = vld [vmem:[#allocation10 + $0x50] ss:$28 sps:$4 sm:$0xff]  }
 0x402   :  { %5714 = vmatprep.subr.bf16.mxu1 %v7721_v4  ;;  %5886 = vmatprep.subr.bf16.mxu0 %v7724_v5  ;;  %v7791_v4 = vld [vmem:[#allocation10 + $0x84] ss:$28 sps:$4 sm:$0xff]  }
 0x403   :  { %v7792_v5 = vld [vmem:[#allocation10 + $0x248] ss:$28 sps:$4 sm:$0xff]  }
 0x405   :  { %5715 = vmatpush1.bf16.msra.mxu1 %v7719_v6  ;;  %5887 = vmatpush1.bf16.msra.mxu0 %v7722_v7  ;;  %v7789_v6 = vld [vmem:[#allocation10 + $0x80] ss:$28 sps:$4 sm:$0xff]   ;;  %v7793_v7 = vld [vmem:[#allocation10 + $0x88] ss:$28 sps:$4 sm:$0xff]  }
 0x406   :  { %5716 = vmatprep.subr.bf16.mxu1 %v7727_v10  ;;  %5888 = vmatprep.subr.bf16.mxu0 %v7730_v11  ;;  %v7796_v10 = vld [vmem:[#allocation10 + $0xbc] ss:$28 sps:$4 sm:$0xff]  }
 0x407   :  { %v7797_v11 = vld [vmem:[#allocation10 + $0x280] ss:$28 sps:$4 sm:$0xff]  }
 0x409   :  { %5717 = vmatpush1.bf16.msra.mxu1 %v7725_v12  ;;  %5889 = vmatpush1.bf16.msra.mxu0 %v7728_v32  ;;  %v7794_v12 = vld [vmem:[#allocation10 + $0xb8] ss:$28 sps:$4 sm:$0xff]   ;;  %v7798_v32 = vld [vmem:[#allocation10 + $0xc0] ss:$28 sps:$4 sm:$0xff]  }
 0x40a   :  { %5718 = vmatprep.subr.bf16.mxu1 %v7733_v8  ;;  %5890 = vmatprep.subr.bf16.mxu0 %v7736_v3  ;;  %v7801_v8 = vld [vmem:[#allocation10 + $0xf4] ss:$28 sps:$4 sm:$0xff]  }
 0x40b   :  { %v7799_v3 = vld [vmem:[#allocation10 + $0xf0] ss:$28 sps:$4 sm:$0xff]  }
 0x40d   :  { %5719 = vmatpush1.bf16.msra.mxu1 %v7731_v13  ;;  %5891 = vmatpush1.bf16.msra.mxu0 %v7734_v14  ;;  %v7803_v13 = vld [vmem:[#allocation10 + $0xf8] ss:$28 sps:$4 sm:$0xff]   ;;  %v7806_v14 = vld [vmem:[#allocation10 + $0x12c] ss:$28 sps:$4 sm:$0xff]  }
 0x40e   :  { %5720 = vmatprep.subr.bf16.mxu1 %v7739_v18  ;;  %5892 = vmatprep.subr.bf16.mxu0 %v7742_v20  ;;  %v7807_v18 = vld [vmem:[#allocation10 + $0x2f0] ss:$28 sps:$4 sm:$0xff]   ;;  %v7804_v20 = vld [vmem:[#allocation10 + $0x128] ss:$28 sps:$4 sm:$0xff]  }
 0x411   :  { %5721 = vmatpush1.bf16.msra.mxu1 %v7737_v23  ;;  %5893 = vmatpush1.bf16.msra.mxu0 %v7740_v24  ;;  %v7808_v23 = vld [vmem:[#allocation10 + $0x130] ss:$28 sps:$4 sm:$0xff]   ;;  %v7811_v24 = vld [vmem:[#allocation10 + $0x164] ss:$28 sps:$4 sm:$0xff]  }
 0x412   :  { %5722 = vmatprep.subr.bf16.mxu1 %v7745_v37  ;;  %5894 = vmatprep.subr.bf16.mxu0 %v7748_v25  ;;  %v7812_v37 = vld [vmem:[#allocation10 + $0x328] ss:$28 sps:$4 sm:$0xff]   ;;  %v7809_v25 = vld [vmem:[#allocation10 + $0x160] ss:$28 sps:$4 sm:$0xff]  }
 0x415   :  { %5723 = vmatpush1.bf16.msra.mxu1 %v7743_v53  ;;  %5895 = vmatpush1.bf16.msra.mxu0 %v7746_v26  ;;  %v7813_v53 = vld [vmem:[#allocation10 + $0x168] ss:$28 sps:$4 sm:$0xff]   ;;  %v7816_v26 = vld [vmem:[#allocation10 + $0x19c] ss:$28 sps:$4 sm:$0xff]  }
 0x416   :  { %5724 = vmatprep.subr.bf16.mxu1 %v7751_v27  ;;  %5896 = vmatprep.subr.bf16.mxu0 %v7754_v28  ;;  %v7817_v27 = vld [vmem:[#allocation10 + $0x360] ss:$28 sps:$4 sm:$0xff]   ;;  %v7814_v28 = vld [vmem:[#allocation10 + $0x198] ss:$28 sps:$4 sm:$0xff]  }
 0x419   :  { %5725 = vmatpush1.bf16.msra.mxu1 %v7749_v29  ;;  %5897 = vmatpush1.bf16.msra.mxu0 %v7752_v30  ;;  %v7818_v29 = vld [vmem:[#allocation10 + $0x1a0] ss:$28 sps:$4 sm:$0xff]   ;;  %v7821_v30 = vld [vmem:[#allocation10 + $0x1d4] ss:$28 sps:$4 sm:$0xff]  }
 0x41a   :  { %5726 = vmatprep.subr.bf16.mxu1 %v7757_v31  ;;  %5898 = vmatprep.subr.bf16.mxu0 %v7760_v16  ;;  %v7822_v31 = vld [vmem:[#allocation10 + $0x558] ss:$28 sps:$4 sm:$0xff]   ;;  %v7819_v16 = vld [vmem:[#allocation10 + $0x1d0] ss:$28 sps:$4 sm:$0xff]  }
 0x41d   :  { %5727 = vmatpush1.bf16.msra.mxu1 %v7755_v36  ;;  %5899 = vmatpush1.bf16.msra.mxu0 %v7758_v38  ;;  %v7823_v36 = vld [vmem:[#allocation10 + $0x398] ss:$28 sps:$4 sm:$0xff]   ;;  %v7826_v38 = vld [vmem:[#allocation10 + $0x20c] ss:$28 sps:$4 sm:$0xff]  }
 0x41e   :  { %5728 = vmatprep.subr.bf16.mxu1 %v7763_v41  ;;  %5900 = vmatprep.subr.bf16.mxu0 %v7766_v43  ;;  %v7827_v41 = vld [vmem:[#allocation10 + $0x590] ss:$28 sps:$4 sm:$0xff]   ;;  %v7824_v43 = vld [vmem:[#allocation10 + $0x208] ss:$28 sps:$4 sm:$0xff]  }
 0x421   :  { %5729 = vmatpush1.bf16.msra.mxu1 %v7761_v44  ;;  %5901 = vmatpush1.bf16.msra.mxu0 %v7764_v45  ;;  %v7828_v44 = vld [vmem:[#allocation10 + $0x3d0] ss:$28 sps:$4 sm:$0xff]   ;;  %v7831_v45 = vld [vmem:[#allocation10 + $0x244] ss:$28 sps:$4 sm:$0xff]  }
 0x422   :  { %5730 = vmatprep.subr.bf16.mxu1 %v7769_v46  ;;  %5902 = vmatprep.subr.bf16.mxu0 %v7772_v50  ;;  %v7832_v46 = vld [vmem:[#allocation10 + $0x5c8] ss:$28 sps:$4 sm:$0xff]   ;;  %v7829_v50 = vld [vmem:[#allocation10 + $0x240] ss:$28 sps:$4 sm:$0xff]  }
 0x425   :  { %5731 = vmatpush1.bf16.msra.mxu1 %v7767_v51  ;;  %5903 = vmatpush1.bf16.msra.mxu0 %v7770_v52  ;;  %v7833_v51 = vld [vmem:[#allocation10 + $0x408] ss:$28 sps:$4 sm:$0xff]   ;;  %v7836_v52 = vld [vmem:[#allocation10 + $0x27c] ss:$28 sps:$4 sm:$0xff]  }
 0x426   :  { %5732 = vmatprep.subr.bf16.mxu1 %v7775_v55  ;;  %5904 = vmatprep.subr.bf16.mxu0 %v7778_v57  ;;  %v7837_v55 = vld [vmem:[#allocation10 + $0x600] ss:$28 sps:$4 sm:$0xff]   ;;  %v7834_v57 = vld [vmem:[#allocation10 + $0x278] ss:$28 sps:$4 sm:$0xff]  }
 0x429   :  { %5733 = vmatpush1.bf16.msra.mxu1 %v7773_v58  ;;  %5905 = vmatpush1.bf16.msra.mxu0 %v7776_v59  ;;  %v7838_v58 = vld [vmem:[#allocation10 + $0x440] ss:$28 sps:$4 sm:$0xff]   ;;  %v7841_v59 = vld [vmem:[#allocation10 + $0x2b4] ss:$28 sps:$4 sm:$0xff]  }
 0x42a   :  { %5917 = vmatprep.subr.bf16.mxu1 %v7781_v60  ;;  %7086 = vmatprep.subr.bf16.mxu0 %v7782_v61  ;;  %v7842_v60 = vld [vmem:[#allocation10 + $0x638] ss:$28 sps:$4 sm:$0xff]   ;;  %v7839_v61 = vld [vmem:[#allocation10 + $0x2b0] ss:$28 sps:$4 sm:$0xff]  }
 0x42c   :  { %5735 = vmatmul.mubr.bf16.vlgmr.msra.gmra.mrb[8].mxu1 %v8472_v17  ;;  %5907 = vmatmul.mubr.bf16.vlgmr.msra.gmra.mrb[20].mxu0 %v8472_v17 }
 0x42d   :  { %5918 = vmatpush1.bf16.msra.mxu1 %v7779_v62  ;;  %5949 = vmatprep.mubr.bf16.mxu1 %v8444_v33  ;;  %v7843_v62 = vld [vmem:[#allocation10 + $0x478] ss:$28 sps:$4 sm:$0xff]  }
 0x42e   :  { %7087 = vmatpush3.bf16.msra.mxu0 %v7783_v63  ;;  %6121 = vmatprep.mubr.bf16.mxu0 %v8444_v33  ;;  %v7802_v33 = vld [vmem:[#allocation10 + $0x2b8] ss:$28 sps:$4 sm:$0xff]   ;;  %v7846_v63 = vld [vmem:[#allocation10 + $0x2ec] ss:$28 sps:$4 sm:$0xff]  }
 0x42f   :  { %5919 = vmatprep.subr.bf16.mxu1 %v7786_v0  ;;  %7088 = vmatprep.subr.bf16.mxu0 %v7787_v9  ;;  %v7847_v0 = vld [vmem:[#allocation10 + $0x670] ss:$28 sps:$4 sm:$0xff]   ;;  %v7844_v9 = vld [vmem:[#allocation10 + $0x2e8] ss:$28 sps:$4 sm:$0xff]  }
 0x431   :  { %5920 = vmatpush1.bf16.msra.mxu1 %v7784_v1  ;;  %v7848_v1 = vld [vmem:[#allocation10 + $0x4b0] ss:$28 sps:$4 sm:$0xff]  }
 0x432   :  { %7089 = vmatpush3.bf16.msra.mxu0 %v7788_v2  ;;  %5921 = vmatprep.subr.bf16.mxu1 %v7791_v4  ;;  %v7851_v2 = vld [vmem:[#allocation10 + $0x324] ss:$28 sps:$4 sm:$0xff]  }
 0x433   :  { %7090 = vmatprep.subr.bf16.mxu0 %v7792_v5  ;;  %v7852_v4 = vld [vmem:[#allocation10 + $0x6a8] ss:$28 sps:$4 sm:$0xff]   ;;  %v7849_v5 = vld [vmem:[#allocation10 + $0x320] ss:$28 sps:$4 sm:$0xff]  }
 0x435   :  { %5922 = vmatpush1.bf16.msra.mxu1 %v7789_v6  ;;  %v7853_v6 = vld [vmem:[#allocation10 + $0x4e8] ss:$28 sps:$4 sm:$0xff]  }
 0x436   :  { %7091 = vmatpush3.bf16.msra.mxu0 %v7793_v7  ;;  %5923 = vmatprep.subr.bf16.mxu1 %v7796_v10  ;;  %v7856_v7 = vld [vmem:[#allocation10 + $0x35c] ss:$28 sps:$4 sm:$0xff]  }
 0x437   :  { %7092 = vmatprep.subr.bf16.mxu0 %v7797_v11  ;;  %v7857_v10 = vld [vmem:[#allocation10 + $0x6e0] ss:$28 sps:$4 sm:$0xff]   ;;  %v7854_v11 = vld [vmem:[#allocation10 + $0x358] ss:$28 sps:$4 sm:$0xff]  }
 0x439   :  { %5924 = vmatpush1.bf16.msra.mxu1 %v7794_v12  ;;  %v7858_v12 = vld [vmem:[#allocation10 + $0x520] ss:$28 sps:$4 sm:$0xff]  }
 0x43a   :  { %7093 = vmatpush3.bf16.msra.mxu0 %v7798_v32  ;;  %5925 = vmatprep.subr.bf16.mxu1 %v7801_v8  ;;  %v7861_v32 = vld [vmem:[#allocation10 + $0x394] ss:$28 sps:$4 sm:$0xff]  }
 0x43b   :  { %7094 = vmatprep.subr.bf16.mxu0 %v7802_v33  ;;  %v7862_v8 = vld [vmem:[#allocation10 + $0x8d8] ss:$28 sps:$4 sm:$0xff]   ;;  %v7859_v33 = vld [vmem:[#allocation10 + $0x390] ss:$28 sps:$4 sm:$0xff]  }
 0x43d   :  { %5926 = vmatpush1.bf16.msra.mxu1 %v7799_v3  ;;  %v7863_v3 = vld [vmem:[#allocation10 + $0x718] ss:$28 sps:$4 sm:$0xff]  }
 0x43e   :  { %7095 = vmatpush3.bf16.msra.mxu0 %v7803_v13  ;;  %5927 = vmatprep.subr.bf16.mxu1 %v7806_v14  ;;  %v7866_v13 = vld [vmem:[#allocation10 + $0x3cc] ss:$28 sps:$4 sm:$0xff]  }
 0x43f   :  { %7096 = vmatprep.subr.bf16.mxu0 %v7807_v18  ;;  %v7867_v14 = vld [vmem:[#allocation10 + $0x910] ss:$28 sps:$4 sm:$0xff]   ;;  %v7864_v18 = vld [vmem:[#allocation10 + $0x3c8] ss:$28 sps:$4 sm:$0xff]  }
 0x441   :  { %5928 = vmatpush1.bf16.msra.mxu1 %v7804_v20  ;;  %v7868_v20 = vld [vmem:[#allocation10 + $0x750] ss:$28 sps:$4 sm:$0xff]  }
 0x442   :  { %7097 = vmatpush3.bf16.msra.mxu0 %v7808_v23  ;;  %5929 = vmatprep.subr.bf16.mxu1 %v7811_v24  ;;  %v7871_v23 = vld [vmem:[#allocation10 + $0x404] ss:$28 sps:$4 sm:$0xff]  }
 0x443   :  { %7098 = vmatprep.subr.bf16.mxu0 %v7812_v37  ;;  %v7872_v24 = vld [vmem:[#allocation10 + $0x948] ss:$28 sps:$4 sm:$0xff]   ;;  %v7869_v37 = vld [vmem:[#allocation10 + $0x400] ss:$28 sps:$4 sm:$0xff]  }
 0x445   :  { %5930 = vmatpush1.bf16.msra.mxu1 %v7809_v25  ;;  %v7876_v25 = vld [vmem:[#allocation10 + $0x43c] ss:$28 sps:$4 sm:$0xff]  }
 0x446   :  { %7099 = vmatpush3.bf16.msra.mxu0 %v7813_v53  ;;  %5931 = vmatprep.subr.bf16.mxu1 %v7816_v26  ;;  %v7877_v53 = vld [vmem:[#allocation10 + $0x980] ss:$28 sps:$4 sm:$0xff]   ;;  %v7874_v26 = vld [vmem:[#allocation10 + $0x438] ss:$28 sps:$4 sm:$0xff]  }
 0x447   :  { %7100 = vmatprep.subr.bf16.mxu0 %v7817_v27  ;;  %v7881_v27 = vld [vmem:[#allocation10 + $0x474] ss:$28 sps:$4 sm:$0xff]  }
 0x449   :  { %5932 = vmatpush1.bf16.msra.mxu1 %v7814_v28  ;;  %v7882_v28 = vld [vmem:[#allocation10 + $0x9b8] ss:$28 sps:$4 sm:$0xff]  }
 0x44a   :  { %7101 = vmatpush3.bf16.msra.mxu0 %v7818_v29  ;;  %5933 = vmatprep.subr.bf16.mxu1 %v7821_v30  ;;  %v7879_v29 = vld [vmem:[#allocation10 + $0x470] ss:$28 sps:$4 sm:$0xff]   ;;  %v7883_v30 = vld [vmem:[#allocation10 + $0x7f8] ss:$28 sps:$4 sm:$0xff]  }
 0x44b   :  { %7108 = vmatprep.subr.bf16.mxu0 %v7822_v31  ;;  %v7886_v31 = vld [vmem:[#allocation10 + $0x4ac] ss:$28 sps:$4 sm:$0xff]  }
 0x44d   :  { %6122 = vmatmul.mubr.bf16.vlgmr.msra.gmra.mrb[24].mxu0 %v8440_v21  ;;  %5934 = vmatpush1.bf16.msra.mxu1 %v7819_v16  ;;  %v7887_v16 = vld [vmem:[#allocation10 + $0x9f0] ss:$28 sps:$4 sm:$0xff]  }
 0x44e   :  { %7109 = vmatpush3.bf16.msra.mxu0 %v7823_v36  ;;  %6162 = vmatprep.mubr.bf16.mxu0 %v8446_v35  ;;  %v7884_v36 = vld [vmem:[#allocation10 + $0x4a8] ss:$28 sps:$4 sm:$0xff]  }
 0x44f   :  { %5935 = vmatprep.subr.bf16.mxu1 %v7826_v38  ;;  %7110 = vmatprep.subr.bf16.mxu0 %v7827_v41  ;;  %v7888_v38 = vld [vmem:[#allocation10 + $0x830] ss:$28 sps:$4 sm:$0xff]   ;;  %v7891_v41 = vld [vmem:[#allocation10 + $0x4e4] ss:$28 sps:$4 sm:$0xff]  }
 0x451   :  { %5936 = vmatpush1.bf16.msra.mxu1 %v7824_v43  ;;  %v7892_v43 = vld [vmem:[#allocation10 + $0xa28] ss:$28 sps:$4 sm:$0xff]  }
 0x452   :  { %7111 = vmatpush3.bf16.msra.mxu0 %v7828_v44  ;;  %5937 = vmatprep.subr.bf16.mxu1 %v7831_v45  ;;  %v7889_v44 = vld [vmem:[#allocation10 + $0x4e0] ss:$28 sps:$4 sm:$0xff]   ;;  %v7893_v45 = vld [vmem:[#allocation10 + $0x868] ss:$28 sps:$4 sm:$0xff]  }
 0x453   :  { %7112 = vmatprep.subr.bf16.mxu0 %v7832_v46  ;;  %v7896_v46 = vld [vmem:[#allocation10 + $0x51c] ss:$28 sps:$4 sm:$0xff]  }
 0x455   :  { %5938 = vmatpush1.bf16.msra.mxu1 %v7829_v50  ;;  %v7897_v50 = vld [vmem:[#allocation10 + $0xa60] ss:$28 sps:$4 sm:$0xff]  }
 0x456   :  { %7113 = vmatpush3.bf16.msra.mxu0 %v7833_v51  ;;  %5939 = vmatprep.subr.bf16.mxu1 %v7836_v52  ;;  %v7894_v51 = vld [vmem:[#allocation10 + $0x518] ss:$28 sps:$4 sm:$0xff]   ;;  %v7898_v52 = vld [vmem:[#allocation10 + $0x8a0] ss:$28 sps:$4 sm:$0xff]  }
 0x457   :  { %7114 = vmatprep.subr.bf16.mxu0 %v7837_v55  ;;  %v7901_v55 = vld [vmem:[#allocation10 + $0x554] ss:$28 sps:$4 sm:$0xff]  }
 0x459   :  { %5940 = vmatpush1.bf16.msra.mxu1 %v7834_v57  ;;  %v7902_v57 = vld [vmem:[#allocation10 + $0xc58] ss:$28 sps:$4 sm:$0xff]  }
 0x45a   :  { %7115 = vmatpush3.bf16.msra.mxu0 %v7838_v58  ;;  %5941 = vmatprep.subr.bf16.mxu1 %v7841_v59  ;;  %v7899_v58 = vld [vmem:[#allocation10 + $0x550] ss:$28 sps:$4 sm:$0xff]   ;;  %v7903_v59 = vld [vmem:[#allocation10 + $0xa98] ss:$28 sps:$4 sm:$0xff]  }
 0x45b   :  { %7116 = vmatprep.subr.bf16.mxu0 %v7842_v60  ;;  %v7906_v60 = vld [vmem:[#allocation10 + $0x58c] ss:$28 sps:$4 sm:$0xff]  }
 0x45d   :  { %5942 = vmatpush1.bf16.msra.mxu1 %v7839_v61  ;;  %v7907_v61 = vld [vmem:[#allocation10 + $0xc90] ss:$28 sps:$4 sm:$0xff]  }
 0x45e   :  { %7117 = vmatpush3.bf16.msra.mxu0 %v7843_v62  ;;  %5943 = vmatprep.subr.bf16.mxu1 %v7846_v63  ;;  %v7904_v62 = vld [vmem:[#allocation10 + $0x588] ss:$28 sps:$4 sm:$0xff]   ;;  %v7908_v63 = vld [vmem:[#allocation10 + $0xad0] ss:$28 sps:$4 sm:$0xff]  }
 0x45f   :  { %7118 = vmatprep.subr.bf16.mxu0 %v7847_v0  ;;  %v7911_v0 = vld [vmem:[#allocation10 + $0x5c4] ss:$28 sps:$4 sm:$0xff]  }
 0x461   :  { %5944 = vmatpush1.bf16.msra.mxu1 %v7844_v9  ;;  %v7912_v9 = vld [vmem:[#allocation10 + $0xcc8] ss:$28 sps:$4 sm:$0xff]  }
 0x462   :  { %7119 = vmatpush3.bf16.msra.mxu0 %v7848_v1  ;;  %5945 = vmatprep.subr.bf16.mxu1 %v7851_v2  ;;  %v7909_v1 = vld [vmem:[#allocation10 + $0x5c0] ss:$28 sps:$4 sm:$0xff]   ;;  %v7913_v2 = vld [vmem:[#allocation10 + $0xb08] ss:$28 sps:$4 sm:$0xff]  }
 0x463   :  { %7120 = vmatprep.subr.bf16.mxu0 %v7852_v4  ;;  %v7916_v4 = vld [vmem:[#allocation10 + $0x5fc] ss:$28 sps:$4 sm:$0xff]  }
 0x465   :  { %5946 = vmatpush1.bf16.msra.mxu1 %v7849_v5  ;;  %v7917_v5 = vld [vmem:[#allocation10 + $0xd00] ss:$28 sps:$4 sm:$0xff]  }
 0x466   :  { %7121 = vmatpush3.bf16.msra.mxu0 %v7853_v6  ;;  %5947 = vmatprep.subr.bf16.mxu1 %v7856_v7  ;;  %v7914_v6 = vld [vmem:[#allocation10 + $0x5f8] ss:$28 sps:$4 sm:$0xff]   ;;  %v7918_v7 = vld [vmem:[#allocation10 + $0xb40] ss:$28 sps:$4 sm:$0xff]  }
 0x467   :  { %7122 = vmatprep.subr.bf16.mxu0 %v7857_v10  ;;  %v7921_v10 = vld [vmem:[#allocation10 + $0x634] ss:$28 sps:$4 sm:$0xff]  }
 0x469   :  { %5948 = vmatpush1.bf16.msra.mxu1 %v7854_v11  ;;  %v7922_v11 = vld [vmem:[#allocation10 + $0xd38] ss:$28 sps:$4 sm:$0xff]  }
 0x46a   :  { %7123 = vmatpush3.bf16.msra.mxu0 %v7858_v12  ;;  %5960 = vmatprep.subr.bf16.mxu1 %v7861_v32  ;;  %v7919_v12 = vld [vmem:[#allocation10 + $0x630] ss:$28 sps:$4 sm:$0xff]   ;;  %v7923_v32 = vld [vmem:[#allocation10 + $0xb78] ss:$28 sps:$4 sm:$0xff]  }
 0x46b   :  { %7130 = vmatprep.subr.bf16.mxu0 %v7862_v8  ;;  %v7926_v8 = vld [vmem:[#allocation10 + $0x66c] ss:$28 sps:$4 sm:$0xff]  }
 0x46c   :  { %5950 = vmatmul.mubr.bf16.vlgmr.msra.gmra.mrb[12].mxu1 %v8440_v21  ;;  %v7873_v21 = vld [vmem:[#allocation10 + $0x788] ss:$28 sps:$4 sm:$0xff]  }
 0x46d   :  { %6163 = vmatmul.mubr.bf16.vlgmr.msra.gmra.mrb[28].mxu0 %v8442_v22  ;;  %5961 = vmatpush1.bf16.msra.mxu1 %v7859_v33  ;;  %v7927_v33 = vld [vmem:[#allocation10 + $0xd70] ss:$28 sps:$4 sm:$0xff]  }
 0x46e   :  { %5992 = vmatprep.mubr.bf16.mxu1 %v8446_v35  ;;  %7131 = vmatpush3.bf16.msra.mxu0 %v7863_v3  ;;  %v7878_v35 = vld [vmem:[#allocation10 + $0x7c0] ss:$28 sps:$4 sm:$0xff]   ;;  %v7924_v3 = vld [vmem:[#allocation10 + $0x668] ss:$28 sps:$4 sm:$0xff]  }
 0x46f   :  { %6203 = vmatprep.mubr.bf16.mxu0 %v8474_v19  ;;  %5962 = vmatprep.subr.bf16.mxu1 %v7866_v13  ;;  %v7928_v13 = vld [vmem:[#allocation10 + $0xbb0] ss:$28 sps:$4 sm:$0xff]  }
 0x470   :  { %7132 = vmatprep.subr.bf16.mxu0 %v7867_v14  ;;  %v7931_v14 = vld [vmem:[#allocation10 + $0x6a4] ss:$28 sps:$4 sm:$0xff]  }
 0x471   :  { %5963 = vmatpush1.bf16.msra.mxu1 %v7864_v18  ;;  %v7932_v18 = vld [vmem:[#allocation10 + $0xda8] ss:$28 sps:$4 sm:$0xff]  }
 0x472   :  { %7133 = vmatpush3.bf16.msra.mxu0 %v7868_v20  ;;  %5964 = vmatprep.subr.bf16.mxu1 %v7871_v23  ;;  %v7929_v20 = vld [vmem:[#allocation10 + $0x6a0] ss:$28 sps:$4 sm:$0xff]   ;;  %v7933_v23 = vld [vmem:[#allocation10 + $0xbe8] ss:$28 sps:$4 sm:$0xff]  }
 0x473   :  { %7134 = vmatprep.subr.bf16.mxu0 %v7872_v24  ;;  %v7936_v24 = vld [vmem:[#allocation10 + $0x6dc] ss:$28 sps:$4 sm:$0xff]  }
 0x475   :  { %5965 = vmatpush1.bf16.msra.mxu1 %v7869_v37  ;;  %v7937_v37 = vld [vmem:[#allocation10 + $0xde0] ss:$28 sps:$4 sm:$0xff]  }
 0x476   :  { %7135 = vmatpush3.bf16.msra.mxu0 %v7873_v21  ;;  %5966 = vmatprep.subr.bf16.mxu1 %v7876_v25  ;;  %v7934_v21 = vld [vmem:[#allocation10 + $0x6d8] ss:$28 sps:$4 sm:$0xff]   ;;  %v7938_v25 = vld [vmem:[#allocation10 + $0xc20] ss:$28 sps:$4 sm:$0xff]  }
 0x477   :  { %7136 = vmatprep.subr.bf16.mxu0 %v7877_v53  ;;  %v7941_v53 = vld [vmem:[#allocation10 + $0x714] ss:$28 sps:$4 sm:$0xff]  }
 0x479   :  { %5967 = vmatpush1.bf16.msra.mxu1 %v7874_v26  ;;  %v7939_v26 = vld [vmem:[#allocation10 + $0x710] ss:$28 sps:$4 sm:$0xff]  }
 0x47a   :  { %7137 = vmatpush3.bf16.msra.mxu0 %v7878_v35  ;;  %5968 = vmatprep.subr.bf16.mxu1 %v7881_v27  ;;  %v7944_v35 = vld [vmem:[#allocation10 + $0x74c] ss:$28 sps:$4 sm:$0xff]  }
 0x47b   :  { %7138 = vmatprep.subr.bf16.mxu0 %v7882_v28  ;;  %v7942_v27 = vld [vmem:[#allocation10 + $0x748] ss:$28 sps:$4 sm:$0xff]  }
 0x47c   :  { %v7947_v28 = vld [vmem:[#allocation10 + $0x784] ss:$28 sps:$4 sm:$0xff]  }
 0x47d   :  { %5969 = vmatpush1.bf16.msra.mxu1 %v7879_v29  ;;  %v7945_v29 = vld [vmem:[#allocation10 + $0x780] ss:$28 sps:$4 sm:$0xff]  }
 0x47e   :  { %7139 = vmatpush3.bf16.msra.mxu0 %v7883_v30  ;;  %5970 = vmatprep.subr.bf16.mxu1 %v7886_v31  ;;  %v7950_v30 = vld [vmem:[#allocation10 + $0x7bc] ss:$28 sps:$4 sm:$0xff]  }
 0x47f   :  { %7140 = vmatprep.subr.bf16.mxu0 %v7887_v16  ;;  %v7948_v31 = vld [vmem:[#allocation10 + $0x7b8] ss:$28 sps:$4 sm:$0xff]  }
 0x480   :  { %v7953_v16 = vld [vmem:[#allocation10 + $0x7f4] ss:$28 sps:$4 sm:$0xff]  }
 0x481   :  { %5971 = vmatpush1.bf16.msra.mxu1 %v7884_v36  ;;  %v7951_v36 = vld [vmem:[#allocation10 + $0x7f0] ss:$28 sps:$4 sm:$0xff]  }
 0x482   :  { %7141 = vmatpush3.bf16.msra.mxu0 %v7888_v38  ;;  %5972 = vmatprep.subr.bf16.mxu1 %v7891_v41  ;;  %v7954_v38 = vld [vmem:[#allocation10 + $0x828] ss:$28 sps:$4 sm:$0xff]  }
 0x483   :  { %7142 = vmatprep.subr.bf16.mxu0 %v7892_v43  ;;  %v7959_v41 = vld [vmem:[#allocation10 + $0x864] ss:$28 sps:$4 sm:$0xff]   ;;  %v7962_v43 = vld [vmem:[#allocation10 + $0x89c] ss:$28 sps:$4 sm:$0xff]  }
 0x485   :  { %5973 = vmatpush1.bf16.msra.mxu1 %v7889_v44  ;;  %v7960_v44 = vld [vmem:[#allocation10 + $0x898] ss:$28 sps:$4 sm:$0xff]  }
 0x486   :  { %7143 = vmatpush3.bf16.msra.mxu0 %v7893_v45  ;;  %5974 = vmatprep.subr.bf16.mxu1 %v7896_v46  ;;  %v7965_v45 = vld [vmem:[#allocation10 + $0x8d4] ss:$28 sps:$4 sm:$0xff]  }
 0x487   :  { %7144 = vmatprep.subr.bf16.mxu0 %v7897_v50  ;;  %v7963_v46 = vld [vmem:[#allocation10 + $0x8d0] ss:$28 sps:$4 sm:$0xff]  }
 0x488   :  { %v7968_v50 = vld [vmem:[#allocation10 + $0x90c] ss:$28 sps:$4 sm:$0xff]  }
 0x489   :  { %5975 = vmatpush1.bf16.msra.mxu1 %v7894_v51  ;;  %v7966_v51 = vld [vmem:[#allocation10 + $0x908] ss:$28 sps:$4 sm:$0xff]  }
 0x48a   :  { %7145 = vmatpush3.bf16.msra.mxu0 %v7898_v52  ;;  %5976 = vmatprep.subr.bf16.mxu1 %v7901_v55  ;;  %v7971_v52 = vld [vmem:[#allocation10 + $0x944] ss:$28 sps:$4 sm:$0xff]  }
 0x48b   :  { %7152 = vmatprep.subr.bf16.mxu0 %v7902_v57  ;;  %v7969_v55 = vld [vmem:[#allocation10 + $0x940] ss:$28 sps:$4 sm:$0xff]  }
 0x48c   :  { %v7974_v57 = vld [vmem:[#allocation10 + $0x97c] ss:$28 sps:$4 sm:$0xff]  }
 0x48d   :  { %6204 = vmatmul.mubr.bf16.vlgmr.msra.gmra.mrb[32].mxu0 %v8470_v15  ;;  %5977 = vmatpush1.bf16.msra.mxu1 %v7899_v58  ;;  %v7972_v58 = vld [vmem:[#allocation10 + $0x978] ss:$28 sps:$4 sm:$0xff]  }
 0x48e   :  { %7153 = vmatpush3.bf16.msra.mxu0 %v7903_v59  ;;  %6244 = vmatprep.mubr.bf16.mxu0 %v8476_v39  ;;  %v7977_v59 = vld [vmem:[#allocation10 + $0x9b4] ss:$28 sps:$4 sm:$0xff]  }
 0x48f   :  { %5978 = vmatprep.subr.bf16.mxu1 %v7906_v60  ;;  %7154 = vmatprep.subr.bf16.mxu0 %v7907_v61  ;;  %v7975_v60 = vld [vmem:[#allocation10 + $0x9b0] ss:$28 sps:$4 sm:$0xff]  }
 0x490   :  { %v7980_v61 = vld [vmem:[#allocation10 + $0x9ec] ss:$28 sps:$4 sm:$0xff]  }
 0x491   :  { %5979 = vmatpush1.bf16.msra.mxu1 %v7904_v62  ;;  %v7978_v62 = vld [vmem:[#allocation10 + $0x9e8] ss:$28 sps:$4 sm:$0xff]  }
 0x492   :  { %7155 = vmatpush3.bf16.msra.mxu0 %v7908_v63  ;;  %5980 = vmatprep.subr.bf16.mxu1 %v7911_v0  ;;  %v7983_v63 = vld [vmem:[#allocation10 + $0xa24] ss:$28 sps:$4 sm:$0xff]  }
 0x493   :  { %7156 = vmatprep.subr.bf16.mxu0 %v7912_v9  ;;  %v7981_v0 = vld [vmem:[#allocation10 + $0xa20] ss:$28 sps:$4 sm:$0xff]  }
 0x494   :  { %v7986_v9 = vld [vmem:[#allocation10 + $0xa5c] ss:$28 sps:$4 sm:$0xff]  }
 0x495   :  { %5981 = vmatpush1.bf16.msra.mxu1 %v7909_v1  ;;  %v7984_v1 = vld [vmem:[#allocation10 + $0xa58] ss:$28 sps:$4 sm:$0xff]  }
 0x496   :  { %7157 = vmatpush3.bf16.msra.mxu0 %v7913_v2  ;;  %5982 = vmatprep.subr.bf16.mxu1 %v7916_v4  ;;  %v7989_v2 = vld [vmem:[#allocation10 + $0xa94] ss:$28 sps:$4 sm:$0xff]  }
 0x497   :  { %7158 = vmatprep.subr.bf16.mxu0 %v7917_v5  ;;  %v7987_v4 = vld [vmem:[#allocation10 + $0xa90] ss:$28 sps:$4 sm:$0xff]  }
 0x498   :  { %v7992_v5 = vld [vmem:[#allocation10 + $0xacc] ss:$28 sps:$4 sm:$0xff]  }
 0x499   :  { %5983 = vmatpush1.bf16.msra.mxu1 %v7914_v6  ;;  %v7990_v6 = vld [vmem:[#allocation10 + $0xac8] ss:$28 sps:$4 sm:$0xff]  }
 0x49a   :  { %7159 = vmatpush3.bf16.msra.mxu0 %v7918_v7  ;;  %5984 = vmatprep.subr.bf16.mxu1 %v7921_v10  ;;  %v7995_v7 = vld [vmem:[#allocation10 + $0xb04] ss:$28 sps:$4 sm:$0xff]  }
 0x49b   :  { %7160 = vmatprep.subr.bf16.mxu0 %v7922_v11  ;;  %v7993_v10 = vld [vmem:[#allocation10 + $0xb00] ss:$28 sps:$4 sm:$0xff]  }
 0x49c   :  { %v7998_v11 = vld [vmem:[#allocation10 + $0xb3c] ss:$28 sps:$4 sm:$0xff]  }
 0x49d   :  { %5985 = vmatpush1.bf16.msra.mxu1 %v7919_v12  ;;  %v7996_v12 = vld [vmem:[#allocation10 + $0xb38] ss:$28 sps:$4 sm:$0xff]  }
 0x49e   :  { %7161 = vmatpush3.bf16.msra.mxu0 %v7923_v32  ;;  %5986 = vmatprep.subr.bf16.mxu1 %v7926_v8  ;;  %v8001_v32 = vld [vmem:[#allocation10 + $0xb74] ss:$28 sps:$4 sm:$0xff]  }
 0x49f   :  { %7162 = vmatprep.subr.bf16.mxu0 %v7927_v33  ;;  %v7999_v8 = vld [vmem:[#allocation10 + $0xb70] ss:$28 sps:$4 sm:$0xff]  }
 0x4a0   :  { %v8501_v33 = vld [vmem:[#allocation11 + $0xe] sm:$0xff] }
 0x4a1   :  { %5987 = vmatpush1.bf16.msra.mxu1 %v7924_v3  ;;  %v3245_v3 = vrot.slane %v8501_v33, %v8405_v54 }
 0x4a2   :  { %7163 = vmatpush3.bf16.msra.mxu0 %v7928_v13  ;;  %5988 = vmatprep.subr.bf16.mxu1 %v7931_v14  ;;  %v3241_v13 = vrot.slane %v8501_v33, %v8360_v42  ;;  %v3249_v14 = vrot.slane %v8501_v33, %v8408_v56  ;;  %v8010_v56 = vld [vmem:[#allocation10 + $0xc1c] ss:$28 sps:$4 sm:$0xff]  }
 0x4a3   :  { %7164 = vmatprep.subr.bf16.mxu0 %v7932_v18  ;;  %v8002_v18 = vld [vmem:[#allocation10 + $0xba8] ss:$28 sps:$4 sm:$0xff]  }
 0x4a5   :  { %5989 = vmatpush1.bf16.msra.mxu1 %v7929_v20  ;;  %v8007_v20 = vld [vmem:[#allocation10 + $0xbe4] ss:$28 sps:$4 sm:$0xff]  }
 0x4a6   :  { %7165 = vmatpush3.bf16.msra.mxu0 %v7933_v23  ;;  %5990 = vmatprep.subr.bf16.mxu1 %v7936_v24 }
 0x4a7   :  { %7166 = vmatprep.subr.bf16.mxu0 %v7937_v37 }
 0x4a9   :  { %5991 = vmatpush1.bf16.msra.mxu1 %v7934_v21 }
 0x4aa   :  { %7167 = vmatpush3.bf16.msra.mxu0 %v7938_v25  ;;  %6003 = vmatprep.subr.bf16.mxu1 %v7941_v53 }
 0x4ac   :  { %5993 = vmatmul.mubr.bf16.vlgmr.msra.gmra.mrb[12].mxu1 %v8442_v22  ;;  %v7956_v22 = vld [vmem:[#allocation10 + $0x82c] ss:$28 sps:$4 sm:$0xff]  }
 0x4ad   :  { %6245 = vmatmul.mubr.bf16.vlgmr.msra.gmra.mrb[36].mxu0 %v8472_v17  ;;  %6004 = vmatpush1.bf16.msra.mxu1 %v7939_v26 }
 0x4ae   :  { %6035 = vmatprep.mubr.bf16.mxu1 %v8474_v19  ;;  %6005 = vmatprep.subr.bf16.mxu1 %v7944_v35  ;;  %v7957_v19 = vld [vmem:[#allocation10 + $0x860] ss:$28 sps:$4 sm:$0xff]  }
 0x4b1   :  { %6006 = vmatpush1.bf16.msra.mxu1 %v7942_v27  ;;  %v8005_v27 = vld [vmem:[#allocation10 + $0xbe0] ss:$28 sps:$4 sm:$0xff]  }
 0x4b2   :  { %6007 = vmatprep.subr.bf16.mxu1 %v7947_v28 }
 0x4b5   :  { %6008 = vmatpush1.bf16.msra.mxu1 %v7945_v29 }
 0x4b6   :  { %6009 = vmatprep.subr.bf16.mxu1 %v7950_v30 }
 0x4b9   :  { %6010 = vmatpush1.bf16.msra.mxu1 %v7948_v31 }
 0x4ba   :  { %6011 = vmatprep.subr.bf16.mxu1 %v7953_v16 }
 0x4bd   :  { %6012 = vmatpush1.bf16.msra.mxu1 %v7951_v36  ;;  %v8008_v36 = vld [vmem:[#allocation10 + $0xc18] ss:$28 sps:$4 sm:$0xff]  }
 0x4be   :  { %6013 = vmatprep.subr.bf16.mxu1 %v7956_v22  ;;  %v8013_v22 = vld [vmem:[#allocation10 + $0xc54] ss:$28 sps:$4 sm:$0xff]  }
 0x4c1   :  { %6014 = vmatpush1.bf16.msra.mxu1 %v7954_v38  ;;  %v8011_v38 = vld [vmem:[#allocation10 + $0xc50] ss:$28 sps:$4 sm:$0xff]  }
 0x4c2   :  { %6015 = vmatprep.subr.bf16.mxu1 %v7959_v41  ;;  %v8016_v41 = vld [vmem:[#allocation10 + $0xc8c] ss:$28 sps:$4 sm:$0xff]  }
 0x4c5   :  { %6016 = vmatpush1.bf16.msra.mxu1 %v7957_v19 }
 0x4c6   :  { %6017 = vmatprep.subr.bf16.mxu1 %v7962_v43 }
 0x4c9   :  { %6018 = vmatpush1.bf16.msra.mxu1 %v7960_v44  ;;  %v8014_v44 = vld [vmem:[#allocation10 + $0xc88] ss:$28 sps:$4 sm:$0xff]  }
 0x4ca   :  { %6019 = vmatprep.subr.bf16.mxu1 %v7965_v45 }
 0x4cd   :  { %6020 = vmatpush1.bf16.msra.mxu1 %v7963_v46  ;;  %v8019_v46 = vld [vmem:[#allocation10 + $0xcc4] ss:$28 sps:$4 sm:$0xff]  }
 0x4ce   :  { %6021 = vmatprep.subr.bf16.mxu1 %v7968_v50 }
 0x4d1   :  { %6022 = vmatpush1.bf16.msra.mxu1 %v7966_v51 }
 0x4d2   :  { %6023 = vmatprep.subr.bf16.mxu1 %v7971_v52 }
 0x4d5   :  { %6024 = vmatpush1.bf16.msra.mxu1 %v7969_v55  ;;  %v8017_v55 = vld [vmem:[#allocation10 + $0xcc0] ss:$28 sps:$4 sm:$0xff]  }
 0x4d6   :  { %6025 = vmatprep.subr.bf16.mxu1 %v7974_v57 }
 0x4d9   :  { %6026 = vmatpush1.bf16.msra.mxu1 %v7972_v58  ;;  %v8022_v58 = vld [vmem:[#allocation10 + $0xcfc] ss:$28 sps:$4 sm:$0xff]  }
 0x4da   :  { %6027 = vmatprep.subr.bf16.mxu1 %v7977_v59 }
 0x4dd   :  { %6028 = vmatpush1.bf16.msra.mxu1 %v7975_v60  ;;  %v8020_v60 = vld [vmem:[#allocation10 + $0xcf8] ss:$28 sps:$4 sm:$0xff]  }
 0x4de   :  { %6029 = vmatprep.subr.bf16.mxu1 %v7980_v61  ;;  %v8025_v61 = vld [vmem:[#allocation10 + $0xd34] ss:$28 sps:$4 sm:$0xff]  }
 0x4e1   :  { %6030 = vmatpush1.bf16.msra.mxu1 %v7978_v62  ;;  %v8023_v62 = vld [vmem:[#allocation10 + $0xd30] ss:$28 sps:$4 sm:$0xff]  }
 0x4e2   :  { %6031 = vmatprep.subr.bf16.mxu1 %v7983_v63  ;;  %v8028_v63 = vld [vmem:[#allocation10 + $0xd6c] ss:$28 sps:$4 sm:$0xff]  }
 0x4e5   :  { %6032 = vmatpush1.bf16.msra.mxu1 %v7981_v0  ;;  %v8026_v0 = vld [vmem:[#allocation10 + $0xd68] ss:$28 sps:$4 sm:$0xff]  }
 0x4e6   :  { %6033 = vmatprep.subr.bf16.mxu1 %v7986_v9  ;;  %v8031_v9 = vld [vmem:[#allocation10 + $0xda4] ss:$28 sps:$4 sm:$0xff]  }
 0x4e9   :  { %6034 = vmatpush1.bf16.msra.mxu1 %v7984_v1 }
 0x4ea   :  { %6046 = vmatprep.subr.bf16.mxu1 %v7989_v2 }
 0x4ec   :  { %6036 = vmatmul.mubr.bf16.vlgmr.msra.gmra.mrb[12].mxu1 %v8470_v15  ;;  %v8004_v15 = vld [vmem:[#allocation10 + $0xbac] ss:$28 sps:$4 sm:$0xff]  }
 0x4ed   :  { %6047 = vmatpush1.bf16.msra.mxu1 %v7987_v4  ;;  %6078 = vmatprep.mubr.bf16.mxu1 %v8476_v39  ;;  %v3237_v39 = vrot.slane %v8501_v33, %v8357_v40  ;;  %v8029_v4 = vld [vmem:[#allocation10 + $0xda0] ss:$28 sps:$4 sm:$0xff]  }
 0x4ee   :  { %6048 = vmatprep.subr.bf16.mxu1 %v7992_v5 }
 0x4f1   :  { %6049 = vmatpush1.bf16.msra.mxu1 %v7990_v6 }
 0x4f2   :  { %6050 = vmatprep.subr.bf16.mxu1 %v7995_v7  ;;  %v8034_v7 = vld [vmem:[#allocation10 + $0xddc] ss:$28 sps:$4 sm:$0xff]  }
 0x4f5   :  { %6051 = vmatpush1.bf16.msra.mxu1 %v7993_v10 }
 0x4f6   :  { %6052 = vmatprep.subr.bf16.mxu1 %v7998_v11 }
 0x4f9   :  { %6053 = vmatpush1.bf16.msra.mxu1 %v7996_v12  ;;  %v8032_v12 = vld [vmem:[#allocation10 + $0xdd8] ss:$28 sps:$4 sm:$0xff]  }
 0x4fa   :  { %6054 = vmatprep.subr.bf16.mxu1 %v8001_v32  ;;  %v3261_v32 = vrot.slane %v8501_v33, %v1059_v48 }
 0x4fd   :  { %6055 = vmatpush1.bf16.msra.mxu1 %v7999_v8 }
 0x4fe   :  { %6056 = vmatprep.subr.bf16.mxu1 %v8004_v15 }
 0x4ff   :  { %v5736_v23 = vpop.f32.mrb[8].mxu1  ;;  %v5908_v24 = vpop.f32.mrb[20].mxu0 }
 0x500   :  { %v7190_v37 = vadd.f32 %v5736_v23, %v3237_v39  ;;  %v7194_v21 = vadd.f32 %v5908_v24, %v3245_v3  ;;  %v5738_v25 = vpop.f32.mrb[9].mxu1  ;;  %v5910_v53 = vpop.f32.mrb[21].mxu0 }
 0x501   :  { %v7191_v40 = vadd.f32 %v5738_v25, %v3241_v13  ;;  %v7195_v26 = vadd.f32 %v5910_v53, %v3249_v14  ;;  %v5740_v35 = vpop.f32.mrb[10].mxu1  ;;  %v5912_v54 = vpop.f32.mrb[22].mxu0  ;;  %6057 = vmatpush1.bf16.msra.mxu1 %v8002_v18 }
 0x502   :  { %8035 = vtanh.f32 %v7190_v37  ;;  %v7192_v42 = vadd.f32 %v5740_v35, %v3237_v39  ;;  %v5742_v28 = vpop.f32.mrb[11].mxu1  ;;  %v5914_v29 = vpop.f32.mrb[23].mxu0  ;;  %6058 = vmatprep.subr.bf16.mxu1 %v8007_v20  ;;  %v7196_v30 = vadd.f32 %v5912_v54, %v3245_v3 }
 0x503   :  { %8037 = vtanh.f32 %v7194_v21  ;;  %v7193_v31 = vadd.f32 %v5742_v28, %v3241_v13  ;;  %v7197_v16 = vadd.f32 %v5914_v29, %v3249_v14 }
 0x504   :  { %8039 = vtanh.f32 %v7191_v40 }
 0x505   :  { %8041 = vtanh.f32 %v7195_v26  ;;  %6059 = vmatpush1.bf16.msra.mxu1 %v8005_v27 }
 0x506   :  { %8043 = vtanh.f32 %v7192_v42  ;;  %6060 = vmatprep.subr.bf16.mxu1 %v8010_v56 }
 0x507   :  { %8045 = vtanh.f32 %v7196_v30 }
 0x508   :  { %8047 = vtanh.f32 %v7193_v31 }
 0x509   :  { %8049 = vtanh.f32 %v7197_v16  ;;  %6061 = vmatpush1.bf16.msra.mxu1 %v8008_v36  ;;  %v3253_v36 = vrot.slane %v8501_v33, %v1051_v47 }
 0x50a   :  { %6062 = vmatprep.subr.bf16.mxu1 %v8013_v22  ;;  %v3257_v22 = vrot.slane %v8501_v33, %v1055_v49 }
 0x50c   :  { %v8036_v19 = vpop.eup %8035 }
 0x50d   :  { %v8038_v43 = vpop.eup %8037  ;;  %6267 = vst [vmem:[#allocation13] sm:$0xff] %v8036_v19  ;;  %6063 = vmatpush1.bf16.msra.mxu1 %v8011_v38 }
 0x50e   :  { %v8040_v45 = vpop.eup %8039  ;;  %6269 = vst [vmem:[#allocation13 + $0x10] sm:$0xff] %v8038_v43  ;;  %6064 = vmatprep.subr.bf16.mxu1 %v8016_v41 }
 0x50f   :  { %v8042_v50 = vpop.eup %8041  ;;  %6268 = vst [vmem:[#allocation13 + $0x8] sm:$0xff] %v8040_v45 }
 0x510   :  { %v8044_v51 = vpop.eup %8043  ;;  %6270 = vst [vmem:[#allocation13 + $0x18] sm:$0xff] %v8042_v50 }
 0x511   :  { %v8046_v52 = vpop.eup %8045  ;;  %6274 = vst [vmem:[#allocation13 + $0x38] sm:$0xff] %v8044_v51  ;;  %6065 = vmatpush1.bf16.msra.mxu1 %v8014_v44 }
 0x512   :  { %v8048_v57 = vpop.eup %8047  ;;  %6276 = vst [vmem:[#allocation13 + $0x48] sm:$0xff] %v8046_v52  ;;  %6066 = vmatprep.subr.bf16.mxu1 %v8019_v46 }
 0x513   :  { %v8050_v59 = vpop.eup %8049  ;;  %6275 = vst [vmem:[#allocation13 + $0x40] sm:$0xff] %v8048_v57 }
 0x514   :  { %6277 = vst [vmem:[#allocation13 + $0x50] sm:$0xff] %v8050_v59 }
 0x515   :  { %6067 = vmatpush1.bf16.msra.mxu1 %v8017_v55 }
 0x516   :  { %6068 = vmatprep.subr.bf16.mxu1 %v8022_v58 }
 0x519   :  { %6069 = vmatpush1.bf16.msra.mxu1 %v8020_v60 }
 0x51a   :  { %6070 = vmatprep.subr.bf16.mxu1 %v8025_v61 }
 0x51d   :  { %6071 = vmatpush1.bf16.msra.mxu1 %v8023_v62 }
 0x51e   :  { %6072 = vmatprep.subr.bf16.mxu1 %v8028_v63 }
 0x520   :  { %v7102_v1 = vpop.f32.mrb[24].mxu0 }
 0x521   :  { %v7103_v2 = vpop.f32.mrb[25].mxu0  ;;  %6073 = vmatpush1.bf16.msra.mxu1 %v8026_v0 }
 0x522   :  { %v7104_v5 = vadd.f32 %v7103_v2, %v7102_v1  ;;  %v7105_v6 = vpop.f32.mrb[26].mxu0  ;;  %6074 = vmatprep.subr.bf16.mxu1 %v8031_v9 }
 0x523   :  { %v7106_v10 = vpop.f32.mrb[27].mxu0 }
 0x524   :  { %v7107_v11 = vadd.f32 %v7106_v10, %v7105_v6  ;;  %v6124_v39 = vadd.f32 %v7104_v5, %v3261_v32 }
 0x525   :  { %6075 = vmatpush1.bf16.msra.mxu1 %v8029_v4 }
 0x526   :  { %6076 = vmatprep.subr.bf16.mxu1 %v8034_v7  ;;  %v6127_v18 = vadd.f32 %v7107_v11, %v3261_v32 }
 0x529   :  { %6077 = vmatpush1.bf16.msra.mxu1 %v8032_v12 }
 0x52c   :  { %6079 = vmatmul.mubr.bf16.vlgmr.msra.gmra.mrb[12].mxu1 %v8472_v17 }
 0x540   :  { %v7124_v8 = vpop.f32.mrb[28].mxu0 }
 0x541   :  { %v7125_v15 = vpop.f32.mrb[29].mxu0 }
 0x542   :  { %v7126_v3 = vadd.f32 %v7125_v15, %v7124_v8  ;;  %v7127_v13 = vpop.f32.mrb[30].mxu0 }
 0x543   :  { %v7128_v14 = vpop.f32.mrb[31].mxu0 }
 0x544   :  { %v6165_v20 = vadd.f32 %v7126_v3, %v6124_v39  ;;  %v7129_v23 = vadd.f32 %v7128_v14, %v7127_v13 }
 0x546   :  { %v6168_v24 = vadd.f32 %v7129_v23, %v6127_v18 }
 0x560   :  { %v7146_v37 = vpop.f32.mrb[32].mxu0 }
 0x561   :  { %v7147_v21 = vpop.f32.mrb[33].mxu0 }
 0x562   :  { %v7148_v25 = vadd.f32 %v7147_v21, %v7146_v37  ;;  %v7149_v53 = vpop.f32.mrb[34].mxu0 }
 0x563   :  { %v7150_v40 = vpop.f32.mrb[35].mxu0 }
 0x564   :  { %v6206_v17 = vadd.f32 %v7148_v25, %v6165_v20  ;;  %v7151_v26 = vadd.f32 %v7150_v40, %v7149_v53 }
 0x566   :  { %v6209_v35 = vadd.f32 %v7151_v26, %v6168_v24 }
 0x580   :  { %v7168_v54 = vpop.f32.mrb[36].mxu0 }
 0x581   :  { %v7169_v48 = vpop.f32.mrb[37].mxu0 }
 0x582   :  { %v7170_v27 = vadd.f32 %v7169_v48, %v7168_v54  ;;  %v7171_v42 = vpop.f32.mrb[38].mxu0 }
 0x583   :  { %v7172_v28 = vpop.f32.mrb[39].mxu0 }
 0x584   :  { %v6247_v29 = vadd.f32 %v7170_v27, %v6206_v17  ;;  %v7173_v56 = vadd.f32 %v7172_v28, %v7171_v42 }
 0x586   :  { %8051 = vtanh.f32 %v6247_v29  ;;  %v6250_v30 = vadd.f32 %v7173_v56, %v6209_v35 }
 0x588   :  { %8053 = vtanh.f32 %v6250_v30 }
 0x590   :  { %v8052_v31 = vpop.eup %8051 }
 0x591   :  { %6273 = vst [vmem:[#allocation13 + $0x30] sm:$0xff] %v8052_v31 }
 0x592   :  { %v8054_v16 = vpop.eup %8053 }
 0x593   :  { %6280 = vst [vmem:[#allocation13 + $0x68] sm:$0xff] %v8054_v16 }
 0x5ff   :  { %v6080_v38 = vpop.f32.mrb[12].mxu1 }
 0x600   :  { %v7198_v41 = vadd.f32 %v6080_v38, %v3253_v36  ;;  %v6082_v19 = vpop.f32.mrb[13].mxu1 }
 0x601   :  { %v7199_v43 = vadd.f32 %v6082_v19, %v3257_v22  ;;  %v6084_v44 = vpop.f32.mrb[14].mxu1 }
 0x602   :  { %8055 = vtanh.f32 %v7198_v41  ;;  %v7200_v45 = vadd.f32 %v6084_v44, %v3253_v36  ;;  %v6086_v46 = vpop.f32.mrb[15].mxu1 }
 0x603   :  { %8057 = vtanh.f32 %v7199_v43  ;;  %v7201_v50 = vadd.f32 %v6086_v46, %v3257_v22 }
 0x604   :  { %8059 = vtanh.f32 %v7200_v45 }
 0x605   :  { %8061 = vtanh.f32 %v7201_v50 }
 0x60c   :  { %v8056_v51 = vpop.eup %8055 }
 0x60d   :  { %v8058_v47 = vpop.eup %8057  ;;  %6271 = vst [vmem:[#allocation13 + $0x20] sm:$0xff] %v8056_v51 }
 0x60e   :  { %v8060_v34 = vpop.eup %8059  ;;  %6272 = vst [vmem:[#allocation13 + $0x28] sm:$0xff] %v8058_v47 }
 0x60f   :  { %v8062_v49 = vpop.eup %8061  ;;  %6278 = vst [vmem:[#allocation13 + $0x58] sm:$0xff] %v8060_v34 }
 0x610   :  { %6279 = vst [vmem:[#allocation13 + $0x60] sm:$0xff] %v8062_v49 }
 0x611   :  { %8206 = shalt.err (!%p8203_p10)
}
 0x612   :  { %s8207_s27 = scalar_lea.hbm %s8539_s6, 1792 }
 0x613   :  { %p8208_p11 = scmp.ne.s32.totalorder %s8539_s6, %s8207_s27  ;;  %p8211_p12 = scmp.lt.u32.totalorder %s8207_s27, %s8539_s6 }
 0x615   :  { %p8213_p13 = pnand %p8211_p12, %p8208_p11 }
 0x617   :  { %8216 = shalt.err (!%p8213_p13)
}
 0x618   :  { %s8245_s8 = smov 896   ;;  %s8246_s9 = smov 56  }
 0x619   :  { %6292 = dma.vmem_to_hbm [thread:$0]  %s6287_s23, 1792, %s8539_s6, [#allocation4], %s8245_s8, %s8245_s8, %s8246_s9  }
 0x61a   :  { %8225 = dma.done.wait [#allocation4], 1792  }
 0x61b   :  { %8226 = vsyncadd [#allocation4], 4294965504 }
 0x61c   :  { %6296 = vsyncpa [#allocation3], 1 }
 0x61d   :  { %6297 = vsyncpa [#allocation6], 1 }
 0x61e   :  { %6298 = vsyncpa [#allocation9], 1 }
 0x61f   :  { %6299 = vsyncpa [#allocation12], 1 }
 0x620   :  { %6300 = vsyncpa [#allocation4], 1 }

</bundles_post_ra>
